<compile_context>
chip_gen: v5e
topology: v5e:2x2
jax: 0.10.0
libtpu: 0.0.40
codegen_flags: <defaults>
</compile_context>

<pallas_src>
import numpy as np
import jax
import jax.numpy as jnp
from jax.experimental import pallas as pl
from jax.experimental.pallas import tpu as pltpu

LANE = 128
EPS = 1e-5
PADDINGS = (0, 1, 0, 1)          # conv paddings of the 4 stages (from the PyTorch module)
KSIZE = 2


# ----------------------------- static geometry ------------------------------

def _geometry(N, S):
    """Canvas geometry for the fused block (all Python ints, resolved at trace time)."""
    n_layers = len(PADDINGS)
    off = sum(PADDINGS)          # initial offset of the valid box inside the canvas
    size = S
    canvas = 0
    boxes = []                   # (offset, size) of each layer's OUTPUT valid box
    for p in PADDINGS:
        assert off >= p, "canvas offset bookkeeping broken"
        canvas = max(canvas, off + size + p)
        off -= p
        size += 2 * p - 1        # k=2, stride 1
        boxes.append((off, size))
    l_valid = N * canvas ** 3                              # flat canvas length (all images)
    l_final = ((l_valid + LANE - 1) // LANE) * LANE        # output length (lane aligned)
    l0 = l_final + n_layers * LANE                         # first-layer (input) length
    shifts = tuple(kd * canvas * canvas + kh * canvas + kw
                   for kd in range(KSIZE) for kh in range(KSIZE) for kw in range(KSIZE))
    # Invariant 1: all window shifts fit in the per-layer 128-lane shrink budget.
    # Invariant 2 (stale-region safety): after layer l writes z into
    #   buf[:, 0:l_out], layer l+1 reads buf[:, s : s + (l_out - LANE)] with
    #   s <= max(shifts); it never touches the stale region [l_out, l_in) as
    #   long as max(shifts) <= LANE.  This caps canvas at 10 (S <= 8 here).
    assert max(shifts) <= LANE, "window shifts exceed the per-layer lane shrink"
    assert max(shifts) < LANE, "canvas too large for the 128-lane per-layer shift budget"
    return canvas, boxes, l_valid, l_final, l0, shifts


def _box_masks(N, ch, canvas, boxes, l0):
    """[n_layers, ch, l0] f32 masks marking each layer's valid output box (built once, numpy)."""
    masks = []
    for off, size in boxes:
        ax = np.zeros((canvas,), np.float32)
        ax[off:off + size] = 1.0
        m = ax[:, None, None] * ax[None, :, None] * ax[None, None, :]       # [c,c,c]
        m = np.broadcast_to(m[None], (N, canvas, canvas, canvas)).reshape(-1)
        m = np.pad(m, (0, l0 - m.size))
        masks.append(np.broadcast_to(m[None, :], (ch, l0)))
    return jnp.asarray(np.stack(masks, axis=0))


# ------------------------------- fused kernel -------------------------------

def _make_kernel(ch, l0, shifts, m_valid):
    n_layers = len(m_valid)

    def kernel(x_ref, w_ref, g_ref, bt_ref, m_ref, o_ref, buf):
        l_in = l0
        for l in range(n_layers):
            l_out = l_in - LANE
            src = x_ref if l == 0 else buf
            # ---- Conv3d(k=2): ONE MXU matmul with K = 8*ch ----------------------
            # Stack the 8 lane-shifted windows along the sublane axis; each window
            # is read exactly once.  Weights are pre-packed to [ch, 8*ch].
            # (On v6e/v7x, casting `win` and w_ref to bf16 here with
            #  preferred_element_type=f32 halves vreg/VMEM traffic; kept f32 for v5e.)
            win = jnp.concatenate([src[:, s:s + l_out] for s in shifts], axis=0)
            y = jnp.dot(w_ref[l], win, preferred_element_type=jnp.float32)  # [ch, l_out]
            # Conv bias omitted: training-mode BN cancels a per-channel constant exactly.
            # ---- BatchNorm3d (training-mode batch statistics), one pass ---------
            mask = m_ref[l, :, :l_out]                            # [ch, l_out]
            inv_m = 1.0 / float(m_valid[l])
            ym = y * mask
            mean = jnp.sum(ym, axis=-1, keepdims=True) * inv_m               # [ch, 1]
            var = jnp.sum(ym * ym, axis=-1, keepdims=True) * inv_m - mean * mean
            scale = g_ref[l] * jax.lax.rsqrt(var + EPS)
            shift = bt_ref[l] - mean * scale
            z = jnp.maximum(y * scale + shift, 0.0)               # ReLU
            if l + 1 < n_layers:
                # Zero outside the valid box: doubles as the next conv's zero
                # padding and as zero fill of the lane-rounding tail.
                buf[:, :l_out] = z * mask
            else:
                o_ref[...] = z            # single lane-dense HBM store; wrapper crops box
            l_in = l_out

    return kernel


# --------------------------------- wrappers ---------------------------------

def pack_params(params):
    """One-time re-layout of PyTorch-style parameters for the fused kernel."""
    ch = params[0]["w"].shape[0]
    w_all, g_all, bt_all = [], [], []
    for p in params:
        co, ci = p["w"].shape[:2]
        assert co == ch and ci <= ch
        # [Co, Ci, kd, kh, kw] -> [Co, kd*kh*kw, Ci] (pad Ci -> ch) -> [Co, 8*ch]
        # Column o*ch + i matches window-stack row o*ch + i in the kernel.
        wt = jnp.transpose(p["w"], (0, 2, 3, 4, 1)).reshape(co, KSIZE ** 3, ci)
        wt = jnp.pad(wt, ((0, 0), (0, 0), (0, ch - ci))).reshape(co, KSIZE ** 3 * ch)
        w_all.append(wt)
        g_all.append(p["gamma"].reshape(ch, 1))
        bt_all.append(p["beta"].reshape(ch, 1))
    return {"w": jnp.stack(w_all),        # [4, ch, 8*ch]
            "gamma": jnp.stack(g_all),    # [4, ch, 1]
            "beta": jnp.stack(bt_all)}    # [4, ch, 1]


def conv_block_2_forward(x_ncdhw, packed):
    """Fused conv_block_2 forward.  Input/output are NCDHW (PyTorch layout)."""
    N, c_in, D, H, W = x_ncdhw.shape
    assert D == H == W, "kernel assumes cubic inputs"
    S = D
    ch = packed["w"].shape[1]
    n_layers = len(PADDINGS)
    canvas, boxes, l_valid, l_final, l0, shifts = _geometry(N, S)
    m_valid = [N * s ** 3 for _, s in boxes]
    masks = _box_masks(N, ch, canvas, boxes, l0)          # trace-time constant

    # Build the zero-padded flat input canvas: [ch, l0], channels on sublanes.
    off0 = sum(PADDINGS)
    xc = jnp.transpose(x_ncdhw, (1, 0, 2, 3, 4))          # [Cin, N, D, H, W]
    xc = jnp.pad(xc, ((0, ch - c_in), (0, 0),
                      (off0, canvas - off0 - S),
                      (off0, canvas - off0 - S),
                      (off0, canvas - off0 - S)))
    xc = xc.reshape(ch, N * canvas ** 3)
    xc = jnp.pad(xc, ((0, 0), (0, l0 - N * canvas ** 3)))

    kernel = _make_kernel(ch, l0, shifts, m_valid)
    flops = sum(2 * ch * (KSIZE ** 3 * ch) * (l0 - (i + 1) * LANE) for i in range(n_layers))
    bytes_accessed = 4 * (xc.size + packed["w"].size + packed["gamma"].size
                          + packed["beta"].size + masks.size + ch * l_final)
    out2d = pl.pallas_call(
        kernel,
        out_shape=jax.ShapeDtypeStruct((ch, l_final), jnp.float32),
        scratch_shapes=[pltpu.VMEM((ch, l0 - LANE), jnp.float32)],
        cost_estimate=pl.CostEstimate(flops=flops,
                                      transcendentals=n_layers * ch,
                                      bytes_accessed=bytes_accessed),
    )(xc, packed["w"], packed["gamma"], packed["beta"], masks)

    # Pull the final valid box out of the canvas and return NCDHW.
    of, sf = boxes[-1]
    out = out2d[:, :N * canvas ** 3].reshape(ch, N, canvas, canvas, canvas)
    out = out[:, :, of:of + sf, of:of + sf, of:of + sf]
    return jnp.transpose(out, (1, 0, 2, 3, 4))


# ------------------------------ reference & test ----------------------------

def reference_forward(x, params):
    """Pure-JAX reference: Conv3d(+bias) + training-mode BatchNorm3d + ReLU, x4."""
    y = x
    for p, pad in zip(params, PADDINGS):
        y = jax.lax.conv_general_dilated(
            y, p["w"], window_strides=(1, 1, 1), padding=[(pad, pad)] * 3,
            dimension_numbers=("NCDHW", "OIDHW", "NCDHW"))
        y = y + p["b"][None, :, None, None, None]
        mean = jnp.mean(y, axis=(0, 2, 3, 4), keepdims=True)
        var = jnp.mean((y - mean) ** 2, axis=(0, 2, 3, 4), keepdims=True)
        y = (y - mean) * jax.lax.rsqrt(var + EPS)
        y = y * p["gamma"][None, :, None, None, None] + p["beta"][None, :, None, None, None]
        y = jnp.maximum(y, 0.0)
    return y


def init_params(key, ch_in, ch_out):
    params = []
    cin = ch_in
    for _ in range(len(PADDINGS)):
        key, kw, kb, kg, kbe = jax.random.split(key, 5)
        params.append({
            "w": 0.1 * jax.random.normal(kw, (ch_out, cin, 2, 2, 2), jnp.float32),
            "b": 0.05 * jax.random.normal(kb, (ch_out,), jnp.float32),
            "gamma": 1.0 + 0.1 * jax.random.normal(kg, (ch_out,), jnp.float32),
            "beta": 0.1 * jax.random.normal(kbe, (ch_out,), jnp.float32),
        })
        cin = ch_out
    return params


if __name__ == "__main__":
    key = jax.random.PRNGKey(0)
    kx, kp = jax.random.split(key)

    N, ch_in, ch_out, S = 2, 4, 8, 8
    x = jax.random.normal(kx, (N, ch_in, S, S, S), jnp.float32)   # NCDHW
    params = init_params(kp, ch_in, ch_out)

    packed = pack_params(params)                    # hoisted, one-time weight re-layout
    fwd = jax.jit(conv_block_2_forward)
    out = jax.block_until_ready(fwd(x, packed))

    # spatial size round-trips: 8 -> 7 -> 8 -> 7 -> 8
    assert out.shape == (N, ch_out, S, S, S), out.shape
    assert bool(jnp.all(jnp.isfinite(out)))
    assert bool(jnp.all(out >= 0.0))                # ReLU output

    ref = jax.block_until_ready(reference_forward(x, params))
    assert jnp.allclose(out, ref, atol=1e-3, rtol=1e-3), \
        float(jnp.max(jnp.abs(out - ref)))

    print("KERNEL_OK")
</pallas_src>

<mosaic_0001>
module attributes {stable_mosaic.version = 11 : i64} {
  func.func @kernel(%arg0: memref<8x2560xf32, #tpu.memory_space<vmem>>, %arg1: memref<4x8x64xf32, #tpu.memory_space<vmem>>, %arg2: memref<4x8x1xf32, #tpu.memory_space<vmem>>, %arg3: memref<4x8x1xf32, #tpu.memory_space<vmem>>, %arg4: memref<4x8x2560xf32, #tpu.memory_space<vmem>>, %arg5: memref<8x2048xf32, #tpu.memory_space<vmem>>, %arg6: memref<8x2432xf32, #tpu.memory_space<vmem>>) attributes {dimension_semantics = [], scalar_prefetch = 0 : i64, scratch_operands = 1 : i64, tpu.core_type = #tpu.core_type<tc>} {
    %c0 = arith.constant 0 : index
    %c0_0 = arith.constant 0 : index
    %0 = vector.load %arg0[%c0, %c0_0] : memref<8x2560xf32, #tpu.memory_space<vmem>>, vector<8x2432xf32>
    %c0_1 = arith.constant 0 : index
    %c1 = arith.constant 1 : index
    %1 = vector.load %arg0[%c0_1, %c1] : memref<8x2560xf32, #tpu.memory_space<vmem>>, vector<8x2432xf32>
    %c0_2 = arith.constant 0 : index
    %c10 = arith.constant 10 : index
    %2 = vector.load %arg0[%c0_2, %c10] : memref<8x2560xf32, #tpu.memory_space<vmem>>, vector<8x2432xf32>
    %c0_3 = arith.constant 0 : index
    %c11 = arith.constant 11 : index
    %3 = vector.load %arg0[%c0_3, %c11] : memref<8x2560xf32, #tpu.memory_space<vmem>>, vector<8x2432xf32>
    %c0_4 = arith.constant 0 : index
    %c100 = arith.constant 100 : index
    %4 = vector.load %arg0[%c0_4, %c100] : memref<8x2560xf32, #tpu.memory_space<vmem>>, vector<8x2432xf32>
    %c0_5 = arith.constant 0 : index
    %c101 = arith.constant 101 : index
    %5 = vector.load %arg0[%c0_5, %c101] : memref<8x2560xf32, #tpu.memory_space<vmem>>, vector<8x2432xf32>
    %c0_6 = arith.constant 0 : index
    %c110 = arith.constant 110 : index
    %6 = vector.load %arg0[%c0_6, %c110] : memref<8x2560xf32, #tpu.memory_space<vmem>>, vector<8x2432xf32>
    %c0_7 = arith.constant 0 : index
    %c111 = arith.constant 111 : index
    %7 = vector.load %arg0[%c0_7, %c111] : memref<8x2560xf32, #tpu.memory_space<vmem>>, vector<8x2432xf32>
    %8 = tpu.concatenate %0, %1, %2, %3, %4, %5, %6, %7 in 0 : vector<8x2432xf32>, vector<8x2432xf32>, vector<8x2432xf32>, vector<8x2432xf32>, vector<8x2432xf32>, vector<8x2432xf32>, vector<8x2432xf32>, vector<8x2432xf32> -> vector<64x2432xf32>
    %c0_8 = arith.constant 0 : index
    %c0_9 = arith.constant 0 : index
    %c0_10 = arith.constant 0 : index
    %9 = vector.load %arg1[%c0_8, %c0_9, %c0_10] : memref<4x8x64xf32, #tpu.memory_space<vmem>>, vector<1x8x64xf32>
    %10 = vector.shape_cast %9 : vector<1x8x64xf32> to vector<8x64xf32>
    %cst = arith.constant dense<0.000000e+00> : vector<8x2432xf32>
    %11 = tpu.matmul %10, %8, %cst {dimension_numbers = #tpu.dot_dimension_numbers<[1], [0], [0], [1], [0, 0, 1, 1], [], []>} : vector<8x64xf32>, vector<64x2432xf32>, vector<8x2432xf32> -> vector<8x2432xf32>
    %c0_11 = arith.constant 0 : index
    %c0_12 = arith.constant 0 : index
    %c0_13 = arith.constant 0 : index
    %12 = vector.load %arg4[%c0_11, %c0_12, %c0_13] : memref<4x8x2560xf32, #tpu.memory_space<vmem>>, vector<1x8x2432xf32>
    %13 = vector.shape_cast %12 : vector<1x8x2432xf32> to vector<8x2432xf32>
    %14 = arith.mulf %11, %13 : vector<8x2432xf32>
    %cst_14 = arith.constant dense<0.000000e+00> : vector<8xf32>
    %15 = vector.multi_reduction <add>, %14, %cst_14 [1] : vector<8x2432xf32> to vector<8xf32>
    %16 = vector.shape_cast %15 : vector<8xf32> to vector<8x1xf32>
    %cst_15 = arith.constant 0.001457726 : f32
    %17 = vector.broadcast %cst_15 : f32 to vector<8x1xf32>
    %18 = arith.mulf %16, %17 : vector<8x1xf32>
    %19 = arith.mulf %14, %14 : vector<8x2432xf32>
    %cst_16 = arith.constant dense<0.000000e+00> : vector<8xf32>
    %20 = vector.multi_reduction <add>, %19, %cst_16 [1] : vector<8x2432xf32> to vector<8xf32>
    %21 = vector.shape_cast %20 : vector<8xf32> to vector<8x1xf32>
    %cst_17 = arith.constant 0.001457726 : f32
    %22 = vector.broadcast %cst_17 : f32 to vector<8x1xf32>
    %23 = arith.mulf %21, %22 : vector<8x1xf32>
    %24 = arith.mulf %18, %18 : vector<8x1xf32>
    %25 = arith.subf %23, %24 : vector<8x1xf32>
    %c0_18 = arith.constant 0 : index
    %c0_19 = arith.constant 0 : index
    %c0_20 = arith.constant 0 : index
    %26 = vector.load %arg2[%c0_18, %c0_19, %c0_20] : memref<4x8x1xf32, #tpu.memory_space<vmem>>, vector<1x8x1xf32>
    %27 = vector.shape_cast %26 : vector<1x8x1xf32> to vector<8x1xf32>
    %cst_21 = arith.constant 9.99999974E-6 : f32
    %28 = vector.broadcast %cst_21 : f32 to vector<8x1xf32>
    %29 = arith.addf %25, %28 : vector<8x1xf32>
    %30 = math.rsqrt %29 : vector<8x1xf32>
    %31 = arith.mulf %27, %30 : vector<8x1xf32>
    %c0_22 = arith.constant 0 : index
    %c0_23 = arith.constant 0 : index
    %c0_24 = arith.constant 0 : index
    %32 = vector.load %arg3[%c0_22, %c0_23, %c0_24] : memref<4x8x1xf32, #tpu.memory_space<vmem>>, vector<1x8x1xf32>
    %33 = vector.shape_cast %32 : vector<1x8x1xf32> to vector<8x1xf32>
    %34 = arith.mulf %18, %31 : vector<8x1xf32>
    %35 = arith.subf %33, %34 : vector<8x1xf32>
    %36 = vector.broadcast %31 : vector<8x1xf32> to vector<8x2432xf32>
    %37 = arith.mulf %11, %36 : vector<8x2432xf32>
    %38 = vector.broadcast %35 : vector<8x1xf32> to vector<8x2432xf32>
    %39 = arith.addf %37, %38 : vector<8x2432xf32>
    %cst_25 = arith.constant 0.000000e+00 : f32
    %40 = vector.broadcast %cst_25 : f32 to vector<8x2432xf32>
    %41 = arith.maximumf %39, %40 : vector<8x2432xf32>
    %42 = arith.mulf %41, %13 : vector<8x2432xf32>
    %c0_26 = arith.constant 0 : index
    %c0_27 = arith.constant 0 : index
    %43 = vector.load %arg6[%c0_26, %c0_27] : memref<8x2432xf32, #tpu.memory_space<vmem>>, vector<8x2432xf32>
    tpu.vector_store %arg6[%c0_26, %c0_27], %42 {strides = array<i32>} : memref<8x2432xf32, #tpu.memory_space<vmem>>, vector<8x2432xf32>,
    %c0_28 = arith.constant 0 : index
    %c0_29 = arith.constant 0 : index
    %44 = vector.load %arg6[%c0_28, %c0_29] : memref<8x2432xf32, #tpu.memory_space<vmem>>, vector<8x2304xf32>
    %c0_30 = arith.constant 0 : index
    %c1_31 = arith.constant 1 : index
    %45 = vector.load %arg6[%c0_30, %c1_31] : memref<8x2432xf32, #tpu.memory_space<vmem>>, vector<8x2304xf32>
    %c0_32 = arith.constant 0 : index
    %c10_33 = arith.constant 10 : index
    %46 = vector.load %arg6[%c0_32, %c10_33] : memref<8x2432xf32, #tpu.memory_space<vmem>>, vector<8x2304xf32>
    %c0_34 = arith.constant 0 : index
    %c11_35 = arith.constant 11 : index
    %47 = vector.load %arg6[%c0_34, %c11_35] : memref<8x2432xf32, #tpu.memory_space<vmem>>, vector<8x2304xf32>
    %c0_36 = arith.constant 0 : index
    %c100_37 = arith.constant 100 : index
    %48 = vector.load %arg6[%c0_36, %c100_37] : memref<8x2432xf32, #tpu.memory_space<vmem>>, vector<8x2304xf32>
    %c0_38 = arith.constant 0 : index
    %c101_39 = arith.constant 101 : index
    %49 = vector.load %arg6[%c0_38, %c101_39] : memref<8x2432xf32, #tpu.memory_space<vmem>>, vector<8x2304xf32>
    %c0_40 = arith.constant 0 : index
    %c110_41 = arith.constant 110 : index
    %50 = vector.load %arg6[%c0_40, %c110_41] : memref<8x2432xf32, #tpu.memory_space<vmem>>, vector<8x2304xf32>
    %c0_42 = arith.constant 0 : index
    %c111_43 = arith.constant 111 : index
    %51 = vector.load %arg6[%c0_42, %c111_43] : memref<8x2432xf32, #tpu.memory_space<vmem>>, vector<8x2304xf32>
    %52 = tpu.concatenate %44, %45, %46, %47, %48, %49, %50, %51 in 0 : vector<8x2304xf32>, vector<8x2304xf32>, vector<8x2304xf32>, vector<8x2304xf32>, vector<8x2304xf32>, vector<8x2304xf32>, vector<8x2304xf32>, vector<8x2304xf32> -> vector<64x2304xf32>
    %c1_44 = arith.constant 1 : index
    %c0_45 = arith.constant 0 : index
    %c0_46 = arith.constant 0 : index
    %53 = vector.load %arg1[%c1_44, %c0_45, %c0_46] : memref<4x8x64xf32, #tpu.memory_space<vmem>>, vector<1x8x64xf32>
    %54 = vector.shape_cast %53 : vector<1x8x64xf32> to vector<8x64xf32>
    %cst_47 = arith.constant dense<0.000000e+00> : vector<8x2304xf32>
    %55 = tpu.matmul %54, %52, %cst_47 {dimension_numbers = #tpu.dot_dimension_numbers<[1], [0], [0], [1], [0, 0, 1, 1], [], []>} : vector<8x64xf32>, vector<64x2304xf32>, vector<8x2304xf32> -> vector<8x2304xf32>
    %c1_48 = arith.constant 1 : index
    %c0_49 = arith.constant 0 : index
    %c0_50 = arith.constant 0 : index
    %56 = vector.load %arg4[%c1_48, %c0_49, %c0_50] : memref<4x8x2560xf32, #tpu.memory_space<vmem>>, vector<1x8x2304xf32>
    %57 = vector.shape_cast %56 : vector<1x8x2304xf32> to vector<8x2304xf32>
    %58 = arith.mulf %55, %57 : vector<8x2304xf32>
    %cst_51 = arith.constant dense<0.000000e+00> : vector<8xf32>
    %59 = vector.multi_reduction <add>, %58, %cst_51 [1] : vector<8x2304xf32> to vector<8xf32>
    %60 = vector.shape_cast %59 : vector<8xf32> to vector<8x1xf32>
    %cst_52 = arith.constant 9.765625E-4 : f32
    %61 = vector.broadcast %cst_52 : f32 to vector<8x1xf32>
    %62 = arith.mulf %60, %61 : vector<8x1xf32>
    %63 = arith.mulf %58, %58 : vector<8x2304xf32>
    %cst_53 = arith.constant dense<0.000000e+00> : vector<8xf32>
    %64 = vector.multi_reduction <add>, %63, %cst_53 [1] : vector<8x2304xf32> to vector<8xf32>
    %65 = vector.shape_cast %64 : vector<8xf32> to vector<8x1xf32>
    %cst_54 = arith.constant 9.765625E-4 : f32
    %66 = vector.broadcast %cst_54 : f32 to vector<8x1xf32>
    %67 = arith.mulf %65, %66 : vector<8x1xf32>
    %68 = arith.mulf %62, %62 : vector<8x1xf32>
    %69 = arith.subf %67, %68 : vector<8x1xf32>
    %c1_55 = arith.constant 1 : index
    %c0_56 = arith.constant 0 : index
    %c0_57 = arith.constant 0 : index
    %70 = vector.load %arg2[%c1_55, %c0_56, %c0_57] : memref<4x8x1xf32, #tpu.memory_space<vmem>>, vector<1x8x1xf32>
    %71 = vector.shape_cast %70 : vector<1x8x1xf32> to vector<8x1xf32>
    %cst_58 = arith.constant 9.99999974E-6 : f32
    %72 = vector.broadcast %cst_58 : f32 to vector<8x1xf32>
    %73 = arith.addf %69, %72 : vector<8x1xf32>
    %74 = math.rsqrt %73 : vector<8x1xf32>
    %75 = arith.mulf %71, %74 : vector<8x1xf32>
    %c1_59 = arith.constant 1 : index
    %c0_60 = arith.constant 0 : index
    %c0_61 = arith.constant 0 : index
    %76 = vector.load %arg3[%c1_59, %c0_60, %c0_61] : memref<4x8x1xf32, #tpu.memory_space<vmem>>, vector<1x8x1xf32>
    %77 = vector.shape_cast %76 : vector<1x8x1xf32> to vector<8x1xf32>
    %78 = arith.mulf %62, %75 : vector<8x1xf32>
    %79 = arith.subf %77, %78 : vector<8x1xf32>
    %80 = vector.broadcast %75 : vector<8x1xf32> to vector<8x2304xf32>
    %81 = arith.mulf %55, %80 : vector<8x2304xf32>
    %82 = vector.broadcast %79 : vector<8x1xf32> to vector<8x2304xf32>
    %83 = arith.addf %81, %82 : vector<8x2304xf32>
    %cst_62 = arith.constant 0.000000e+00 : f32
    %84 = vector.broadcast %cst_62 : f32 to vector<8x2304xf32>
    %85 = arith.maximumf %83, %84 : vector<8x2304xf32>
    %86 = arith.mulf %85, %57 : vector<8x2304xf32>
    %c0_63 = arith.constant 0 : index
    %c0_64 = arith.constant 0 : index
    %87 = vector.load %arg6[%c0_63, %c0_64] : memref<8x2432xf32, #tpu.memory_space<vmem>>, vector<8x2304xf32>
    tpu.vector_store %arg6[%c0_63, %c0_64], %86 {strides = array<i32>} : memref<8x2432xf32, #tpu.memory_space<vmem>>, vector<8x2304xf32>,
    %c0_65 = arith.constant 0 : index
    %c0_66 = arith.constant 0 : index
    %88 = vector.load %arg6[%c0_65, %c0_66] : memref<8x2432xf32, #tpu.memory_space<vmem>>, vector<8x2176xf32>
    %c0_67 = arith.constant 0 : index
    %c1_68 = arith.constant 1 : index
    %89 = vector.load %arg6[%c0_67, %c1_68] : memref<8x2432xf32, #tpu.memory_space<vmem>>, vector<8x2176xf32>
    %c0_69 = arith.constant 0 : index
    %c10_70 = arith.constant 10 : index
    %90 = vector.load %arg6[%c0_69, %c10_70] : memref<8x2432xf32, #tpu.memory_space<vmem>>, vector<8x2176xf32>
    %c0_71 = arith.constant 0 : index
    %c11_72 = arith.constant 11 : index
    %91 = vector.load %arg6[%c0_71, %c11_72] : memref<8x2432xf32, #tpu.memory_space<vmem>>, vector<8x2176xf32>
    %c0_73 = arith.constant 0 : index
    %c100_74 = arith.constant 100 : index
    %92 = vector.load %arg6[%c0_73, %c100_74] : memref<8x2432xf32, #tpu.memory_space<vmem>>, vector<8x2176xf32>
    %c0_75 = arith.constant 0 : index
    %c101_76 = arith.constant 101 : index
    %93 = vector.load %arg6[%c0_75, %c101_76] : memref<8x2432xf32, #tpu.memory_space<vmem>>, vector<8x2176xf32>
    %c0_77 = arith.constant 0 : index
    %c110_78 = arith.constant 110 : index
    %94 = vector.load %arg6[%c0_77, %c110_78] : memref<8x2432xf32, #tpu.memory_space<vmem>>, vector<8x2176xf32>
    %c0_79 = arith.constant 0 : index
    %c111_80 = arith.constant 111 : index
    %95 = vector.load %arg6[%c0_79, %c111_80] : memref<8x2432xf32, #tpu.memory_space<vmem>>, vector<8x2176xf32>
    %96 = tpu.concatenate %88, %89, %90, %91, %92, %93, %94, %95 in 0 : vector<8x2176xf32>, vector<8x2176xf32>, vector<8x2176xf32>, vector<8x2176xf32>, vector<8x2176xf32>, vector<8x2176xf32>, vector<8x2176xf32>, vector<8x2176xf32> -> vector<64x2176xf32>
    %c2 = arith.constant 2 : index
    %c0_81 = arith.constant 0 : index
    %c0_82 = arith.constant 0 : index
    %97 = vector.load %arg1[%c2, %c0_81, %c0_82] : memref<4x8x64xf32, #tpu.memory_space<vmem>>, vector<1x8x64xf32>
    %98 = vector.shape_cast %97 : vector<1x8x64xf32> to vector<8x64xf32>
    %cst_83 = arith.constant dense<0.000000e+00> : vector<8x2176xf32>
    %99 = tpu.matmul %98, %96, %cst_83 {dimension_numbers = #tpu.dot_dimension_numbers<[1], [0], [0], [1], [0, 0, 1, 1], [], []>} : vector<8x64xf32>, vector<64x2176xf32>, vector<8x2176xf32> -> vector<8x2176xf32>
    %c2_84 = arith.constant 2 : index
    %c0_85 = arith.constant 0 : index
    %c0_86 = arith.constant 0 : index
    %100 = vector.load %arg4[%c2_84, %c0_85, %c0_86] : memref<4x8x2560xf32, #tpu.memory_space<vmem>>, vector<1x8x2176xf32>
    %101 = vector.shape_cast %100 : vector<1x8x2176xf32> to vector<8x2176xf32>
    %102 = arith.mulf %99, %101 : vector<8x2176xf32>
    %cst_87 = arith.constant dense<0.000000e+00> : vector<8xf32>
    %103 = vector.multi_reduction <add>, %102, %cst_87 [1] : vector<8x2176xf32> to vector<8xf32>
    %104 = vector.shape_cast %103 : vector<8xf32> to vector<8x1xf32>
    %cst_88 = arith.constant 0.001457726 : f32
    %105 = vector.broadcast %cst_88 : f32 to vector<8x1xf32>
    %106 = arith.mulf %104, %105 : vector<8x1xf32>
    %107 = arith.mulf %102, %102 : vector<8x2176xf32>
    %cst_89 = arith.constant dense<0.000000e+00> : vector<8xf32>
    %108 = vector.multi_reduction <add>, %107, %cst_89 [1] : vector<8x2176xf32> to vector<8xf32>
    %109 = vector.shape_cast %108 : vector<8xf32> to vector<8x1xf32>
    %cst_90 = arith.constant 0.001457726 : f32
    %110 = vector.broadcast %cst_90 : f32 to vector<8x1xf32>
    %111 = arith.mulf %109, %110 : vector<8x1xf32>
    %112 = arith.mulf %106, %106 : vector<8x1xf32>
    %113 = arith.subf %111, %112 : vector<8x1xf32>
    %c2_91 = arith.constant 2 : index
    %c0_92 = arith.constant 0 : index
    %c0_93 = arith.constant 0 : index
    %114 = vector.load %arg2[%c2_91, %c0_92, %c0_93] : memref<4x8x1xf32, #tpu.memory_space<vmem>>, vector<1x8x1xf32>
    %115 = vector.shape_cast %114 : vector<1x8x1xf32> to vector<8x1xf32>
    %cst_94 = arith.constant 9.99999974E-6 : f32
    %116 = vector.broadcast %cst_94 : f32 to vector<8x1xf32>
    %117 = arith.addf %113, %116 : vector<8x1xf32>
    %118 = math.rsqrt %117 : vector<8x1xf32>
    %119 = arith.mulf %115, %118 : vector<8x1xf32>
    %c2_95 = arith.constant 2 : index
    %c0_96 = arith.constant 0 : index
    %c0_97 = arith.constant 0 : index
    %120 = vector.load %arg3[%c2_95, %c0_96, %c0_97] : memref<4x8x1xf32, #tpu.memory_space<vmem>>, vector<1x8x1xf32>
    %121 = vector.shape_cast %120 : vector<1x8x1xf32> to vector<8x1xf32>
    %122 = arith.mulf %106, %119 : vector<8x1xf32>
    %123 = arith.subf %121, %122 : vector<8x1xf32>
    %124 = vector.broadcast %119 : vector<8x1xf32> to vector<8x2176xf32>
    %125 = arith.mulf %99, %124 : vector<8x2176xf32>
    %126 = vector.broadcast %123 : vector<8x1xf32> to vector<8x2176xf32>
    %127 = arith.addf %125, %126 : vector<8x2176xf32>
    %cst_98 = arith.constant 0.000000e+00 : f32
    %128 = vector.broadcast %cst_98 : f32 to vector<8x2176xf32>
    %129 = arith.maximumf %127, %128 : vector<8x2176xf32>
    %130 = arith.mulf %129, %101 : vector<8x2176xf32>
    %c0_99 = arith.constant 0 : index
    %c0_100 = arith.constant 0 : index
    %131 = vector.load %arg6[%c0_99, %c0_100] : memref<8x2432xf32, #tpu.memory_space<vmem>>, vector<8x2176xf32>
    tpu.vector_store %arg6[%c0_99, %c0_100], %130 {strides = array<i32>} : memref<8x2432xf32, #tpu.memory_space<vmem>>, vector<8x2176xf32>,
    %c0_101 = arith.constant 0 : index
    %c0_102 = arith.constant 0 : index
    %132 = vector.load %arg6[%c0_101, %c0_102] : memref<8x2432xf32, #tpu.memory_space<vmem>>, vector<8x2048xf32>
    %c0_103 = arith.constant 0 : index
    %c1_104 = arith.constant 1 : index
    %133 = vector.load %arg6[%c0_103, %c1_104] : memref<8x2432xf32, #tpu.memory_space<vmem>>, vector<8x2048xf32>
    %c0_105 = arith.constant 0 : index
    %c10_106 = arith.constant 10 : index
    %134 = vector.load %arg6[%c0_105, %c10_106] : memref<8x2432xf32, #tpu.memory_space<vmem>>, vector<8x2048xf32>
    %c0_107 = arith.constant 0 : index
    %c11_108 = arith.constant 11 : index
    %135 = vector.load %arg6[%c0_107, %c11_108] : memref<8x2432xf32, #tpu.memory_space<vmem>>, vector<8x2048xf32>
    %c0_109 = arith.constant 0 : index
    %c100_110 = arith.constant 100 : index
    %136 = vector.load %arg6[%c0_109, %c100_110] : memref<8x2432xf32, #tpu.memory_space<vmem>>, vector<8x2048xf32>
    %c0_111 = arith.constant 0 : index
    %c101_112 = arith.constant 101 : index
    %137 = vector.load %arg6[%c0_111, %c101_112] : memref<8x2432xf32, #tpu.memory_space<vmem>>, vector<8x2048xf32>
    %c0_113 = arith.constant 0 : index
    %c110_114 = arith.constant 110 : index
    %138 = vector.load %arg6[%c0_113, %c110_114] : memref<8x2432xf32, #tpu.memory_space<vmem>>, vector<8x2048xf32>
    %c0_115 = arith.constant 0 : index
    %c111_116 = arith.constant 111 : index
    %139 = vector.load %arg6[%c0_115, %c111_116] : memref<8x2432xf32, #tpu.memory_space<vmem>>, vector<8x2048xf32>
    %140 = tpu.concatenate %132, %133, %134, %135, %136, %137, %138, %139 in 0 : vector<8x2048xf32>, vector<8x2048xf32>, vector<8x2048xf32>, vector<8x2048xf32>, vector<8x2048xf32>, vector<8x2048xf32>, vector<8x2048xf32>, vector<8x2048xf32> -> vector<64x2048xf32>
    %c3 = arith.constant 3 : index
    %c0_117 = arith.constant 0 : index
    %c0_118 = arith.constant 0 : index
    %141 = vector.load %arg1[%c3, %c0_117, %c0_118] : memref<4x8x64xf32, #tpu.memory_space<vmem>>, vector<1x8x64xf32>
    %142 = vector.shape_cast %141 : vector<1x8x64xf32> to vector<8x64xf32>
    %cst_119 = arith.constant dense<0.000000e+00> : vector<8x2048xf32>
    %143 = tpu.matmul %142, %140, %cst_119 {dimension_numbers = #tpu.dot_dimension_numbers<[1], [0], [0], [1], [0, 0, 1, 1], [], []>} : vector<8x64xf32>, vector<64x2048xf32>, vector<8x2048xf32> -> vector<8x2048xf32>
    %c3_120 = arith.constant 3 : index
    %c0_121 = arith.constant 0 : index
    %c0_122 = arith.constant 0 : index
    %144 = vector.load %arg4[%c3_120, %c0_121, %c0_122] : memref<4x8x2560xf32, #tpu.memory_space<vmem>>, vector<1x8x2048xf32>
    %145 = vector.shape_cast %144 : vector<1x8x2048xf32> to vector<8x2048xf32>
    %146 = arith.mulf %143, %145 : vector<8x2048xf32>
    %cst_123 = arith.constant dense<0.000000e+00> : vector<8xf32>
    %147 = vector.multi_reduction <add>, %146, %cst_123 [1] : vector<8x2048xf32> to vector<8xf32>
    %148 = vector.shape_cast %147 : vector<8xf32> to vector<8x1xf32>
    %cst_124 = arith.constant 9.765625E-4 : f32
    %149 = vector.broadcast %cst_124 : f32 to vector<8x1xf32>
    %150 = arith.mulf %148, %149 : vector<8x1xf32>
    %151 = arith.mulf %146, %146 : vector<8x2048xf32>
    %cst_125 = arith.constant dense<0.000000e+00> : vector<8xf32>
    %152 = vector.multi_reduction <add>, %151, %cst_125 [1] : vector<8x2048xf32> to vector<8xf32>
    %153 = vector.shape_cast %152 : vector<8xf32> to vector<8x1xf32>
    %cst_126 = arith.constant 9.765625E-4 : f32
    %154 = vector.broadcast %cst_126 : f32 to vector<8x1xf32>
    %155 = arith.mulf %153, %154 : vector<8x1xf32>
    %156 = arith.mulf %150, %150 : vector<8x1xf32>
    %157 = arith.subf %155, %156 : vector<8x1xf32>
    %c3_127 = arith.constant 3 : index
    %c0_128 = arith.constant 0 : index
    %c0_129 = arith.constant 0 : index
    %158 = vector.load %arg2[%c3_127, %c0_128, %c0_129] : memref<4x8x1xf32, #tpu.memory_space<vmem>>, vector<1x8x1xf32>
    %159 = vector.shape_cast %158 : vector<1x8x1xf32> to vector<8x1xf32>
    %cst_130 = arith.constant 9.99999974E-6 : f32
    %160 = vector.broadcast %cst_130 : f32 to vector<8x1xf32>
    %161 = arith.addf %157, %160 : vector<8x1xf32>
    %162 = math.rsqrt %161 : vector<8x1xf32>
    %163 = arith.mulf %159, %162 : vector<8x1xf32>
    %c3_131 = arith.constant 3 : index
    %c0_132 = arith.constant 0 : index
    %c0_133 = arith.constant 0 : index
    %164 = vector.load %arg3[%c3_131, %c0_132, %c0_133] : memref<4x8x1xf32, #tpu.memory_space<vmem>>, vector<1x8x1xf32>
    %165 = vector.shape_cast %164 : vector<1x8x1xf32> to vector<8x1xf32>
    %166 = arith.mulf %150, %163 : vector<8x1xf32>
    %167 = arith.subf %165, %166 : vector<8x1xf32>
    %168 = vector.broadcast %163 : vector<8x1xf32> to vector<8x2048xf32>
    %169 = arith.mulf %143, %168 : vector<8x2048xf32>
    %170 = vector.broadcast %167 : vector<8x1xf32> to vector<8x2048xf32>
    %171 = arith.addf %169, %170 : vector<8x2048xf32>
    %cst_134 = arith.constant 0.000000e+00 : f32
    %172 = vector.broadcast %cst_134 : f32 to vector<8x2048xf32>
    %173 = arith.maximumf %171, %172 : vector<8x2048xf32>
    %c0_135 = arith.constant 0 : index
    %c0_136 = arith.constant 0 : index
    %174 = vector.load %arg5[%c0_135, %c0_136] : memref<8x2048xf32, #tpu.memory_space<vmem>>, vector<8x2048xf32>
    tpu.vector_store %arg5[%c0_135, %c0_136], %173 {strides = array<i32>} : memref<8x2048xf32, #tpu.memory_space<vmem>>, vector<8x2048xf32>,
    return
  }
}

</mosaic_0001>

<bundles_post_ra>
// kernel: conv_block_2_forward.1
= control target key start
LH: loop header
LB: loop body
LE: loop exit
PB: predicated region body
PF: predicated region fallthrough
CT: control target
= control target key end

     0   :  { %s5881_s30 = smov 127   ;;  %s5882_s10 = smov 118   ;;  %vm593_vm0 = vcmask 138240   ;;  %vm514_vm1 = vcmask 146432   ;;  %vm435_vm2 = vcmask 220160   ;;  %vm356_vm3 = vcmask 228352   ;;  %s10170_s0 = inlined_call_operand.vmem [shape: f32[8,2560], index: 0, kind: input, shape index: {}]   ;;  %s10171_s1 = inlined_call_operand.vmem [shape: f32[4,8,64], index: 1, kind: input, shape index: {}]   ;;  %s10172_s4 = inlined_call_operand.vmem [shape: f32[4,8,2560], index: 4, kind: input, shape index: {}]   ;;  %s10173_s2 = inlined_call_operand.vmem [shape: f32[4,8,1], index: 2, kind: input, shape index: {}]   ;;  %s10174_s3 = inlined_call_operand.vmem [shape: f32[4,8,1], index: 3, kind: input, shape index: {}]   ;;  %s10175_s5 = inlined_call_operand.vmem [shape: f32[8,2048], index: 5, kind: output, shape index: {}]  }
   0x1   :  { %v5922_v0 = vld [vmem:[%s10170_s0 + $0x40] sm:$0xff]  ;;  %v5927_v1 = vld [vmem:[%s10170_s0 + $0x48] sm:$0xff]  ;;  %v5966_v9 = vld [vmem:[%s10170_s0 + $0x50] sm:$0xff]  ;;  %s5883_s11 = smov 117   ;;  %s5884_s12 = smov 28   ;;  %vm277_vm4 = vcmask 957440  }
   0x2   :  { %v5932_v2 = vld [vmem:[%s10170_s0 + $0x20] sm:$0xff]  ;;  %v5936_v3 = vpack.i.bf16 %v5927_v1, %v5922_v0  ;;  %v5941_v4 = vld [vmem:[%s10170_s0 + $0x28] sm:$0xff]  ;;  %v5975_v10 = vld [vmem:[%s10170_s0 + $0x58] sm:$0xff]  ;;  %s5885_s13 = smov 27   ;;  %s5886_s14 = smov 18   ;;  %v4921_v53 = vpack.i.bf16 %v5966_v9, %v5922_v0  ;;  %vm198_vm5 = vcmask 965632  }
   0x3   :  { %v5946_v5 = vld [vmem:[%s10170_s0] sm:$0xff]  ;;  %v5951_v6 = vld [vmem:[%s10170_s0 + $0x8] sm:$0xff]  ;;  %v5955_v7 = vpack.i.bf16 %v5941_v4, %v5932_v2  ;;  %v5980_v11 = vld [vmem:[%s10170_s0 + $0x30] sm:$0xff]  ;;  %v5999_v15 = vpack.i.bf16 %v5975_v10, %v5966_v9  ;;  %s5887_s15 = smov 17   ;;  %v4926_v58 = vpack.i.bf16 %v5927_v1, %v5975_v10  ;;  %vm119_vm6 = vcmask 1039360  }
   0x4   :  { %v5959_v8 = vpack.i.bf16 %v5951_v6, %v5946_v5  ;;  %4632 = vrot.lane.b32.xlu2 %v5936_v3, %s5881_s30  ;;  %v5985_v12 = vld [vmem:[%s10170_s0 + $0x38] sm:$0xff]  ;;  %v5990_v13 = vld [vmem:[%s10170_s0 + $0x10] sm:$0xff]  ;;  %v6014_v18 = vld [vmem:[%s10170_s0 + $0x80] sm:$0xff]  ;;  %v4911_v52 = vpack.i.bf16 %v5980_v11, %v5932_v2  ;;  %vm633_vm7 = vcmask 523264  }
   0x5   :  { %4622 = vrot.lane.b32.xlu1 %v5955_v7, %s5881_s30  ;;  %v5995_v14 = vld [vmem:[%s10170_s0 + $0x18] sm:$0xff]  ;;  %v6003_v16 = vpack.i.bf16 %v5985_v12, %v5980_v11  ;;  %v6023_v19 = vld [vmem:[%s10170_s0 + $0x88] sm:$0xff]  ;;  %v6028_v20 = vld [vmem:[%s10170_s0 + $0x70] sm:$0xff]  ;;  %v4916_v51 = vpack.i.bf16 %v5941_v4, %v5985_v12 }
   0x6   :  { %4612 = vrot.lane.b32.xlu0 %v5959_v8, %s5881_s30  ;;  %v6007_v17 = vpack.i.bf16 %v5995_v14, %v5990_v13  ;;  %v6033_v21 = vld [vmem:[%s10170_s0 + $0x78] sm:$0xff]  ;;  %v6038_v22 = vld [vmem:[%s10170_s0 + $0x60] sm:$0xff]  ;;  %v6043_v23 = vld [vmem:[%s10170_s0 + $0x68] sm:$0xff]  ;;  %v6047_v24 = vpack.i.bf16 %v6023_v19, %v6014_v18 }
   0x7   :  { %v6051_v25 = vpack.i.bf16 %v6033_v21, %v6028_v20  ;;  %v6055_v26 = vpack.i.bf16 %v6043_v23, %v6038_v22  ;;  %v6066_v27 = vld [vmem:[%s10170_s0 + $0x90] sm:$0xff]  ;;  %v6071_v28 = vld [vmem:[%s10170_s0 + $0x98] sm:$0xff]  ;;  %v4931_v57 = vpack.i.bf16 %v6028_v20, %v6038_v22 }
   0x8   :  { %v4656_v29 = vpack.i.bf16 %v6071_v28, %v6066_v27  ;;  %v4946_v62 = vpack.i.bf16 %v6066_v27, %v6014_v18 }
   0xc   :  { %4637 = vrot.lane.b32.xlu2 %v5999_v15, %s5881_s30 }
   0xd   :  { %4627 = vrot.lane.b32.xlu1 %v6003_v16, %s5881_s30 }
   0xe   :  { %4617 = vrot.lane.b32.xlu0 %v6007_v17, %s5881_s30 }
  0x14   :  { %4652 = vrot.lane.b32.xlu2 %v6047_v24, %s5881_s30 }
  0x15   :  { %4647 = vrot.lane.b32.xlu1 %v6051_v25, %s5881_s30 }
  0x16   :  { %4642 = vrot.lane.b32.xlu0 %v6055_v26, %s5881_s30 }
  0x1c   :  { %4667 = vrot.lane.b32.xlu2 %v6007_v17, %s5882_s10 }
  0x1d   :  { %4662 = vrot.lane.b32.xlu1 %v5959_v8, %s5882_s10 }
  0x1e   :  { %4657 = vrot.lane.b32.xlu0 %v4656_v29, %s5881_s30 }
  0x24   :  { %4682 = vrot.lane.b32.xlu2 %v5936_v3, %s5882_s10 }
  0x25   :  { %4677 = vrot.lane.b32.xlu1 %v6003_v16, %s5882_s10 }
  0x26   :  { %4672 = vrot.lane.b32.xlu0 %v5955_v7, %s5882_s10 }
  0x2c   :  { %4697 = vrot.lane.b32.xlu2 %v6051_v25, %s5882_s10 }
  0x2d   :  { %4692 = vrot.lane.b32.xlu1 %v6055_v26, %s5882_s10 }
  0x2e   :  { %4687 = vrot.lane.b32.xlu0 %v5999_v15, %s5882_s10 }
  0x34   :  { %4712 = vrot.lane.b32.xlu2 %v5959_v8, %s5883_s11 }
  0x35   :  { %4707 = vrot.lane.b32.xlu1 %v4656_v29, %s5882_s10 }
  0x36   :  { %4702 = vrot.lane.b32.xlu0 %v6047_v24, %s5882_s10 }
  0x3c   :  { %4727 = vrot.lane.b32.xlu2 %v6003_v16, %s5883_s11 }
  0x3d   :  { %4722 = vrot.lane.b32.xlu1 %v5955_v7, %s5883_s11 }
  0x3e   :  { %4717 = vrot.lane.b32.xlu0 %v6007_v17, %s5883_s11 }
  0x44   :  { %4742 = vrot.lane.b32.xlu2 %v6055_v26, %s5883_s11 }
  0x45   :  { %4737 = vrot.lane.b32.xlu1 %v5999_v15, %s5883_s11 }
  0x46   :  { %4732 = vrot.lane.b32.xlu0 %v5936_v3, %s5883_s11 }
  0x4c   :  { %4757 = vrot.lane.b32.xlu2 %v4656_v29, %s5883_s11 }
  0x4d   :  { %4752 = vrot.lane.b32.xlu1 %v6047_v24, %s5883_s11 }
  0x4e   :  { %4747 = vrot.lane.b32.xlu0 %v6051_v25, %s5883_s11 }
  0x54   :  { %4772 = vrot.lane.b32.xlu2 %v5955_v7, %s5884_s12 }
  0x55   :  { %4767 = vrot.lane.b32.xlu1 %v6007_v17, %s5884_s12 }
  0x56   :  { %4762 = vrot.lane.b32.xlu0 %v5959_v8, %s5884_s12 }
  0x5c   :  { %4787 = vrot.lane.b32.xlu2 %v5999_v15, %s5884_s12 }
  0x5d   :  { %4782 = vrot.lane.b32.xlu1 %v5936_v3, %s5884_s12 }
  0x5e   :  { %4777 = vrot.lane.b32.xlu0 %v6003_v16, %s5884_s12  ;;  %v6126_v30 = vpop.permute.xlu2 %4632 }
  0x64   :  { %4802 = vrot.lane.b32.xlu2 %v6047_v24, %s5884_s12 }
  0x65   :  { %4797 = vrot.lane.b32.xlu1 %v6051_v25, %s5884_s12 }
  0x66   :  { %4792 = vrot.lane.b32.xlu0 %v6055_v26, %s5884_s12  ;;  %v6134_v31 = vpop.permute.xlu2 %4637 }
  0x6c   :  { %4817 = vrot.lane.b32.xlu2 %v6007_v17, %s5885_s13 }
  0x6d   :  { %4812 = vrot.lane.b32.xlu1 %v5959_v8, %s5885_s13 }
  0x6e   :  { %4807 = vrot.lane.b32.xlu0 %v4656_v29, %s5884_s12  ;;  %v6141_v32 = vpop.permute.xlu2 %4652 }
  0x6f   :  { %10315 = vst [vmem:[#allocation3_spill] sm:$0xff] %v6141_v32 }
  0x74   :  { %4832 = vrot.lane.b32.xlu2 %v5936_v3, %s5885_s13 }
  0x75   :  { %4827 = vrot.lane.b32.xlu1 %v6003_v16, %s5885_s13 }
  0x76   :  { %4822 = vrot.lane.b32.xlu0 %v5955_v7, %s5885_s13  ;;  %v6149_v33 = vpop.permute.xlu2 %4667 }
  0x77   :  { %v6151_v34 = vpop.permute.xlu1 %4622 }
  0x78   :  { %v6153_v35 = vpop.permute.xlu0 %4612 }
  0x7c   :  { %4847 = vrot.lane.b32.xlu2 %v6051_v25, %s5885_s13 }
  0x7d   :  { %4842 = vrot.lane.b32.xlu1 %v6055_v26, %s5885_s13 }
  0x7e   :  { %4837 = vrot.lane.b32.xlu0 %v5999_v15, %s5885_s13  ;;  %v6161_v36 = vpop.permute.xlu2 %4682 }
  0x7f   :  { %v6163_v37 = vpop.permute.xlu1 %4627 }
  0x80   :  { %v6165_v38 = vpop.permute.xlu0 %4617 }
  0x84   :  { %4862 = vrot.lane.b32.xlu2 %v5959_v8, %s5886_s14 }
  0x85   :  { %4857 = vrot.lane.b32.xlu1 %v4656_v29, %s5885_s13 }
  0x86   :  { %4852 = vrot.lane.b32.xlu0 %v6047_v24, %s5885_s13  ;;  %v6172_v39 = vpop.permute.xlu2 %4697 }
  0x87   :  { %10316 = vst [vmem:[#allocation4_spill] sm:$0xff] %v6172_v39  ;;  %v6174_v40 = vpop.permute.xlu1 %4647 }
  0x88   :  { %10317 = vst [vmem:[#allocation5_spill] sm:$0xff] %v6174_v40  ;;  %v6176_v41 = vpop.permute.xlu0 %4642 }
  0x89   :  { %10318 = vst [vmem:[#allocation6_spill] sm:$0xff] %v6176_v41 }
  0x8c   :  { %4877 = vrot.lane.b32.xlu2 %v6003_v16, %s5886_s14 }
  0x8d   :  { %4872 = vrot.lane.b32.xlu1 %v5955_v7, %s5886_s14  ;;  %v4936_v7 = vpack.i.bf16 %v6043_v23, %v6033_v21 }
  0x8e   :  { %4867 = vrot.lane.b32.xlu0 %v6007_v17, %s5886_s14  ;;  %v6184_v42 = vpop.permute.xlu2 %4712 }
  0x8f   :  { %v6186_v43 = vpop.permute.xlu1 %4662 }
  0x90   :  { %v6188_v44 = vpop.permute.xlu0 %4657 }
  0x91   :  { %10319 = vst [vmem:[#allocation7_spill] sm:$0xff] %v6188_v44 }
  0x94   :  { %4892 = vrot.lane.b32.xlu2 %v6055_v26, %s5886_s14 }
  0x95   :  { %4887 = vrot.lane.b32.xlu1 %v5999_v15, %s5886_s14 }
  0x96   :  { %4882 = vrot.lane.b32.xlu0 %v5936_v3, %s5886_s14  ;;  %v6196_v45 = vpop.permute.xlu2 %4727  ;;  %v4956_v3 = vpack.i.bf16 %v6023_v19, %v6071_v28 }
  0x97   :  { %v6198_v46 = vpop.permute.xlu1 %4677 }
  0x98   :  { %v6200_v47 = vpop.permute.xlu0 %4672 }
  0x9c   :  { %4907 = vrot.lane.b32.xlu2 %v5959_v8, %s5887_s15 }
  0x9d   :  { %4902 = vrot.lane.b32.xlu1 %v6007_v17, %s5887_s15 }
  0x9e   :  { %4897 = vrot.lane.b32.xlu0 %v6051_v25, %s5886_s14  ;;  %v6208_v48 = vpop.permute.xlu2 %4742 }
  0x9f   :  { %v6210_v49 = vpop.permute.xlu1 %4692 }
  0xa0   :  { %10320 = vst [vmem:[#allocation8_spill] sm:$0xff] %v6210_v49  ;;  %v6212_v50 = vpop.permute.xlu0 %4687 }
  0xa4   :  { %4922 = vrot.lane.b32.xlu2 %v4921_v53, %s5887_s15 }
  0xa5   :  { %4917 = vrot.lane.b32.xlu1 %v4916_v51, %s5887_s15 }
  0xa6   :  { %4912 = vrot.lane.b32.xlu0 %v4911_v52, %s5887_s15  ;;  %v6223_v54 = vpop.permute.xlu2 %4757 }
  0xa7   :  { %10321 = vst [vmem:[#allocation9_spill] sm:$0xff] %v6223_v54  ;;  %v6225_v55 = vpop.permute.xlu1 %4707 }
  0xa8   :  { %10322 = vst [vmem:[#allocation10_spill] sm:$0xff] %v6225_v55  ;;  %v6227_v56 = vpop.permute.xlu0 %4702 }
  0xa9   :  { %10323 = vst [vmem:[#allocation11_spill] sm:$0xff] %v6227_v56 }
  0xac   :  { %4937 = vrot.lane.b32.xlu2 %v4936_v7, %s5887_s15 }
  0xad   :  { %4932 = vrot.lane.b32.xlu1 %v4931_v57, %s5887_s15 }
  0xae   :  { %4927 = vrot.lane.b32.xlu0 %v4926_v58, %s5887_s15  ;;  %v6235_v59 = vpop.permute.xlu2 %4772 }
  0xaf   :  { %v6237_v60 = vpop.permute.xlu1 %4722 }
  0xb0   :  { %v6239_v61 = vpop.permute.xlu0 %4717 }
  0xb4   :  { %4952 = vrot.lane.b32.xlu2 %v4956_v3, %s5887_s15 }
  0xb5   :  { %4947 = vrot.lane.b32.xlu1 %v4946_v62, %s5886_s14 }
  0xb6   :  { %4942 = vrot.lane.b32.xlu0 %v4946_v62, %s5887_s15  ;;  %v6245_v63 = vpop.permute.xlu2 %4787 }
  0xb7   :  { %v6247_v0 = vpop.permute.xlu1 %4737 }
  0xb8   :  { %v6249_v1 = vpop.permute.xlu0 %4732 }
  0xbe   :  { %4957 = vrot.lane.b32.xlu0 %v4956_v3, %s5886_s14  ;;  %v6257_v8 = vpop.permute.xlu2 %4802 }
  0xbf   :  { %10324 = vst [vmem:[#allocation12_spill] sm:$0xff] %v6257_v8  ;;  %v6259_v9 = vpop.permute.xlu1 %4752  ;;  %v10333_v8 = vunpack.i.h.bf16 %v6186_v43 }
  0xc0   :  { %10325 = vst [vmem:[#allocation13_spill] sm:$0xff] %v6259_v9  ;;  %v6261_v10 = vpop.permute.xlu0 %4747 }
  0xc1   :  { %10326 = vst [vmem:[#allocation14_spill] sm:$0xff] %v6261_v10 }
  0xc6   :  { %v6263_v12 = vpop.permute.xlu2 %4817 }
  0xc7   :  { %v6265_v15 = vpop.permute.xlu1 %4767 }
  0xc8   :  { %v6267_v16 = vpop.permute.xlu0 %4762  ;;  %v4769_v10 = vunpack.i.l.bf16 %v6265_v15 }
  0xc9   :  { %v4764_v56 = vunpack.i.l.bf16 %v6267_v16 }
  0xce   :  { %v6270_v17 = vpop.permute.xlu2 %4832 }
  0xcf   :  { %v6272_v18 = vpop.permute.xlu1 %4782 }
  0xd0   :  { %v6274_v19 = vpop.permute.xlu0 %4777 }
  0xd6   :  { %v6276_v20 = vpop.permute.xlu2 %4847 }
  0xd7   :  { %10327 = vst [vmem:[#allocation15_spill] sm:$0xff] %v6276_v20  ;;  %v6278_v21 = vpop.permute.xlu1 %4797 }
  0xd8   :  { %10328 = vst [vmem:[#allocation16_spill] sm:$0xff] %v6278_v21  ;;  %v6280_v22 = vpop.permute.xlu0 %4792 }
  0xde   :  { %v6282_v23 = vpop.permute.xlu2 %4862 }
  0xdf   :  { %v6284_v24 = vpop.permute.xlu1 %4812  ;;  %v4865_v53 = vunpack.i.h.bf16 %v6282_v23  ;;  %v4864_v57 = vunpack.i.l.bf16 %v6282_v23  ;;  %v10186_v23 = vunpack.i.h.bf16 %v6267_v16 }
  0xe0   :  { %v6286_v25 = vpop.permute.xlu0 %4807  ;;  %v4815_v55 = vunpack.i.h.bf16 %v6284_v24  ;;  %v4814_v54 = vunpack.i.l.bf16 %v6284_v24 }
  0xe1   :  { %10329 = vst [vmem:[#allocation17_spill] sm:$0xff] %v6286_v25  ;;  %v515_v32 = vsel %vm514_vm1, %v4864_v57, %v4865_v53  ;;  %v4664_v57 = vunpack.i.l.bf16 %v6186_v43 }
  0xe2   :  { %v436_v9 = vsel %vm435_vm2, %v4814_v54, %v4815_v55  ;;  %v4614_v54 = vunpack.i.l.bf16 %v6153_v35 }
  0xe6   :  { %v6288_v26 = vpop.permute.xlu2 %4877 }
  0xe7   :  { %v6290_v27 = vpop.permute.xlu1 %4827 }
  0xe8   :  { %v6292_v28 = vpop.permute.xlu0 %4822 }
  0xe9   :  { %v4824_v20 = vunpack.i.l.bf16 %v6292_v28 }
  0xee   :  { %v6294_v29 = vpop.permute.xlu2 %4892 }
  0xef   :  { %v6296_v51 = vpop.permute.xlu1 %4842 }
  0xf0   :  { %v6298_v52 = vpop.permute.xlu0 %4837 }
  0xf6   :  { %v4908_v58 = vpop.permute.xlu2 %4907 }
  0xf7   :  { %v4910_v62 = vunpack.i.h.bf16 %v4908_v58  ;;  %v4909_v3 = vunpack.i.l.bf16 %v4908_v58  ;;  %v6302_v7 = vpop.permute.xlu1 %4857  ;;  %v10187_v58 = vunpack.i.h.bf16 %v6153_v35 }
  0xf8   :  { %10330 = vst [vmem:[#allocation18_spill] sm:$0xff] %v6302_v7  ;;  %v6304_v44 = vpop.permute.xlu0 %4852  ;;  %v4714_v7 = vunpack.i.l.bf16 %v6184_v42 }
  0xf9   :  { %10331 = vst [vmem:[#allocation19_spill] sm:$0xff] %v6304_v44  ;;  %v594_v25 = vsel %vm593_vm0, %v4909_v3, %v4910_v62  ;;  %v199_v44 = vsel %vm198_vm5, %v4664_v57, %v10333_v8 }
  0xfa   :  { %645 = vmatpush.msra.mxu0 %v594_v25 }
  0xfc   :  { %646 = vmatpush.msra.mxu0 %v515_v32  ;;  %v357_v32 = vsel %vm356_vm3, %v4764_v56, %v10186_v23  ;;  %v120_v56 = vsel %vm119_vm6, %v4614_v54, %v10187_v58 }
  0xfe   :  { %647 = vmatpush.msra.mxu0 %v436_v9  ;;  %v10332_v9 = vunpack.i.h.bf16 %v6184_v42 }
  0xff   :  { %v6317_v25 = vpop.permute.xlu1 %4872 }
 0x100   :  { %v6319_v3 = vpop.permute.xlu0 %4867  ;;  %648 = vmatpush.msra.mxu0 %v357_v32  ;;  %v278_v24 = vsel %vm277_vm4, %v4714_v7, %v10332_v9  ;;  %v6343_v7 = vld [vmem:[%s10171_s1] sm:$0xff] }
 0x101   :  { %v4869_v57 = vunpack.i.l.bf16 %v6319_v3 }
 0x102   :  { %649 = vmatpush.msra.mxu0 %v278_v24  ;;  %v4870_v24 = vunpack.i.h.bf16 %v6319_v3 }
 0x103   :  { %v516_v21 = vsel %vm514_vm1, %v4865_v53, %v4869_v57 }
 0x104   :  { %650 = vmatpush.msra.mxu0 %v199_v44  ;;  %v517_v3 = vsel %vm514_vm1, %v4869_v57, %v4870_v24  ;;  %v10334_v57 = vunpack.i.h.bf16 %v6267_v16 }
 0x106   :  { %651 = vmatpush.msra.mxu0 %v120_v56  ;;  %v4819_v56 = vunpack.i.l.bf16 %v6263_v12 }
 0x107   :  { %v6335_v32 = vpop.permute.xlu1 %4887 }
 0x108   :  { %v6337_v23 = vpop.permute.xlu0 %4882  ;;  %652 = vmatpush.msra.mxu0 %v5946_v5  ;;  %v4820_v5 = vunpack.i.h.bf16 %v6263_v12  ;;  %v4719_v12 = vunpack.i.l.bf16 %v6239_v61 }
 0x109   :  { %4473 = vmatmul.msk.f32.vlgmr.msra.gmra.mxu0 %vm633_vm7, %v6343_v7 }
 0x10f   :  { %v4903_v44 = vpop.permute.xlu1 %4902 }
 0x110   :  { %v6347_v8 = vpop.permute.xlu0 %4897  ;;  %v4905_v54 = vunpack.i.h.bf16 %v4903_v44  ;;  %v4904_v9 = vunpack.i.l.bf16 %v4903_v44  ;;  %v4619_v44 = vunpack.i.l.bf16 %v6165_v38 }
 0x112   :  { %v595_v58 = vsel %vm593_vm0, %v4910_v62, %v4904_v9  ;;  %v596_v40 = vsel %vm593_vm0, %v4904_v9, %v4905_v54  ;;  %v437_v62 = vsel %vm435_vm2, %v4815_v55, %v4819_v56  ;;  %v438_v9 = vsel %vm435_vm2, %v4819_v56, %v4820_v5 }
 0x113   :  { %665 = vmatpush.msra.mxu1 %v595_v58  ;;  %685 = vmatpush.msra.mxu2 %v596_v40  ;;  %v4669_v58 = vunpack.i.l.bf16 %v6149_v33  ;;  %v10335_v55 = vunpack.i.h.bf16 %v6265_v15  ;;  %v4825_v40 = vunpack.i.h.bf16 %v6292_v28  ;;  %v4680_v28 = vunpack.i.h.bf16 %v6198_v46 }
 0x115   :  { %666 = vmatpush.msra.mxu1 %v516_v21  ;;  %686 = vmatpush.msra.mxu2 %v517_v3  ;;  %v358_v3 = vsel %vm356_vm3, %v10334_v57, %v4769_v10  ;;  %v359_v56 = vsel %vm356_vm3, %v4769_v10, %v10335_v55  ;;  %v10337_v57 = vunpack.i.h.bf16 %v6239_v61 }
 0x117   :  { %v6365_v39 = vpop.permute.xlu1 %4917  ;;  %667 = vmatpush.msra.mxu1 %v437_v62  ;;  %687 = vmatpush.msra.mxu2 %v438_v9  ;;  %v4874_v62 = vunpack.i.l.bf16 %v6317_v25  ;;  %v10336_v9 = vunpack.i.h.bf16 %v6184_v42  ;;  %v280_v49 = vsel %vm277_vm4, %v4719_v12, %v10337_v57  ;;  %v10338_v42 = vunpack.i.h.bf16 %v6186_v43 }
 0x118   :  { %v4913_v41 = vpop.permute.xlu0 %4912  ;;  %v4920_v21 = vunpack.i.h.bf16 %v6365_v39  ;;  %v4919_v43 = vunpack.i.l.bf16 %v6365_v39 }
 0x119   :  { %v4914_v53 = vunpack.i.l.bf16 %v4913_v41  ;;  %668 = vmatpush.msra.mxu1 %v358_v3  ;;  %688 = vmatpush.msra.mxu2 %v359_v56  ;;  %v279_v16 = vsel %vm277_vm4, %v10336_v9, %v4719_v12  ;;  %v200_v3 = vsel %vm198_vm5, %v10338_v42, %v4669_v58  ;;  %v10339_v56 = vunpack.i.h.bf16 %v6149_v33 }
 0x11a   :  { %v518_v9 = vsel %vm514_vm1, %v4870_v24, %v4874_v62  ;;  %v4915_v57 = vunpack.i.h.bf16 %v4913_v41  ;;  %v4724_v24 = vunpack.i.l.bf16 %v6237_v60  ;;  %v440_v41 = vsel %vm435_vm2, %v4824_v20, %v4825_v40 }
 0x11b   :  { %v597_v10 = vsel %vm593_vm0, %v4905_v54, %v4914_v53  ;;  %v598_v55 = vsel %vm593_vm0, %v4914_v53, %v4920_v21  ;;  %669 = vmatpush.msra.mxu1 %v279_v16  ;;  %689 = vmatpush.msra.mxu2 %v280_v49  ;;  %v201_v12 = vsel %vm198_vm5, %v4669_v58, %v10339_v56  ;;  %v4775_v54 = vunpack.i.h.bf16 %v6235_v59 }
 0x11c   :  { %705 = vmatpush.msra.mxu3 %v597_v10  ;;  %725 = vmatpush.msrb.mxu0 %v598_v55  ;;  %v4774_v53 = vunpack.i.l.bf16 %v6235_v59  ;;  %v10340_v49 = vunpack.i.h.bf16 %v6317_v25  ;;  %v10341_v10 = vunpack.i.h.bf16 %v6153_v35  ;;  %v10342_v55 = vunpack.i.h.bf16 %v6165_v38 }
 0x11d   :  { %670 = vmatpush.msra.mxu1 %v200_v3  ;;  %690 = vmatpush.msra.mxu2 %v201_v12  ;;  %v4725_v3 = vunpack.i.h.bf16 %v6237_v60  ;;  %v4880_v35 = vunpack.i.h.bf16 %v6288_v26  ;;  %v4879_v56 = vunpack.i.l.bf16 %v6288_v26  ;;  %v4674_v12 = vunpack.i.l.bf16 %v6200_v47 }
 0x11e   :  { %v519_v16 = vsel %vm514_vm1, %v4874_v62, %v10340_v49  ;;  %706 = vmatpush.msra.mxu3 %v518_v9  ;;  %v121_v58 = vsel %vm119_vm6, %v10341_v10, %v4619_v44  ;;  %v122_v42 = vsel %vm119_vm6, %v4619_v44, %v10342_v55  ;;  %v439_v62 = vsel %vm435_vm2, %v4820_v5, %v4824_v20 }
 0x11f   :  { %726 = vmatpush.msrb.mxu0 %v519_v16  ;;  %671 = vmatpush.msra.mxu1 %v121_v58  ;;  %v4675_v44 = vunpack.i.h.bf16 %v6200_v47  ;;  %v10343_v5 = vunpack.i.h.bf16 %v6265_v15  ;;  %v361_v20 = vsel %vm356_vm3, %v4774_v53, %v4775_v54  ;;  %v4830_v49 = vunpack.i.h.bf16 %v6290_v27 }
 0x120   :  { %691 = vmatpush.msra.mxu2 %v122_v42  ;;  %707 = vmatpush.msra.mxu3 %v439_v62  ;;  %v4829_v16 = vunpack.i.l.bf16 %v6290_v27  ;;  %v599_v10 = vsel %vm593_vm0, %v4920_v21, %v4915_v57  ;;  %v4625_v15 = vunpack.i.h.bf16 %v6151_v34  ;;  %v4624_v58 = vunpack.i.l.bf16 %v6151_v34  ;;  %v6443_v62 = vpop.permute.xlu2 %4922 }
 0x121   :  { %727 = vmatpush.msrb.mxu0 %v440_v41  ;;  %672 = vmatpush.msra.mxu1 %v5951_v6  ;;  %v360_v9 = vsel %vm356_vm3, %v10343_v5, %v4774_v53  ;;  %v600_v6 = vsel %vm593_vm0, %v4915_v57, %v4919_v43  ;;  %v10344_v53 = vunpack.i.h.bf16 %v6239_v61  ;;  %v282_v21 = vsel %vm277_vm4, %v4724_v24, %v4725_v3 }
 0x122   :  { %692 = vmatpush.msra.mxu2 %v5990_v13  ;;  %708 = vmatpush.msra.mxu3 %v360_v9  ;;  %v6431_v13 = vpop.permute.xlu0 %4927  ;;  %v4780_v42 = vunpack.i.h.bf16 %v6274_v19  ;;  %v4779_v57 = vunpack.i.l.bf16 %v6274_v19  ;;  %v10345_v41 = vunpack.i.h.bf16 %v6317_v25  ;;  %v521_v61 = vsel %vm514_vm1, %v4879_v56, %v4880_v35 }
 0x123   :  { %728 = vmatpush.msrb.mxu0 %v361_v20  ;;  %745 = vmatpush.msrb.mxu1 %v599_v10  ;;  %v281_v55 = vsel %vm277_vm4, %v10344_v53, %v4724_v24  ;;  %v10346_v24 = vunpack.i.h.bf16 %v6149_v33  ;;  %v203_v20 = vsel %vm198_vm5, %v4674_v12, %v4675_v44  ;;  %v4930_v10 = vunpack.i.h.bf16 %v6431_v13 }
 0x124   :  { %765 = vmatpush.msrb.mxu2 %v600_v6  ;;  %709 = vmatpush.msra.mxu3 %v281_v55  ;;  %v520_v5 = vsel %vm514_vm1, %v10345_v41, %v4879_v56  ;;  %v4730_v25 = vunpack.i.h.bf16 %v6196_v45  ;;  %v4729_v6 = vunpack.i.l.bf16 %v6196_v45  ;;  %v441_v56 = vsel %vm435_vm2, %v4825_v40, %v4829_v16 }
 0x125   :  { %729 = vmatpush.msrb.mxu0 %v282_v21  ;;  %746 = vmatpush.msrb.mxu1 %v520_v5  ;;  %v202_v9 = vsel %vm198_vm5, %v10346_v24, %v4674_v12  ;;  %v442_v33 = vsel %vm435_vm2, %v4829_v16, %v4830_v49  ;;  %v4924_v53 = vunpack.i.l.bf16 %v6443_v62  ;;  %v10347_v12 = vunpack.i.h.bf16 %v6165_v38 }
 0x126   :  { %766 = vmatpush.msrb.mxu2 %v521_v61  ;;  %710 = vmatpush.msra.mxu3 %v202_v9  ;;  %v124_v21 = vsel %vm119_vm6, %v4624_v58, %v4625_v15  ;;  %v4679_v40 = vunpack.i.l.bf16 %v6198_v46  ;;  %v362_v16 = vsel %vm356_vm3, %v4775_v54, %v4779_v57  ;;  %v363_v38 = vsel %vm356_vm3, %v4779_v57, %v4780_v42 }
 0x127   :  { %730 = vmatpush.msrb.mxu0 %v203_v20  ;;  %747 = vmatpush.msrb.mxu1 %v441_v56  ;;  %v123_v55 = vsel %vm119_vm6, %v10347_v12, %v4624_v58  ;;  %v4885_v41 = vunpack.i.h.bf16 %v6337_v23  ;;  %v4884_v5 = vunpack.i.l.bf16 %v6337_v23  ;;  %v602_v58 = vsel %vm593_vm0, %v4924_v53, %v4930_v10 }
 0x128   :  { %767 = vmatpush.msrb.mxu2 %v442_v33  ;;  %711 = vmatpush.msra.mxu3 %v123_v55  ;;  %v4630_v61 = vunpack.i.h.bf16 %v6163_v37  ;;  %v4629_v59 = vunpack.i.l.bf16 %v6163_v37  ;;  %v283_v54 = vsel %vm277_vm4, %v4725_v3, %v4729_v6  ;;  %v284_v57 = vsel %vm277_vm4, %v4729_v6, %v4730_v25  ;;  %v28_v37 = vld [vmem:[%s10170_s0 + $0x40] sm:$0xff] }
 0x129   :  { %731 = vmatpush.msrb.mxu0 %v124_v21  ;;  %748 = vmatpush.msrb.mxu1 %v362_v16  ;;  %v4835_v24 = vunpack.i.h.bf16 %v6270_v17  ;;  %v4834_v9 = vunpack.i.l.bf16 %v6270_v17  ;;  %v205_v60 = vsel %vm198_vm5, %v4679_v40, %v4680_v28  ;;  %v4784_v3 = vunpack.i.l.bf16 %v6272_v18 }
 0x12a   :  { %768 = vmatpush.msrb.mxu2 %v363_v38  ;;  %712 = vmatpush.msra.mxu3 %v5995_v14  ;;  %v601_v14 = vsel %vm593_vm0, %v4919_v43, %v4924_v53  ;;  %v522_v39 = vsel %vm514_vm1, %v4880_v35, %v4884_v5  ;;  %v523_v43 = vsel %vm514_vm1, %v4884_v5, %v4885_v41  ;;  %v4785_v47 = vunpack.i.h.bf16 %v6272_v18  ;;  %v6568_v38 = vpop.permute.xlu2 %4937 }
 0x12b   :  { %732 = vmatpush.msrb.mxu0 %v5932_v2  ;;  %749 = vmatpush.msrb.mxu1 %v283_v54  ;;  %v204_v2 = vsel %vm198_vm5, %v4675_v44, %v4679_v40  ;;  %v125_v44 = vsel %vm119_vm6, %v4625_v15, %v4629_v59  ;;  %v126_v20 = vsel %vm119_vm6, %v4629_v59, %v4630_v61  ;;  %v4925_v26 = vunpack.i.h.bf16 %v6443_v62 }
 0x12c   :  { %769 = vmatpush.msrb.mxu2 %v284_v57  ;;  %785 = vmatpush.msrb.mxu3 %v601_v14  ;;  %v443_v35 = vsel %vm435_vm2, %v4830_v49, %v4834_v9  ;;  %v444_v6 = vsel %vm435_vm2, %v4834_v9, %v4835_v24  ;;  %v4734_v34 = vunpack.i.l.bf16 %v6249_v1  ;;  %v4929_v15 = vunpack.i.l.bf16 %v6431_v13  ;;  %v6593_v9 = vpop.permute.xlu1 %4932 }
 0x12d   :  { %805 = vmatpush.msra.mxu0 %v602_v58  ;;  %750 = vmatpush.msrb.mxu1 %v204_v2  ;;  %v4735_v56 = vunpack.i.h.bf16 %v6249_v1  ;;  %v4889_v62 = vunpack.i.l.bf16 %v6335_v32  ;;  %v364_v27 = vsel %vm356_vm3, %v4780_v42, %v4784_v3  ;;  %v4684_v49 = vunpack.i.l.bf16 %v6161_v36 }
 0x12e   :  { %770 = vmatpush.msrb.mxu2 %v205_v60  ;;  %786 = vmatpush.msrb.mxu3 %v522_v39  ;;  %v4890_v33 = vunpack.i.h.bf16 %v6335_v32  ;;  %v365_v53 = vsel %vm356_vm3, %v4784_v3, %v4785_v47  ;;  %v4685_v12 = vunpack.i.h.bf16 %v6161_v36  ;;  %v4839_v55 = vunpack.i.l.bf16 %v6298_v52  ;;  %v30_v36 = vld [vmem:[%s10170_s0 + $0x50] sm:$0xff] }
 0x12f   :  { %806 = vmatpush.msra.mxu0 %v523_v43  ;;  %751 = vmatpush.msrb.mxu1 %v125_v44  ;;  %v4840_v19 = vunpack.i.h.bf16 %v6298_v52  ;;  %v285_v42 = vsel %vm277_vm4, %v4730_v25, %v4734_v34  ;;  %v4635_v21 = vunpack.i.h.bf16 %v6126_v30  ;;  %v4634_v40 = vunpack.i.l.bf16 %v6126_v30 }
 0x130   :  { %771 = vmatpush.msrb.mxu2 %v126_v20  ;;  %787 = vmatpush.msrb.mxu3 %v443_v35  ;;  %v524_v16 = vsel %vm514_vm1, %v4885_v41, %v4889_v62  ;;  %v4790_v45 = vunpack.i.h.bf16 %v6245_v63  ;;  %v4789_v25 = vunpack.i.l.bf16 %v6245_v63  ;;  %v525_v5 = vsel %vm514_vm1, %v4889_v62, %v4890_v33 }
 0x131   :  { %807 = vmatpush.msra.mxu0 %v444_v6  ;;  %4475 = vmatmul.msk.f32.vlgmr.msra.gmra.mxu2 %vm633_vm7, %v6343_v7  ;;  %v206_v58 = vsel %vm198_vm5, %v4680_v28, %v4684_v49  ;;  %v207_v23 = vsel %vm198_vm5, %v4684_v49, %v4685_v12  ;;  %v445_v41 = vsel %vm435_vm2, %v4835_v24, %v4839_v55  ;;  %v4940_v59 = vunpack.i.h.bf16 %v6568_v38  ;;  %v27_v24 = vld [vmem:[%s10170_s0 + $0x38] sm:$0xff] }
 0x132   :  { %752 = vmatpush.msrb.mxu1 %v5941_v4  ;;  %772 = vmatpush.msrb.mxu2 %v5980_v11  ;;  %v603_v4 = vsel %vm593_vm0, %v4930_v10, %v4925_v26  ;;  %v604_v11 = vsel %vm593_vm0, %v4925_v26, %v4929_v15  ;;  %v286_v10 = vsel %vm277_vm4, %v4734_v34, %v4735_v56  ;;  %v4740_v54 = vunpack.i.h.bf16 %v6247_v0 }
 0x133   :  { %788 = vmatpush.msrb.mxu3 %v364_v27  ;;  %808 = vmatpush.msra.mxu0 %v365_v53  ;;  %v446_v46 = vsel %vm435_vm2, %v4839_v55, %v4840_v19  ;;  %v127_v28 = vsel %vm119_vm6, %v4630_v61, %v4634_v40  ;;  %v4739_v57 = vunpack.i.l.bf16 %v6247_v0  ;;  %v128_v17 = vsel %vm119_vm6, %v4634_v40, %v4635_v21  ;;  %v6661_v53 = vpop.permute.xlu0 %4942  ;;  %v10351_v0 = vld [vmem:[#allocation16_spill] sm:$0xff] }
 0x134   :  { %4474 = vmatmul.msk.f32.vlgmr.msra.gmra.mxu1 %vm633_vm7, %v6343_v7  ;;  %4476 = vmatmul.msk.f32.vlgmr.msra.gmra.mxu3 %vm633_vm7, %v6343_v7  ;;  %v4934_v61 = vunpack.i.l.bf16 %v6593_v9  ;;  %v366_v14 = vsel %vm356_vm3, %v4785_v47, %v4789_v25  ;;  %v367_v2 = vsel %vm356_vm3, %v4789_v25, %v4790_v45  ;;  %v4690_v60 = vunpack.i.h.bf16 %v6212_v50 }
 0x135   :  { %825 = vmatpush.msra.mxu1 %v603_v4  ;;  %845 = vmatpush.msra.mxu2 %v604_v11  ;;  %v4689_v3 = vunpack.i.l.bf16 %v6212_v50  ;;  %v4894_v39 = vunpack.i.l.bf16 %v6294_v29  ;;  %v4640_v43 = vunpack.i.h.bf16 %v6134_v31  ;;  %v4895_v47 = vunpack.i.h.bf16 %v6294_v29  ;;  %v29_v4 = vld [vmem:[%s10170_s0 + $0x48] sm:$0xff] }
 0x136   :  { %789 = vmatpush.msrb.mxu3 %v285_v42  ;;  %809 = vmatpush.msra.mxu0 %v286_v10  ;;  %v606_v18 = vsel %vm593_vm0, %v4934_v61, %v4940_v59  ;;  %v287_v44 = vsel %vm277_vm4, %v4735_v56, %v4739_v57  ;;  %v288_v20 = vsel %vm277_vm4, %v4739_v57, %v4740_v54  ;;  %v4639_v26 = vunpack.i.l.bf16 %v6134_v31  ;;  %v10348_v10 = vld [vmem:[#allocation8_spill] sm:$0xff] }
 0x137   :  { %826 = vmatpush.msra.mxu1 %v524_v16  ;;  %846 = vmatpush.msra.mxu2 %v525_v5  ;;  %v4844_v35 = vunpack.i.l.bf16 %v6296_v51  ;;  %v605_v6 = vsel %vm593_vm0, %v4929_v15, %v4934_v61  ;;  %v4845_v34 = vunpack.i.h.bf16 %v6296_v51  ;;  %v209_v1 = vsel %vm198_vm5, %v4689_v3, %v4690_v60  ;;  %v10349_v5 = vld [vmem:[#allocation15_spill] sm:$0xff] }
 0x138   :  { %790 = vmatpush.msrb.mxu3 %v206_v58  ;;  %810 = vmatpush.msra.mxu0 %v207_v23  ;;  %v4794_v56 = vunpack.i.l.bf16 %v6280_v22  ;;  %v208_v62 = vsel %vm198_vm5, %v4685_v12, %v4689_v3  ;;  %v526_v13 = vsel %vm514_vm1, %v4890_v33, %v4894_v39  ;;  %v4795_v15 = vunpack.i.h.bf16 %v6280_v22 }
 0x139   :  { %827 = vmatpush.msra.mxu1 %v445_v41  ;;  %847 = vmatpush.msra.mxu2 %v446_v46  ;;  %v527_v27 = vsel %vm514_vm1, %v4894_v39, %v4895_v47  ;;  %v130_v49 = vsel %vm119_vm6, %v4639_v26, %v4640_v43  ;;  %v4935_v32 = vunpack.i.h.bf16 %v6593_v9  ;;  %v4939_v33 = vunpack.i.l.bf16 %v6568_v38  ;;  %v10350_v46 = vld [vmem:[#allocation6_spill] sm:$0xff]  ;;  %v6728_v39 = vpop.permute.xlu1 %4947 }
 0x13a   :  { %791 = vmatpush.msrb.mxu3 %v127_v28  ;;  %811 = vmatpush.msra.mxu0 %v128_v17  ;;  %v129_v12 = vsel %vm119_vm6, %v4635_v21, %v4639_v26  ;;  %v447_v55 = vsel %vm435_vm2, %v4840_v19, %v4844_v35  ;;  %v4744_v11 = vunpack.i.l.bf16 %v6208_v48  ;;  %v448_v42 = vsel %vm435_vm2, %v4844_v35, %v4845_v34  ;;  %v6710_v17 = vpop.permute.xlu2 %4952  ;;  %v31_v26 = vld [vmem:[%s10170_s0 + $0x58] sm:$0xff]  ;;  %v32_v35 = vld [vmem:[%s10170_s0 + $0x60] sm:$0xff] }
 0x13b   :  { %4479 = vmatmul.msk.f32.vlgmr.msrb.gmra.mxu2 %vm633_vm7, %v6343_v7  ;;  %828 = vmatpush.msra.mxu1 %v366_v14  ;;  %v4745_v30 = vunpack.i.h.bf16 %v6208_v48  ;;  %v4899_v21 = vunpack.i.l.bf16 %v6347_v8  ;;  %v368_v52 = vsel %vm356_vm3, %v4790_v45, %v4794_v56  ;;  %v4900_v19 = vunpack.i.h.bf16 %v6347_v8  ;;  %v6725_v14 = vpop.permute.xlu0 %4957 }
 0x13c   :  { %848 = vmatpush.msra.mxu2 %v367_v2  ;;  %792 = vmatpush.msrb.mxu3 %v27_v24  ;;  %v369_v40 = vsel %vm356_vm3, %v4794_v56, %v4795_v15  ;;  %v4695_v16 = vunpack.i.h.bf16 %v10348_v10  ;;  %v4694_v25 = vunpack.i.l.bf16 %v10348_v10  ;;  %v607_v63 = vsel %vm593_vm0, %v4940_v59, %v4935_v32  ;;  %v10352_v2 = vld [vmem:[#allocation14_spill] sm:$0xff] }
 0x13d   :  { %812 = vmatpush.msra.mxu0 %v28_v37  ;;  %4480 = vmatmul.msk.f32.vlgmr.msrb.gmra.mxu3 %vm633_vm7, %v6343_v7  ;;  %v608_v45 = vsel %vm593_vm0, %v4935_v32, %v4939_v33  ;;  %v4850_v58 = vunpack.i.h.bf16 %v10349_v5  ;;  %v4849_v23 = vunpack.i.l.bf16 %v10349_v5  ;;  %v289_v41 = vsel %vm277_vm4, %v4740_v54, %v4744_v11 }
 0x13e   :  { %4477 = vmatmul.msk.f32.vlgmr.msrb.gmra.mxu0 %vm633_vm7, %v6343_v7  ;;  %829 = vmatpush.msra.mxu1 %v287_v44  ;;  %v4645_v28 = vunpack.i.h.bf16 %v10350_v46  ;;  %v4644_v57 = vunpack.i.l.bf16 %v10350_v46  ;;  %v290_v59 = vsel %vm277_vm4, %v4744_v11, %v4745_v30  ;;  %v528_v9 = vsel %vm514_vm1, %v4895_v47, %v4899_v21 }
 0x13f   :  { %849 = vmatpush.msra.mxu2 %v288_v20  ;;  %865 = vmatpush.msra.mxu3 %v605_v6  ;;  %v4800_v54 = vunpack.i.h.bf16 %v10351_v0  ;;  %v4799_v24 = vunpack.i.l.bf16 %v10351_v0  ;;  %v529_v37 = vsel %vm514_vm1, %v4899_v21, %v4900_v19  ;;  %v210_v29 = vsel %vm198_vm5, %v4690_v60, %v4694_v25  ;;  %v10353_v6 = vld [vmem:[#allocation4_spill] sm:$0xff] }
 0x140   :  { %885 = vmatpush.msrb.mxu0 %v606_v18  ;;  %4478 = vmatmul.msk.f32.vlgmr.msrb.gmra.mxu1 %vm633_vm7, %v6343_v7  ;;  %v211_v61 = vsel %vm198_vm5, %v4694_v25, %v4695_v16  ;;  %v4749_v3 = vunpack.i.l.bf16 %v10352_v2  ;;  %v4955_v18 = vunpack.i.h.bf16 %v6710_v17  ;;  %v449_v50 = vsel %vm435_vm2, %v4845_v34, %v4849_v23  ;;  %v34_v25 = vld [vmem:[%s10170_s0 + $0x70] sm:$0xff] }
 0x141   :  { %850 = vmatpush.msra.mxu2 %v209_v1  ;;  %830 = vmatpush.msra.mxu1 %v208_v62  ;;  %v450_v60 = vsel %vm435_vm2, %v4849_v23, %v4850_v58  ;;  %v4750_v47 = vunpack.i.h.bf16 %v10352_v2  ;;  %v4944_v44 = vunpack.i.l.bf16 %v6661_v53  ;;  %v131_v20 = vsel %vm119_vm6, %v4640_v43, %v4644_v57 }
 0x142   :  { %866 = vmatpush.msra.mxu3 %v526_v13  ;;  %886 = vmatpush.msrb.mxu0 %v527_v27  ;;  %v132_v51 = vsel %vm119_vm6, %v4644_v57, %v4645_v28  ;;  %v4699_v34 = vunpack.i.l.bf16 %v10353_v6  ;;  %v4960_v31 = vunpack.i.h.bf16 %v6725_v14  ;;  %v370_v43 = vsel %vm356_vm3, %v4795_v15, %v4799_v24  ;;  %v10354_v13 = vld [vmem:[#allocation5_spill] sm:$0xff] }
 0x143   :  { %851 = vmatpush.msra.mxu2 %v130_v49  ;;  %831 = vmatpush.msra.mxu1 %v129_v12  ;;  %v371_v1 = vsel %vm356_vm3, %v4799_v24, %v4800_v54  ;;  %v4700_v56 = vunpack.i.h.bf16 %v10353_v6  ;;  %v4949_v62 = vunpack.i.l.bf16 %v6728_v39  ;;  %v4649_v27 = vunpack.i.l.bf16 %v10354_v13 }
 0x144   :  { %867 = vmatpush.msra.mxu3 %v447_v55  ;;  %887 = vmatpush.msrb.mxu0 %v448_v42  ;;  %v291_v22 = vsel %vm277_vm4, %v4745_v30, %v4749_v3  ;;  %v610_v15 = vsel %vm593_vm0, %v4944_v44, %v4955_v18  ;;  %v4650_v49 = vunpack.i.h.bf16 %v10354_v13  ;;  %v292_v12 = vsel %vm277_vm4, %v4749_v3, %v4750_v47  ;;  %v10356_v42 = vld [vmem:[#allocation12_spill] sm:$0xff] }
 0x145   :  { %852 = vmatpush.msra.mxu2 %v30_v36  ;;  %832 = vmatpush.msra.mxu1 %v29_v4  ;;  %v10355_v36 = vld [vmem:[#allocation19_spill] sm:$0xff]  ;;  %v609_v48 = vsel %vm593_vm0, %v4939_v33, %v4944_v44  ;;  %v212_v4 = vsel %vm198_vm5, %v4695_v16, %v4699_v34  ;;  %v531_v11 = vsel %vm514_vm1, %v4949_v62, %v4960_v31  ;;  %v4804_v30 = vunpack.i.l.bf16 %v10356_v42 }
 0x146   :  { %868 = vmatpush.msra.mxu3 %v368_v52  ;;  %888 = vmatpush.msrb.mxu0 %v369_v40  ;;  %v4854_v32 = vunpack.i.l.bf16 %v10355_v36  ;;  %v4855_v55 = vunpack.i.h.bf16 %v10355_v36  ;;  %v213_v38 = vsel %vm198_vm5, %v4699_v34, %v4700_v56  ;;  %v530_v33 = vsel %vm514_vm1, %v4900_v19, %v4949_v62  ;;  %v33_v40 = vld [vmem:[%s10170_s0 + $0x68] sm:$0xff] }
 0x147   :  { %4483 = vmatmul.msk.f32.vlgmr.msra.gmra.mxu2 %vm633_vm7, %v6343_v7  ;;  %905 = vmatpush.msrb.mxu1 %v607_v63  ;;  %v4805_v21 = vunpack.i.h.bf16 %v10356_v42  ;;  %v133_v52 = vsel %vm119_vm6, %v4645_v28, %v4649_v27  ;;  %v4945_v10 = vunpack.i.h.bf16 %v6661_v53  ;;  %v4954_v16 = vunpack.i.l.bf16 %v6710_v17  ;;  %v10357_v63 = vld [vmem:[#allocation13_spill] sm:$0xff]  ;;  %v10358_v28 = vld [vmem:[#allocation11_spill] sm:$0xff] }
 0x148   :  { %925 = vmatpush.msrb.mxu2 %v608_v45  ;;  %4481 = vmatmul.msk.f32.vlgmr.msra.gmra.mxu0 %vm633_vm7, %v6343_v7  ;;  %v134_v8 = vsel %vm119_vm6, %v4649_v27, %v4650_v49  ;;  %v451_v19 = vsel %vm435_vm2, %v4850_v58, %v4854_v32  ;;  %v4754_v45 = vunpack.i.l.bf16 %v10357_v63  ;;  %v452_v53 = vsel %vm435_vm2, %v4854_v32, %v4855_v55 }
 0x149   :  { %869 = vmatpush.msra.mxu3 %v289_v41  ;;  %889 = vmatpush.msrb.mxu0 %v290_v59  ;;  %v4755_v23 = vunpack.i.h.bf16 %v10357_v63  ;;  %v4950_v41 = vunpack.i.h.bf16 %v6728_v39  ;;  %v372_v5 = vsel %vm356_vm3, %v4800_v54, %v4804_v30  ;;  %v4959_v58 = vunpack.i.l.bf16 %v6725_v14  ;;  %v10359_v54 = vld [vmem:[#allocation18_spill] sm:$0xff] }
 0x14a   :  { %906 = vmatpush.msrb.mxu1 %v528_v9  ;;  %926 = vmatpush.msrb.mxu2 %v529_v37  ;;  %v373_v46 = vsel %vm356_vm3, %v4804_v30, %v4805_v21  ;;  %v4705_v57 = vunpack.i.h.bf16 %v10358_v28  ;;  %v4704_v59 = vunpack.i.l.bf16 %v10358_v28  ;;  %v611_v9 = vsel %vm593_vm0, %v4955_v18, %v4945_v10  ;;  %v38_v30 = vld [vmem:[%s10170_s0 + $0x90] sm:$0xff] }
 0x14b   :  { %4482 = vmatmul.msk.f32.vlgmr.msra.gmra.mxu1 %vm633_vm7, %v6343_v7  ;;  %870 = vmatpush.msra.mxu3 %v210_v29  ;;  %v612_v0 = vsel %vm593_vm0, %v4945_v10, %v4954_v16  ;;  %v4860_v24 = vunpack.i.h.bf16 %v10359_v54  ;;  %v4859_v37 = vunpack.i.l.bf16 %v10359_v54  ;;  %v293_v29 = vsel %vm277_vm4, %v4750_v47, %v4754_v45  ;;  %v6918_v16 = vld [vmem:[%s10172_s4 + $0x10] sm:$0xff] }
 0x14c   :  { %890 = vmatpush.msrb.mxu0 %v211_v61  ;;  %907 = vmatpush.msrb.mxu1 %v449_v50  ;;  %v10360_v61 = vld [vmem:[#allocation3_spill] sm:$0xff]  ;;  %v294_v17 = vsel %vm277_vm4, %v4754_v45, %v4755_v23  ;;  %v532_v18 = vsel %vm514_vm1, %v4960_v31, %v4950_v41  ;;  %v10361_v50 = vld [vmem:[#allocation17_spill] sm:$0xff]  ;;  %v533_v47 = vsel %vm514_vm1, %v4950_v41, %v4959_v58  ;;  %v6927_v45 = vld [vmem:[%s10172_s4 + $0x18] sm:$0xff] }
 0x14d   :  { %927 = vmatpush.msrb.mxu2 %v450_v60  ;;  %871 = vmatpush.msra.mxu3 %v131_v20  ;;  %v4655_v3 = vunpack.i.h.bf16 %v10360_v61  ;;  %v4654_v39 = vunpack.i.l.bf16 %v10360_v61  ;;  %v4810_v60 = vunpack.i.h.bf16 %v10361_v50  ;;  %v4809_v2 = vunpack.i.l.bf16 %v10361_v50  ;;  %v10362_v20 = vld [vmem:[#allocation9_spill] sm:$0xff] }
 0x14e   :  { %891 = vmatpush.msrb.mxu0 %v132_v51  ;;  %908 = vmatpush.msrb.mxu1 %v370_v43  ;;  %v214_v44 = vsel %vm198_vm5, %v4700_v56, %v4704_v59  ;;  %v215_v14 = vsel %vm198_vm5, %v4704_v59, %v4705_v57  ;;  %v4759_v51 = vunpack.i.l.bf16 %v10362_v20  ;;  %v4760_v34 = vunpack.i.h.bf16 %v10362_v20  ;;  %v35_v43 = vld [vmem:[%s10170_s0 + $0x78] sm:$0xff] }
 0x14f   :  { %928 = vmatpush.msrb.mxu2 %v371_v1  ;;  %872 = vmatpush.msra.mxu3 %v31_v26  ;;  %v453_v26 = vsel %vm435_vm2, %v4855_v55, %v4859_v37  ;;  %v135_v6 = vsel %vm119_vm6, %v4650_v49, %v4654_v39  ;;  %v136_v31 = vsel %vm119_vm6, %v4654_v39, %v4655_v3  ;;  %v36_v1 = vld [vmem:[%s10170_s0 + $0x80] sm:$0xff]  ;;  %v10363_v56 = vld [vmem:[#allocation10_spill] sm:$0xff]  ;;  %v6956_v39 = vld [vmem:[%s10172_s4 + $0x30] sm:$0xff] }
 0x150   :  { %892 = vmatpush.msrb.mxu0 %v32_v35  ;;  %4484 = vmatmul.msk.f32.vlgmr.msra.gmra.mxu3 %vm633_vm7, %v6343_v7  ;;  %v454_v35 = vsel %vm435_vm2, %v4859_v37, %v4860_v24  ;;  %v4709_v62 = vunpack.i.l.bf16 %v10363_v56  ;;  %v374_v13 = vsel %vm356_vm3, %v4805_v21, %v4809_v2  ;;  %v375_v27 = vsel %vm356_vm3, %v4809_v2, %v4810_v60 }
 0x151   :  { %909 = vmatpush.msrb.mxu1 %v291_v22  ;;  %929 = vmatpush.msrb.mxu2 %v292_v12  ;;  %v4710_v22 = vunpack.i.h.bf16 %v10363_v56  ;;  %v295_v36 = vsel %vm277_vm4, %v4755_v23, %v4759_v51  ;;  %v296_v12 = vsel %vm277_vm4, %v4759_v51, %v4760_v34  ;;  %v6983_v56 = vld [vmem:[%s10172_s4 + $0x48] sm:$0xff] }
 0x152   :  { %945 = vmatpush.msrb.mxu3 %v609_v48  ;;  %965 = vmatpush.msra.mxu0 %v610_v15  ;;  %v10364_v15 = vld [vmem:[#allocation7_spill] sm:$0xff]  ;;  %v216_v48 = vsel %vm198_vm5, %v4705_v57, %v4709_v62 }
 0x153   :  { %910 = vmatpush.msrb.mxu1 %v212_v4  ;;  %930 = vmatpush.msrb.mxu2 %v213_v38  ;;  %v4659_v49 = vunpack.i.l.bf16 %v10364_v15  ;;  %v4660_v32 = vunpack.i.h.bf16 %v10364_v15  ;;  %v217_v55 = vsel %vm198_vm5, %v4709_v62, %v4710_v22  ;;  %v6900_v38 = vld [vmem:[%s10172_s4] sm:$0xff] }
 0x154   :  { %946 = vmatpush.msrb.mxu3 %v530_v33  ;;  %966 = vmatpush.msra.mxu0 %v531_v11  ;;  %v37_v11 = vld [vmem:[%s10170_s0 + $0x88] sm:$0xff] }
 0x155   :  { %911 = vmatpush.msrb.mxu1 %v133_v52  ;;  %931 = vmatpush.msrb.mxu2 %v134_v8  ;;  %v137_v4 = vsel %vm119_vm6, %v4655_v3, %v4659_v49  ;;  %v138_v42 = vsel %vm119_vm6, %v4659_v49, %v4660_v32  ;;  %v6909_v52 = vld [vmem:[%s10172_s4 + $0x8] sm:$0xff]  ;;  %v6992_v49 = vld [vmem:[%s10172_s4 + $0x50] sm:$0xff]  ;;  %v6997_v32 = vld [vmem:[%s10172_s4 + $0x58] sm:$0xff] }
 0x156   :  { %947 = vmatpush.msrb.mxu3 %v451_v19  ;;  %967 = vmatpush.msra.mxu0 %v452_v53 }
 0x157   :  { %912 = vmatpush.msrb.mxu1 %v33_v40  ;;  %932 = vmatpush.msrb.mxu2 %v34_v25 }
 0x158   :  { %948 = vmatpush.msrb.mxu3 %v372_v5  ;;  %968 = vmatpush.msra.mxu0 %v373_v46  ;;  %v6936_v46 = vld [vmem:[%s10172_s4 + $0x20] sm:$0xff] }
 0x159   :  { %4487 = vmatmul.msk.f32.vlgmr.msrb.gmra.mxu2 %vm633_vm7, %v6343_v7  ;;  %985 = vmatpush.msra.mxu1 %v611_v9 }
 0x15a   :  { %1005 = vmatpush.msra.mxu2 %v612_v0  ;;  %4485 = vmatmul.msk.f32.vlgmr.msrb.gmra.mxu0 %vm633_vm7, %v6343_v7  ;;  %v6945_v0 = vld [vmem:[%s10172_s4 + $0x28] sm:$0xff] }
 0x15b   :  { %949 = vmatpush.msrb.mxu3 %v293_v29  ;;  %969 = vmatpush.msra.mxu0 %v294_v17 }
 0x15c   :  { %986 = vmatpush.msra.mxu1 %v532_v18  ;;  %1006 = vmatpush.msra.mxu2 %v533_v47  ;;  %v6965_v47 = vld [vmem:[%s10172_s4 + $0x38] sm:$0xff] }
 0x15d   :  { %4486 = vmatmul.msk.f32.vlgmr.msrb.gmra.mxu1 %vm633_vm7, %v6343_v7  ;;  %950 = vmatpush.msrb.mxu3 %v214_v44 }
 0x15e   :  { %970 = vmatpush.msra.mxu0 %v215_v14  ;;  %987 = vmatpush.msra.mxu1 %v453_v26 }
 0x15f   :  { %1007 = vmatpush.msra.mxu2 %v454_v35  ;;  %951 = vmatpush.msrb.mxu3 %v135_v6  ;;  %v6974_v35 = vld [vmem:[%s10172_s4 + $0x40] sm:$0xff] }
 0x160   :  { %971 = vmatpush.msra.mxu0 %v136_v31  ;;  %988 = vmatpush.msra.mxu1 %v374_v13 }
 0x161   :  { %1008 = vmatpush.msra.mxu2 %v375_v27  ;;  %952 = vmatpush.msrb.mxu3 %v35_v43 }
 0x162   :  { %972 = vmatpush.msra.mxu0 %v36_v1  ;;  %4488 = vmatmul.msk.f32.vlgmr.msrb.gmra.mxu3 %vm633_vm7, %v6343_v7 }
 0x163   :  { %989 = vmatpush.msra.mxu1 %v295_v36  ;;  %1009 = vmatpush.msra.mxu2 %v296_v12 }
 0x164   :  { %4489 = vmatmul.msk.f32.vlgmr.msra.gmra.mxu0 %vm633_vm7, %v6343_v7 }
 0x165   :  { %990 = vmatpush.msra.mxu1 %v216_v48  ;;  %1010 = vmatpush.msra.mxu2 %v217_v55 }
 0x167   :  { %991 = vmatpush.msra.mxu1 %v137_v4  ;;  %1011 = vmatpush.msra.mxu2 %v138_v42 }
 0x169   :  { %992 = vmatpush.msra.mxu1 %v37_v11  ;;  %1012 = vmatpush.msra.mxu2 %v38_v30  ;;  %v7008_v30 = vld [vmem:[%s10172_s4 + $0x60] sm:$0xff] }
 0x16a   :  { %4490 = vmatmul.msk.f32.vlgmr.msra.gmra.mxu1 %vm633_vm7, %v6343_v7  ;;  %4491 = vmatmul.msk.f32.vlgmr.msra.gmra.mxu2 %vm633_vm7, %v6343_v7 }
 0x186   :  { %v6902_v33 = vpop.f32.mrf.mxu0 }
 0x187   :  { %v1036_v21 = vmul.f32 %v6900_v38, %v6902_v33 }
 0x189   :  { %v1076_v10 = vmul.f32 %v1036_v21, %v1036_v21 }
 0x1b1   :  { %v6911_v40 = vpop.f32.mrf.mxu1 }
 0x1b2   :  { %v1037_v7 = vmul.f32 %v6909_v52, %v6911_v40 }
 0x1b4   :  { %v1077_v8 = vmul.f32 %v1037_v7, %v1037_v7  ;;  %v1055_v19 = vadd.f32 %v1037_v7, %v1036_v21  ;;  %v6920_v25 = vpop.f32.mrf.mxu2 }
 0x1b5   :  { %v1038_v63 = vmul.f32 %v6918_v16, %v6920_v25 }
 0x1b6   :  { %v1095_v53 = vadd.f32 %v1077_v8, %v1076_v10 }
 0x1b7   :  { %v1078_v23 = vmul.f32 %v1038_v63, %v1038_v63  ;;  %v6929_v41 = vpop.f32.mrf.mxu3  ;;  %v1056_v5 = vadd.f32 %v1055_v19, %v1038_v63 }
 0x1b8   :  { %v1039_v58 = vmul.f32 %v6927_v45, %v6929_v41 }
 0x1b9   :  { %v1096_v28 = vadd.f32 %v1095_v53, %v1078_v23  ;;  %v7019_v23 = vld [vmem:[%s10172_s4 + $0x68] sm:$0xff] }
 0x1ba   :  { %v1079_v57 = vmul.f32 %v1039_v58, %v1039_v58  ;;  %v1057_v54 = vadd.f32 %v1056_v5, %v1039_v58 }
 0x1bb   :  { %v6938_v59 = vpop.f32.mrf.mxu0 }
 0x1bc   :  { %v1040_v9 = vmul.f32 %v6936_v46, %v6938_v59  ;;  %v1097_v37 = vadd.f32 %v1096_v28, %v1079_v57 }
 0x1bd   :  { %v6947_v24 = vpop.f32.mrf.mxu1 }
 0x1be   :  { %v1080_v29 = vmul.f32 %v1040_v9, %v1040_v9  ;;  %v1041_v61 = vmul.f32 %v6945_v0, %v6947_v24  ;;  %v6951_v3 = vpop.f32.mrf.mxu2  ;;  %v1058_v17 = vadd.f32 %v1057_v54, %v1040_v9 }
 0x1bf   :  { %v1042_v60 = vmul.f32 %v6956_v39, %v6951_v3 }
 0x1c0   :  { %v1098_v18 = vadd.f32 %v1097_v37, %v1080_v29  ;;  %v1081_v50 = vmul.f32 %v1041_v61, %v1041_v61  ;;  %v6960_v2 = vpop.f32.mrf.mxu3  ;;  %v1059_v44 = vadd.f32 %v1058_v17, %v1041_v61  ;;  %v7028_v37 = vld [vmem:[%s10172_s4 + $0x70] sm:$0xff] }
 0x1c1   :  { %v1082_v20 = vmul.f32 %v1042_v60, %v1042_v60  ;;  %v1043_v51 = vmul.f32 %v6965_v47, %v6960_v2 }
 0x1c2   :  { %v1099_v14 = vadd.f32 %v1098_v18, %v1081_v50  ;;  %v1060_v34 = vadd.f32 %v1059_v44, %v1042_v60  ;;  %v7037_v60 = vld [vmem:[%s10172_s4 + $0x80] sm:$0xff] }
 0x1c3   :  { %v1083_v31 = vmul.f32 %v1043_v51, %v1043_v51 }
 0x1c4   :  { %v1100_v6 = vadd.f32 %v1099_v14, %v1082_v20  ;;  %v1061_v62 = vadd.f32 %v1060_v34, %v1043_v51  ;;  %v7042_v14 = vld [vmem:[%s10172_s4 + $0x78] sm:$0xff] }
 0x1c5   :  { %v6969_v26 = vpop.f32.mrf.mxu0 }
 0x1c6   :  { %v1044_v43 = vmul.f32 %v6974_v35, %v6969_v26  ;;  %v1101_v13 = vadd.f32 %v1100_v6, %v1083_v31  ;;  %v7049_v6 = vld [vmem:[%s10172_s4 + $0x88] sm:$0xff] }
 0x1c8   :  { %v6978_v1 = vpop.f32.mrf.mxu1  ;;  %v1084_v27 = vmul.f32 %v1044_v43, %v1044_v43  ;;  %v1062_v36 = vadd.f32 %v1061_v62, %v1044_v43 }
 0x1c9   :  { %v1045_v22 = vmul.f32 %v6983_v56, %v6978_v1 }
 0x1ca   :  { %v6987_v15 = vpop.f32.mrf.mxu2  ;;  %v1102_v12 = vadd.f32 %v1101_v13, %v1084_v27 }
 0x1cb   :  { %v1085_v48 = vmul.f32 %v1045_v22, %v1045_v22  ;;  %v1046_v55 = vmul.f32 %v6992_v49, %v6987_v15  ;;  %v1063_v11 = vadd.f32 %v1062_v36, %v1045_v22 }
 0x1cd   :  { %v1103_v21 = vadd.f32 %v1102_v12, %v1085_v48  ;;  %v1086_v7 = vmul.f32 %v1046_v55, %v1046_v55  ;;  %v1064_v8 = vadd.f32 %v1063_v11, %v1046_v55 }
 0x1cf   :  { %v1104_v5 = vadd.f32 %v1103_v21, %v1086_v7  ;;  %v7059_v21 = vld [vmem:[%s10172_s4 + $0x90] sm:$0xff] }
 0x1d3   :  { %v7001_v4 = vpop.f32.mrf.mxu3 }
 0x1d4   :  { %v1047_v42 = vmul.f32 %v6997_v32, %v7001_v4 }
 0x1d6   :  { %v1087_v19 = vmul.f32 %v1047_v42, %v1047_v42  ;;  %v1065_v58 = vadd.f32 %v1064_v8, %v1047_v42 }
 0x1d7   :  { %v7010_v10 = vpop.f32.mrf.mxu0 }
 0x1d8   :  { %v1048_v63 = vmul.f32 %v7008_v30, %v7010_v10  ;;  %v1105_v28 = vadd.f32 %v1104_v5, %v1087_v19 }
 0x1da   :  { %v7014_v53 = vpop.f32.mrf.mxu1  ;;  %v1088_v57 = vmul.f32 %v1048_v63, %v1048_v63  ;;  %v1066_v29 = vadd.f32 %v1065_v58, %v1048_v63 }
 0x1db   :  { %v1049_v9 = vmul.f32 %v7019_v23, %v7014_v53 }
 0x1dc   :  { %v7023_v54 = vpop.f32.mrf.mxu2  ;;  %v1106_v61 = vadd.f32 %v1105_v28, %v1088_v57 }
 0x1dd   :  { %v1089_v17 = vmul.f32 %v1049_v9, %v1049_v9  ;;  %v1050_v18 = vmul.f32 %v7028_v37, %v7023_v54  ;;  %v1067_v44 = vadd.f32 %v1066_v29, %v1049_v9  ;;  %v5888_v9 = vmov 0  }
 0x1de   :  { %4961 = vset.pattern.permute.xlu0 %v5888_v9  ;;  %5592 = vset.pattern.permute.xlu2 %v5888_v9 }
 0x1df   :  { %v1107_v20 = vadd.f32 %v1106_v61, %v1089_v17  ;;  %v1090_v51 = vmul.f32 %v1050_v18, %v1050_v18  ;;  %v1068_v43 = vadd.f32 %v1067_v44, %v1050_v18 }
 0x1e1   :  { %v7032_v50 = vpop.f32.mrf.mxu0  ;;  %v1108_v22 = vadd.f32 %v1107_v20, %v1090_v51 }
 0x1e2   :  { %v1052_v34 = vmul.f32 %v7037_v60, %v7032_v50 }
 0x1e4   :  { %v1092_v48 = vmul.f32 %v1052_v34, %v1052_v34 }
 0x1e5   :  { %v7051_v31 = vpop.f32.mrf.mxu3 }
 0x1e6   :  { %v1051_v62 = vmul.f32 %v7042_v14, %v7051_v31 }
 0x1e7   :  { %v994_v13 = vpop.f32.mrf.mxu1 }
 0x1e8   :  { %v1053_v27 = vmul.f32 %v7049_v6, %v994_v13  ;;  %v1069_v36 = vadd.f32 %v1068_v43, %v1051_v62  ;;  %v1091_v12 = vmul.f32 %v1051_v62, %v1051_v62 }
 0x1ea   :  { %v1109_v55 = vadd.f32 %v1108_v22, %v1091_v12  ;;  %v1070_v11 = vadd.f32 %v1069_v36, %v1052_v34  ;;  %v1093_v42 = vmul.f32 %v1053_v27, %v1053_v27  ;;  %v1118_v36 = vld [vmem:[%s10173_s2] sm:$0xff] }
 0x1ec   :  { %v1071_v7 = vadd.f32 %v1070_v11, %v1053_v27  ;;  %v1110_v8 = vadd.f32 %v1109_v55, %v1092_v48 }
 0x1ed   :  { %v7061_v19 = vpop.f32.mrf.mxu2 }
 0x1ee   :  { %v1054_v63 = vmul.f32 %v7059_v21, %v7061_v19  ;;  %v1111_v5 = vadd.f32 %v1110_v8, %v1093_v42  ;;  %v1131_v42 = vld [vmem:[%s10174_s3] sm:$0xff] }
 0x1f0   :  { %v1072_v58 = vadd.f32 %v1071_v7, %v1054_v63  ;;  %v1094_v28 = vmul.f32 %v1054_v63, %v1054_v63 }
 0x1f2   :  { %1073 = vadd.xlane.f32.xlu1 %v1072_v58  ;;  %v1112_v57 = vadd.f32 %v1111_v5, %v1094_v28 }
 0x1f4   :  { %1113 = vadd.xlane.f32.xlu2 %v1112_v57 }
 0x265   :  { %v1074_v29 = vpop.xlane.xlu1 %1073 }
 0x266   :  { %v1075_v61 = vmul.f32 0.001457726, %v1074_v29 }
 0x267   :  { %v1114_v17 = vpop.xlane.xlu2 %1113 }
 0x268   :  { %v1116_v18 = vmul.f32 %v1075_v61, %v1075_v61  ;;  %v1115_v44 = vmul.f32 0.001457726, %v1114_v17 }
 0x26a   :  { %v1117_v20 = vsub.f32 %v1115_v44, %v1116_v18 }
 0x26c   :  { %v1119_v51 = vadd.f32 1e-05, %v1117_v20 }
 0x26e   :  { %5873 = vrsqrt.f32 %v1119_v51  ;;  %vm1126_vm9 = vweird.f32 %v1119_v51 }
 0x274   :  { %v5874_v34 = vpop.eup %5873 }
 0x275   :  { %v1121_v43 = vmul.f32 %v5874_v34, %v1119_v51  ;;  %vm1127_vm8 = vweird.f32 %v5874_v34 }
 0x276   :  { %vm1128_vm10 = vmor %vm1126_vm9, %vm1127_vm8 }
 0x277   :  { %v1122_v62 = vmul.f32 %v5874_v34, %v1121_v43 }
 0x279   :  { %v1123_v27 = vmul.f32 0.5, %v1122_v62 }
 0x27b   :  { %v1124_v22 = vsub.f32 1.5, %v1123_v27 }
 0x27d   :  { %v1125_v12 = vmul.f32 %v5874_v34, %v1124_v22 }
 0x27f   :  { %v1129_v48 = vsel %vm1128_vm10, %v5874_v34, %v1125_v12 }
 0x280   :  { %v1130_v55 = vmul.f32 %v1129_v48, %v1118_v36 }
 0x282   :  { %1136 = vperm.xlu0 %4961, %v1130_v55   ;;  %v1132_v11 = vmul.f32 %v1130_v55, %v1075_v61 }
 0x284   :  { %v1133_v7 = vsub.f32 %v1131_v42, %v1132_v11 }
 0x28a   :  { %1160 = vperm.xlu0 %4961, %v1133_v7  }
 0x2f4   :  { %v7071_v8 = vpop.permute.xlu0 %1136 }
 0x2f5   :  { %v1145_v63 = vmul.f32 %v7071_v8, %v6951_v3  ;;  %v1146_v5 = vmul.f32 %v7071_v8, %v6960_v2  ;;  %v1143_v58 = vmul.f32 %v7071_v8, %v6938_v59  ;;  %v1144_v28 = vmul.f32 %v7071_v8, %v6947_v24 }
 0x2f6   :  { %v1139_v57 = vmul.f32 %v7071_v8, %v6902_v33  ;;  %v1140_v9 = vmul.f32 %v7071_v8, %v6911_v40  ;;  %v1155_v3 = vmul.f32 %v7071_v8, %v7032_v50  ;;  %v1156_v61 = vmul.f32 %v7071_v8, %v994_v13 }
 0x2f7   :  { %v1153_v2 = vmul.f32 %v7071_v8, %v7023_v54  ;;  %v1154_v59 = vmul.f32 %v7071_v8, %v7051_v31  ;;  %v1141_v62 = vmul.f32 %v7071_v8, %v6920_v25  ;;  %v1142_v27 = vmul.f32 %v7071_v8, %v6929_v41 }
 0x2fc   :  { %v7085_v29 = vpop.permute.xlu0 %1160 }
 0x2fd   :  { %v1169_v24 = vadd.f32 %v7085_v29, %v1145_v63  ;;  %v1170_v33 = vadd.f32 %v7085_v29, %v1146_v5  ;;  %v1167_v17 = vadd.f32 %v7085_v29, %v1143_v58  ;;  %v1168_v40 = vadd.f32 %v7085_v29, %v1144_v28 }
 0x2fe   :  { %v1163_v18 = vadd.f32 %v7085_v29, %v1139_v57  ;;  %v1164_v50 = vadd.f32 %v7085_v29, %v1140_v9  ;;  %v1179_v13 = vadd.f32 %v7085_v29, %v1155_v3  ;;  %v1180_v44 = vadd.f32 %v7085_v29, %v1156_v61 }
 0x2ff   :  { %v1188_v54 = vmax.f32 %v1169_v24, 0.0  ;;  %v1189_v20 = vmax.f32 %v1170_v33, 0.0  ;;  %v1186_v51 = vmax.f32 %v1167_v17, 0.0  ;;  %v1187_v31 = vmax.f32 %v1168_v40, 0.0 }
 0x300   :  { %v1182_v34 = vmax.f32 %v1163_v18, 0.0  ;;  %v1183_v43 = vmax.f32 %v1164_v50, 0.0  ;;  %v1198_v11 = vmax.f32 %v1179_v13, 0.0  ;;  %v1199_v41 = vmax.f32 %v1180_v44, 0.0 }
 0x301   :  { %v7107_v22 = vmul.f32 %v1188_v54, %v6956_v39  ;;  %v7110_v36 = vmul.f32 %v1189_v20, %v6965_v47  ;;  %v7113_v12 = vmul.f32 %v1186_v51, %v6936_v46  ;;  %v7116_v48 = vmul.f32 %v1187_v31, %v6945_v0 }
 0x302   :  { %v7119_v55 = vmul.f32 %v1182_v34, %v6900_v38  ;;  %v7122_v25 = vmul.f32 %v1183_v43, %v6909_v52  ;;  %v1177_v46 = vadd.f32 %v7085_v29, %v1153_v2  ;;  %v1178_v0 = vadd.f32 %v7085_v29, %v1154_v59 }
 0x303   :  { %10365 = vst [vmem:[#allocation8_spill] sm:$0xff] %v7107_v22  ;;  %v7126_v39 = vpack.i.bf16 %v7110_v36, %v7107_v22  ;;  %v7130_v47 = vpack.i.bf16 %v7116_v48, %v7113_v12  ;;  %v1165_v52 = vadd.f32 %v7085_v29, %v1141_v62  ;;  %v1166_v42 = vadd.f32 %v7085_v29, %v1142_v27 }
 0x304   :  { %10366 = vst [vmem:[#allocation15_spill] sm:$0xff] %v7116_v48  ;;  %v7136_v38 = vpack.i.bf16 %v7122_v25, %v7119_v55  ;;  %v1196_v7 = vmax.f32 %v1177_v46, 0.0  ;;  %v1197_v63 = vmax.f32 %v1178_v0, 0.0  ;;  %v1147_v28 = vmul.f32 %v7071_v8, %v6969_v26 }
 0x305   :  { %4978 = vrot.lane.b32.xlu1 %v7126_v39, %s5881_s30  ;;  %4973 = vrot.lane.b32.xlu2 %v7130_v47, %s5881_s30  ;;  %v1184_v5 = vmax.f32 %v1165_v52, 0.0  ;;  %v1185_v58 = vmax.f32 %v1166_v42, 0.0  ;;  %v1148_v57 = vmul.f32 %v7071_v8, %v6978_v1  ;;  %v7151_v9 = vmul.f32 %v1198_v11, %v7037_v60 }
 0x306   :  { %4963 = vrot.lane.b32.xlu0 %v7136_v38, %s5881_s30  ;;  %v7154_v3 = vmul.f32 %v1199_v41, %v7049_v6  ;;  %v7157_v61 = vmul.f32 %v1196_v7, %v7028_v37  ;;  %v7160_v2 = vmul.f32 %v1197_v63, %v7042_v14  ;;  %v1171_v1 = vadd.f32 %v7085_v29, %v1147_v28 }
 0x307   :  { %10367 = vst [vmem:[#allocation6_spill] sm:$0xff] %v7151_v9  ;;  %v7163_v59 = vmul.f32 %v1184_v5, %v6918_v16  ;;  %v7166_v26 = vmul.f32 %v1185_v58, %v6927_v45  ;;  %v1172_v60 = vadd.f32 %v7085_v29, %v1148_v57  ;;  %v1149_v16 = vmul.f32 %v7071_v8, %v6987_v15 }
 0x308   :  { %10368 = vst [vmem:[#allocation16_spill] sm:$0xff] %v7154_v3  ;;  %v5002_v6 = vpack.i.bf16 %v7154_v3, %v7151_v9  ;;  %v4997_v37 = vpack.i.bf16 %v7160_v2, %v7157_v61  ;;  %v1190_v24 = vmax.f32 %v1171_v1, 0.0  ;;  %v1150_v45 = vmul.f32 %v7071_v8, %v7001_v4 }
 0x309   :  { %10369 = vst [vmem:[#allocation14_spill] sm:$0xff] %v7157_v61  ;;  %v4967_v14 = vpack.i.bf16 %v7166_v26, %v7163_v59  ;;  %v1191_v33 = vmax.f32 %v1172_v60, 0.0  ;;  %v1173_v18 = vadd.f32 %v7085_v29, %v1149_v16 }
 0x30a   :  { %10370 = vst [vmem:[#allocation4_spill] sm:$0xff] %v7160_v2  ;;  %v7184_v17 = vmul.f32 %v1190_v24, %v6974_v35  ;;  %v1174_v50 = vadd.f32 %v7085_v29, %v1150_v45  ;;  %v1151_v35 = vmul.f32 %v7071_v8, %v7010_v10  ;;  %v5267_v45 = vpack.i.bf16 %v7154_v3, %v7157_v61 }
 0x30b   :  { %v7187_v40 = vmul.f32 %v1191_v33, %v6983_v56  ;;  %v1192_v44 = vmax.f32 %v1173_v18, 0.0  ;;  %v1152_v56 = vmul.f32 %v7071_v8, %v7014_v53 }
 0x30c   :  { %10371 = vst [vmem:[#allocation5_spill] sm:$0xff] %v7184_v17  ;;  %v1193_v54 = vmax.f32 %v1174_v50, 0.0  ;;  %v1175_v15 = vadd.f32 %v7085_v29, %v1151_v35 }
 0x30d   :  { %5003 = vrot.lane.b32.xlu1 %v5002_v6, %s5881_s30  ;;  %4998 = vrot.lane.b32.xlu2 %v4997_v37, %s5881_s30  ;;  %10372 = vst [vmem:[#allocation19_spill] sm:$0xff] %v7187_v40  ;;  %v4982_v13 = vpack.i.bf16 %v7187_v40, %v7184_v17  ;;  %v1176_v4 = vadd.f32 %v7085_v29, %v1152_v56 }
 0x30e   :  { %4968 = vrot.lane.b32.xlu0 %v4967_v14, %s5881_s30  ;;  %v7204_v20 = vmul.f32 %v1192_v44, %v6992_v49  ;;  %v7207_v51 = vmul.f32 %v1193_v54, %v6997_v32  ;;  %v1194_v31 = vmax.f32 %v1175_v15, 0.0  ;;  %v1157_v32 = vmul.f32 %v7071_v8, %v7061_v19 }
 0x30f   :  { %v1195_v34 = vmax.f32 %v1176_v4, 0.0  ;;  %v5162_v19 = vpack.i.bf16 %v7113_v12, %v7166_v26  ;;  %v5207_v42 = vpack.i.bf16 %v7187_v40, %v7107_v22 }
 0x310   :  { %10373 = vst [vmem:[#allocation12_spill] sm:$0xff] %v7204_v20  ;;  %v4987_v10 = vpack.i.bf16 %v7207_v51, %v7204_v20  ;;  %v7216_v53 = vmul.f32 %v1194_v31, %v7008_v30  ;;  %v1181_v62 = vadd.f32 %v7085_v29, %v1157_v32  ;;  %v5177_v29 = vpack.i.bf16 %v7116_v48, %v7163_v59 }
 0x311   :  { %v7219_v49 = vmul.f32 %v1195_v34, %v7019_v23 }
 0x312   :  { %10374 = vst [vmem:[#allocation13_spill] sm:$0xff] %v7216_v53  ;;  %v1200_v27 = vmax.f32 %v1181_v62, 0.0  ;;  %v5222_v58 = vpack.i.bf16 %v7216_v53, %v7207_v51 }
 0x313   :  { %10375 = vst [vmem:[#allocation11_spill] sm:$0xff] %v7219_v49  ;;  %v5037_v43 = vpack.i.bf16 %v7219_v49, %v7216_v53  ;;  %v5237_v1 = vpack.i.bf16 %v7219_v49, %v7204_v20 }
 0x314   :  { %v7230_v30 = vmul.f32 %v1200_v27, %v7059_v21 }
 0x315   :  { %5013 = vrot.lane.b32.xlu1 %v4967_v14, %s5882_s10  ;;  %5008 = vrot.lane.b32.xlu2 %v7136_v38, %s5882_s10 }
 0x316   :  { %4983 = vrot.lane.b32.xlu0 %v4982_v13, %s5881_s30 }
 0x31d   :  { %5028 = vrot.lane.b32.xlu1 %v4982_v13, %s5882_s10  ;;  %5023 = vrot.lane.b32.xlu2 %v7126_v39, %s5882_s10 }
 0x31e   :  { %4988 = vrot.lane.b32.xlu0 %v4987_v10, %s5881_s30 }
 0x325   :  { %5043 = vrot.lane.b32.xlu1 %v4997_v37, %s5882_s10  ;;  %5038 = vrot.lane.b32.xlu2 %v5037_v43, %s5882_s10 }
 0x326   :  { %4993 = vrot.lane.b32.xlu0 %v5037_v43, %s5881_s30 }
 0x32d   :  { %5053 = vrot.lane.b32.xlu1 %v7136_v38, %s5883_s11  ;;  %1405 = vrot.lane.b32.xlu2 %v7230_v30, %s5882_s10 }
 0x32e   :  { %1331 = vrot.lane.b32.xlu0 %v7230_v30, %s5881_s30 }
 0x335   :  { %5068 = vrot.lane.b32.xlu1 %v7126_v39, %s5883_s11  ;;  %5063 = vrot.lane.b32.xlu2 %v7130_v47, %s5883_s11 }
 0x336   :  { %5018 = vrot.lane.b32.xlu0 %v7130_v47, %s5882_s10 }
 0x33d   :  { %5083 = vrot.lane.b32.xlu1 %v5037_v43, %s5883_s11  ;;  %5078 = vrot.lane.b32.xlu2 %v4987_v10, %s5883_s11 }
 0x33e   :  { %5033 = vrot.lane.b32.xlu0 %v4987_v10, %s5882_s10 }
 0x345   :  { %1479 = vrot.lane.b32.xlu1 %v7230_v30, %s5883_s11  ;;  %5093 = vrot.lane.b32.xlu2 %v5002_v6, %s5883_s11 }
 0x346   :  { %5048 = vrot.lane.b32.xlu0 %v5002_v6, %s5882_s10 }
 0x34d   :  { %5108 = vrot.lane.b32.xlu1 %v7130_v47, %s5884_s12  ;;  %5103 = vrot.lane.b32.xlu2 %v4967_v14, %s5884_s12 }
 0x34e   :  { %5058 = vrot.lane.b32.xlu0 %v4967_v14, %s5883_s11  ;;  %v5252_v14 = vpack.i.bf16 %v7151_v9, %v7160_v2 }
 0x355   :  { %5123 = vrot.lane.b32.xlu1 %v4987_v10, %s5884_s12  ;;  %5118 = vrot.lane.b32.xlu2 %v4982_v13, %s5884_s12 }
 0x356   :  { %5073 = vrot.lane.b32.xlu0 %v4982_v13, %s5883_s11 }
 0x35d   :  { %5138 = vrot.lane.b32.xlu1 %v5002_v6, %s5884_s12  ;;  %5133 = vrot.lane.b32.xlu2 %v4997_v37, %s5884_s12 }
 0x35e   :  { %5088 = vrot.lane.b32.xlu0 %v4997_v37, %s5883_s11 }
 0x35f   :  { %v7261_v23 = vpop.permute.xlu2 %4973 }
 0x360   :  { %v10212_v40 = vunpack.i.l.bf16 %v7261_v23 }
 0x365   :  { %5148 = vrot.lane.b32.xlu1 %v7136_v38, %s5887_s15  ;;  %5143 = vrot.lane.b32.xlu2 %v7136_v38, %s5885_s13 }
 0x366   :  { %5098 = vrot.lane.b32.xlu0 %v7136_v38, %s5884_s12 }
 0x367   :  { %v7269_v21 = vpop.permute.xlu2 %4998 }
 0x368   :  { %10376 = vst [vmem:[#allocation18_spill] sm:$0xff] %v7269_v21 }
 0x36d   :  { %5163 = vrot.lane.b32.xlu1 %v5162_v19, %s5886_s14  ;;  %5158 = vrot.lane.b32.xlu2 %v5162_v19, %s5887_s15 }
 0x36e   :  { %5113 = vrot.lane.b32.xlu0 %v7126_v39, %s5884_s12  ;;  %v5192_v39 = vpack.i.bf16 %v7184_v17, %v7110_v36 }
 0x36f   :  { %v7277_v8 = vpop.permute.xlu2 %5008 }
 0x375   :  { %5178 = vrot.lane.b32.xlu1 %v5177_v29, %s5886_s14  ;;  %5173 = vrot.lane.b32.xlu2 %v5162_v19, %s5885_s13 }
 0x376   :  { %5128 = vrot.lane.b32.xlu0 %v5037_v43, %s5884_s12 }
 0x377   :  { %v7284_v11 = vpop.permute.xlu1 %4978  ;;  %v7286_v41 = vpop.permute.xlu2 %5023 }
 0x378   :  { %10377 = vst [vmem:[#allocation3_spill] sm:$0xff] %v7284_v11  ;;  %v7288_v47 = vpop.permute.xlu0 %4963 }
 0x37d   :  { %5193 = vrot.lane.b32.xlu1 %v5192_v39, %s5886_s14  ;;  %5188 = vrot.lane.b32.xlu2 %v5192_v39, %s5887_s15 }
 0x37e   :  { %1553 = vrot.lane.b32.xlu0 %v7230_v30, %s5884_s12 }
 0x37f   :  { %v7296_v46 = vpop.permute.xlu1 %5003  ;;  %v7298_v0 = vpop.permute.xlu2 %5038 }
 0x380   :  { %v7300_v52 = vpop.permute.xlu0 %4968 }
 0x381   :  { %v10389_v17 = vunpack.i.h.bf16 %v7300_v52 }
 0x385   :  { %5208 = vrot.lane.b32.xlu1 %v5207_v42, %s5886_s14  ;;  %5203 = vrot.lane.b32.xlu2 %v5192_v39, %s5885_s13 }
 0x386   :  { %5153 = vrot.lane.b32.xlu0 %v7136_v38, %s5886_s14 }
 0x387   :  { %v7308_v7 = vpop.permute.xlu1 %5013  ;;  %v7310_v63 = vpop.permute.xlu2 %1405 }
 0x388   :  { %10378 = vst [vmem:[#allocation17_spill] sm:$0xff] %v7310_v63  ;;  %v7312_v5 = vpop.permute.xlu0 %4983 }
 0x389   :  { %10379 = vst [vmem:[#allocation9_spill] sm:$0xff] %v7312_v5 }
 0x38d   :  { %5223 = vrot.lane.b32.xlu1 %v5222_v58, %s5886_s14  ;;  %5218 = vrot.lane.b32.xlu2 %v5222_v58, %s5887_s15 }
 0x38e   :  { %5168 = vrot.lane.b32.xlu0 %v5177_v29, %s5887_s15 }
 0x38f   :  { %v7319_v28 = vpop.permute.xlu1 %5028  ;;  %v7321_v57 = vpop.permute.xlu2 %5063 }
 0x390   :  { %v7323_v38 = vpop.permute.xlu0 %4988  ;;  %v10211_v61 = vunpack.i.l.bf16 %v7321_v57 }
 0x395   :  { %5238 = vrot.lane.b32.xlu1 %v5237_v1, %s5886_s14  ;;  %5233 = vrot.lane.b32.xlu2 %v5222_v58, %s5885_s13 }
 0x396   :  { %5183 = vrot.lane.b32.xlu0 %v5177_v29, %s5885_s13 }
 0x397   :  { %v7330_v60 = vpop.permute.xlu1 %5043  ;;  %v7332_v6 = vpop.permute.xlu2 %5078 }
 0x398   :  { %v7334_v37 = vpop.permute.xlu0 %4993 }
 0x39d   :  { %5253 = vrot.lane.b32.xlu1 %v5252_v14, %s5886_s14  ;;  %5248 = vrot.lane.b32.xlu2 %v5252_v14, %s5887_s15 }
 0x39e   :  { %5198 = vrot.lane.b32.xlu0 %v5207_v42, %s5887_s15 }
 0x39f   :  { %v7341_v24 = vpop.permute.xlu1 %5053  ;;  %v7343_v33 = vpop.permute.xlu2 %5093 }
 0x3a0   :  { %v7345_v16 = vpop.permute.xlu0 %1331 }
 0x3a1   :  { %10380 = vst [vmem:[#allocation10_spill] sm:$0xff] %v7345_v16 }
 0x3a5   :  { %5268 = vrot.lane.b32.xlu1 %v5267_v45, %s5886_s14  ;;  %5263 = vrot.lane.b32.xlu2 %v5252_v14, %s5885_s13 }
 0x3a6   :  { %5213 = vrot.lane.b32.xlu0 %v5207_v42, %s5885_s13 }
 0x3a7   :  { %v7352_v18 = vpop.permute.xlu1 %5068  ;;  %v7354_v50 = vpop.permute.xlu2 %5103 }
 0x3a8   :  { %10381 = vst [vmem:[#allocation7_spill] sm:$0xff] %v7352_v18  ;;  %v7356_v13 = vpop.permute.xlu0 %5018  ;;  %v10230_v48 = vunpack.i.h.bf16 %v7352_v18 }
 0x3ad   :  { %1701 = vrot.lane.b32.xlu1 %v7230_v30, %s5886_s14  ;;  %1775 = vrot.lane.b32.xlu2 %v7230_v30, %s5887_s15 }
 0x3ae   :  { %5228 = vrot.lane.b32.xlu0 %v5237_v1, %s5887_s15 }
 0x3af   :  { %v7363_v44 = vpop.permute.xlu1 %5083  ;;  %v7365_v54 = vpop.permute.xlu2 %5118 }
 0x3b0   :  { %10382 = vst [vmem:[#allocation20_spill] sm:$0xff] %v7365_v54  ;;  %v7367_v35 = vpop.permute.xlu0 %5033 }
 0x3b6   :  { %5243 = vrot.lane.b32.xlu0 %v5237_v1, %s5885_s13 }
 0x3b7   :  { %v7370_v56 = vpop.permute.xlu1 %1479  ;;  %v7372_v15 = vpop.permute.xlu2 %5133 }
 0x3b8   :  { %10383 = vst [vmem:[#allocation21_spill] sm:$0xff] %v7370_v56  ;;  %v7374_v4 = vpop.permute.xlu0 %5048 }
 0x3be   :  { %5258 = vrot.lane.b32.xlu0 %v5267_v45, %s5887_s15 }
 0x3bf   :  { %v7377_v31 = vpop.permute.xlu1 %5108  ;;  %v7379_v34 = vpop.permute.xlu2 %5143 }
 0x3c0   :  { %v7381_v10 = vpop.permute.xlu0 %5058 }
 0x3c6   :  { %5273 = vrot.lane.b32.xlu0 %v5267_v45, %s5885_s13 }
 0x3c7   :  { %v7384_v32 = vpop.permute.xlu1 %5123  ;;  %v7386_v43 = vpop.permute.xlu2 %5158 }
 0x3c8   :  { %v10196_v62 = vunpack.i.h.bf16 %v7386_v43  ;;  %v10197_v27 = vunpack.i.l.bf16 %v7386_v43  ;;  %v7390_v19 = vpop.permute.xlu0 %5073 }
 0x3c9   :  { %10384 = vst [vmem:[#allocation22_spill] sm:$0xff] %v7390_v19 }
 0x3ca   :  { %v1780_v29 = vsel %vm593_vm0, %v10197_v27, %v10196_v62 }
 0x3cb   :  { %1886 = vmatpush.msrb.mxu2 %v1780_v29 }
 0x3ce   :  { %1627 = vrot.lane.b32.xlu0 %v7230_v30, %s5885_s13 }
 0x3cf   :  { %v7399_v39 = vpop.permute.xlu1 %5138  ;;  %v7403_v58 = vpop.permute.xlu2 %5173 }
 0x3d0   :  { %v7401_v42 = vpop.permute.xlu0 %5088  ;;  %v10206_v27 = vunpack.i.h.bf16 %v7403_v58  ;;  %v10207_v16 = vunpack.i.l.bf16 %v7403_v58 }
 0x3d2   :  { %v1632_v49 = vsel %vm435_vm2, %v10207_v16, %v10206_v27  ;;  %v10213_v27 = vunpack.i.h.bf16 %v7308_v7 }
 0x3d7   :  { %v7405_v1 = vpop.permute.xlu1 %5148  ;;  %v7414_v62 = vpop.permute.xlu2 %5188 }
 0x3d8   :  { %v10200_v14 = vunpack.i.h.bf16 %v7405_v1  ;;  %v5150_v45 = vunpack.i.l.bf16 %v7405_v1  ;;  %v7409_v3 = vpop.permute.xlu0 %5098 }
 0x3da   :  { %v1777_v29 = vsel %vm593_vm0, %v5150_v45, %v10200_v14  ;;  %v10216_v14 = vunpack.i.l.bf16 %v7414_v62 }
 0x3db   :  { %1826 = vmatpush.msra.mxu3 %v1777_v29  ;;  %v10209_v29 = vunpack.i.h.bf16 %v7354_v50 }
 0x3df   :  { %v7416_v30 = vpop.permute.xlu1 %5163  ;;  %v7437_v53 = vpop.permute.xlu2 %5203 }
 0x3e0   :  { %v10204_v63 = vunpack.i.h.bf16 %v7416_v30  ;;  %v10205_v56 = vunpack.i.l.bf16 %v7416_v30  ;;  %v7422_v9 = vpop.permute.xlu0 %5113  ;;  %10385 = vst [vmem:[#allocation23_spill] sm:$0xff] %v7437_v53 }
 0x3e2   :  { %v1706_v45 = vsel %vm514_vm1, %v10205_v56, %v10204_v63  ;;  %v10386_v63 = vunpack.i.l.bf16 %v7377_v31 }
 0x3e3   :  { %1887 = vmatpush.msrb.mxu2 %v1706_v45 }
 0x3e4   :  { %v1558_v45 = vsel %vm356_vm3, %v10209_v29, %v10386_v63  ;;  %v10388_v63 = vunpack.i.l.bf16 %v7356_v13  ;;  %v10215_v29 = vunpack.i.h.bf16 %v7414_v62 }
 0x3e5   :  { %1888 = vmatpush.msrb.mxu2 %v1632_v49  ;;  %v10387_v49 = vunpack.i.h.bf16 %v7381_v10 }
 0x3e7   :  { %v7446_v56 = vpop.permute.xlu1 %5178  ;;  %1889 = vmatpush.msrb.mxu2 %v1558_v45  ;;  %v1484_v20 = vsel %vm277_vm4, %v10387_v49, %v10211_v61  ;;  %v1410_v45 = vsel %vm198_vm5, %v10213_v27, %v10388_v63  ;;  %v1336_v49 = vsel %vm119_vm6, %v10389_v17, %v10212_v40  ;;  %v7475_v61 = vpop.permute.xlu2 %5218  ;;  %v10222_v17 = vunpack.i.h.bf16 %v7437_v53 }
 0x3e8   :  { %v7450_v16 = vpop.permute.xlu0 %5128  ;;  %10390 = vst [vmem:[#allocation24_spill] sm:$0xff] %v7475_v61  ;;  %v10402_v2 = vunpack.i.l.bf16 %v7475_v61 }
 0x3e9   :  { %1890 = vmatpush.msrb.mxu2 %v1484_v20  ;;  %v7473_v20 = vld [vmem:[%s10171_s1 + $0x8] sm:$0xff] }
 0x3eb   :  { %1891 = vmatpush.msrb.mxu2 %v1410_v45  ;;  %v1784_v45 = vsel %vm593_vm0, %v10216_v14, %v10215_v29  ;;  %v10225_v14 = vunpack.i.l.bf16 %v7365_v54 }
 0x3ed   :  { %1892 = vmatpush.msrb.mxu2 %v1336_v49  ;;  %v10395_v49 = vunpack.i.l.bf16 %v7319_v28 }
 0x3ef   :  { %v7477_v63 = vpop.permute.xlu1 %5193  ;;  %1893 = vmatpush.msrb.mxu2 %v7166_v26  ;;  %v5145_v26 = vunpack.i.l.bf16 %v7379_v34 }
 0x3f0   :  { %v10218_v40 = vunpack.i.h.bf16 %v7477_v63  ;;  %v10219_v27 = vunpack.i.l.bf16 %v7477_v63  ;;  %v7489_v22 = vpop.permute.xlu0 %1553  ;;  %4496 = vmatmul.msk.f32.vlgmr.msrb.gmra.mxu2 %vm633_vm7, %v7473_v20 }
 0x3f1   :  { %10391 = vst [vmem:[#allocation25_spill] sm:$0xff] %v7489_v22  ;;  %1966 = vmatpush.msra.mxu2 %v1784_v45  ;;  %v10392_v45 = vunpack.i.l.bf16 %v7437_v53  ;;  %v7524_v53 = vpop.permute.xlu2 %5233 }
 0x3f2   :  { %v1710_v29 = vsel %vm514_vm1, %v10219_v27, %v10218_v40  ;;  %v10393_v40 = vunpack.i.h.bf16 %v7422_v9 }
 0x3f3   :  { %1967 = vmatpush.msra.mxu2 %v1710_v29  ;;  %v1636_v22 = vsel %vm435_vm2, %v10392_v45, %v10222_v17  ;;  %v10400_v17 = vunpack.i.h.bf16 %v7409_v3 }
 0x3f4   :  { %v1562_v29 = vsel %vm356_vm3, %v10393_v40, %v10225_v14 }
 0x3f5   :  { %1968 = vmatpush.msra.mxu2 %v1636_v22  ;;  %v10394_v22 = vunpack.i.l.bf16 %v7390_v19  ;;  %v10396_v19 = vunpack.i.h.bf16 %v7286_v41 }
 0x3f7   :  { %v7513_v27 = vpop.permute.xlu1 %5208  ;;  %1969 = vmatpush.msra.mxu2 %v1562_v29  ;;  %v1488_v45 = vsel %vm277_vm4, %v10230_v48, %v10394_v22  ;;  %v10233_v29 = vunpack.i.h.bf16 %v7284_v11  ;;  %v1414_v18 = vsel %vm198_vm5, %v10396_v19, %v10395_v49  ;;  %v5100_v22 = vunpack.i.l.bf16 %v7409_v3 }
 0x3f8   :  { %v5154_v21 = vpop.permute.xlu0 %5153  ;;  %v5055_v19 = vunpack.i.l.bf16 %v7341_v24  ;;  %v10398_v49 = vunpack.i.h.bf16 %v7379_v34  ;;  %v10406_v11 = vunpack.i.l.bf16 %v7386_v43 }
 0x3f9   :  { %v5156_v40 = vunpack.i.h.bf16 %v5154_v21  ;;  %v5155_v14 = vunpack.i.l.bf16 %v5154_v21  ;;  %1970 = vmatpush.msra.mxu2 %v1488_v45  ;;  %v10397_v21 = vunpack.i.l.bf16 %v7312_v5 }
 0x3fa   :  { %v1629_v48 = vsel %vm435_vm2, %v5145_v26, %v10398_v49 }
 0x3fb   :  { %v1703_v54 = vsel %vm514_vm1, %v5155_v14, %v5156_v40  ;;  %1971 = vmatpush.msra.mxu2 %v1414_v18  ;;  %v1340_v45 = vsel %vm119_vm6, %v10233_v29, %v10397_v21  ;;  %v5010_v18 = vunpack.i.l.bf16 %v7277_v8  ;;  %v1555_v21 = vsel %vm356_vm3, %v5100_v22, %v10400_v17 }
 0x3fc   :  { %1827 = vmatpush.msra.mxu3 %v1703_v54  ;;  %v10401_v29 = vunpack.i.h.bf16 %v7475_v61  ;;  %v4965_v17 = vunpack.i.l.bf16 %v7288_v47 }
 0x3fd   :  { %1972 = vmatpush.msra.mxu2 %v1340_v45  ;;  %v5180_v45 = vunpack.i.l.bf16 %v7446_v56 }
 0x3fe   :  { %1828 = vmatpush.msra.mxu3 %v1629_v48  ;;  %v1788_v26 = vsel %vm593_vm0, %v10402_v2, %v10401_v29  ;;  %v10403_v2 = vunpack.i.h.bf16 %v7341_v24  ;;  %v10245_v48 = vunpack.i.l.bf16 %v7363_v44 }
 0x3ff   :  { %v7549_v54 = vpop.permute.xlu1 %5223  ;;  %1973 = vmatpush.msra.mxu2 %v7110_v36  ;;  %v10404_v36 = vunpack.i.h.bf16 %v7277_v8 }
 0x400   :  { %10399 = vst [vmem:[#allocation26_spill] sm:$0xff] %v7549_v54  ;;  %v10242_v49 = vunpack.i.h.bf16 %v7549_v54  ;;  %v10243_v14 = vunpack.i.l.bf16 %v7549_v54  ;;  %v7564_v5 = vpop.permute.xlu0 %5168  ;;  %1829 = vmatpush.msra.mxu3 %v1555_v21  ;;  %v1481_v29 = vsel %vm277_vm4, %v5055_v19, %v10403_v2  ;;  %4500 = vmatmul.msk.f32.vlgmr.msra.gmra.mxu2 %vm633_vm7, %v7473_v20  ;;  %v10405_v2 = vunpack.i.h.bf16 %v7405_v1 }
 0x401   :  { %2046 = vmatpush.msrb.mxu2 %v1788_v26  ;;  %v5170_v22 = vunpack.i.l.bf16 %v7564_v5  ;;  %v7581_v26 = vpop.permute.xlu2 %5248  ;;  %v1407_v19 = vsel %vm198_vm5, %v5010_v18, %v10404_v36  ;;  %v10244_v54 = vunpack.i.h.bf16 %v7384_v32  ;;  %v10408_v18 = vunpack.i.l.bf16 %v7524_v53 }
 0x402   :  { %1830 = vmatpush.msra.mxu3 %v1481_v29  ;;  %v1714_v21 = vsel %vm514_vm1, %v10243_v14, %v10242_v49  ;;  %v10247_v49 = vunpack.i.h.bf16 %v7564_v5  ;;  %v10407_v14 = vunpack.i.h.bf16 %v7524_v53  ;;  %v10249_v36 = vunpack.i.h.bf16 %v7367_v35 }
 0x403   :  { %v1778_v61 = vsel %vm593_vm0, %v10405_v2, %v5170_v22  ;;  %v1779_v29 = vsel %vm593_vm0, %v5170_v22, %v10406_v11  ;;  %2047 = vmatpush.msrb.mxu2 %v1714_v21  ;;  %v10409_v11 = vunpack.i.h.bf16 %v7288_v47  ;;  %v1704_v21 = vsel %vm514_vm1, %v5156_v40, %v5180_v45 }
 0x404   :  { %1831 = vmatpush.msra.mxu3 %v1407_v19  ;;  %1846 = vmatpush.msrb.mxu0 %v1778_v61  ;;  %v1640_v1 = vsel %vm435_vm2, %v10408_v18, %v10407_v14  ;;  %v10246_v2 = vunpack.i.h.bf16 %v7332_v6  ;;  %v5181_v61 = vunpack.i.h.bf16 %v7446_v56  ;;  %v10410_v19 = vunpack.i.l.bf16 %v7416_v30 }
 0x405   :  { %1866 = vmatpush.msrb.mxu1 %v1779_v29  ;;  %v1333_v22 = vsel %vm119_vm6, %v4965_v17, %v10409_v11  ;;  %2048 = vmatpush.msrb.mxu2 %v1640_v1  ;;  %v10411_v18 = vunpack.i.l.bf16 %v7450_v16  ;;  %v10248_v17 = vunpack.i.l.bf16 %v7298_v0  ;;  %v5066_v40 = vunpack.i.h.bf16 %v7321_v57 }
 0x406   :  { %1832 = vmatpush.msra.mxu3 %v1333_v22  ;;  %1847 = vmatpush.msrb.mxu0 %v1704_v21  ;;  %v1705_v14 = vsel %vm514_vm1, %v5180_v45, %v10410_v19  ;;  %v10251_v11 = vunpack.i.h.bf16 %v7323_v38  ;;  %v10250_v22 = vunpack.i.l.bf16 %v7334_v37  ;;  %v10412_v45 = vunpack.i.h.bf16 %v7386_v43 }
 0x407   :  { %v1566_v29 = vsel %vm356_vm3, %v10244_v54, %v10411_v18  ;;  %1867 = vmatpush.msrb.mxu1 %v1705_v14  ;;  %v7617_v1 = vpop.permute.xlu1 %5238  ;;  %v1492_v14 = vsel %vm277_vm4, %v10246_v2, %v10245_v48  ;;  %v5105_v18 = vunpack.i.l.bf16 %v7354_v50  ;;  %v5111_v43 = vunpack.i.h.bf16 %v7377_v31 }
 0x408   :  { %2049 = vmatpush.msrb.mxu2 %v1566_v29  ;;  %v7621_v21 = vpop.permute.xlu0 %5183  ;;  %1833 = vmatpush.msra.mxu3 %v7119_v55  ;;  %v1781_v19 = vsel %vm593_vm0, %v10412_v45, %v10247_v49  ;;  %v1418_v55 = vsel %vm198_vm5, %v10249_v36, %v10248_v17  ;;  %v5060_v45 = vunpack.i.l.bf16 %v7381_v10  ;;  %v10413_v2 = vunpack.i.h.bf16 %v7416_v30 }
 0x409   :  { %v5186_v29 = vunpack.i.h.bf16 %v7621_v21  ;;  %v5185_v54 = vunpack.i.l.bf16 %v7621_v21  ;;  %4493 = vmatmul.msk.f32.vlgmr.msra.gmra.mxu3 %vm633_vm7, %v7473_v20  ;;  %v10415_v36 = vunpack.i.l.bf16 %v7403_v58  ;;  %v10416_v30 = vunpack.i.h.bf16 %v7403_v58 }
 0x40a   :  { %1906 = vmatpush.msrb.mxu3 %v1781_v19  ;;  %2050 = vmatpush.msrb.mxu2 %v1492_v14  ;;  %v1707_v49 = vsel %vm514_vm1, %v10413_v2, %v5181_v61  ;;  %v10252_v19 = vunpack.i.l.bf16 %v7581_v26  ;;  %v10414_v14 = vunpack.i.h.bf16 %v7379_v34  ;;  %v1344_v34 = vsel %vm119_vm6, %v10251_v11, %v10250_v22 }
 0x40b   :  { %v1631_v48 = vsel %vm435_vm2, %v5185_v54, %v10415_v36  ;;  %v1633_v2 = vsel %vm435_vm2, %v10416_v30, %v5186_v29  ;;  %v10418_v58 = vunpack.i.h.bf16 %v7354_v50  ;;  %v10419_v30 = vunpack.i.l.bf16 %v7377_v31 }
 0x40c   :  { %1907 = vmatpush.msrb.mxu3 %v1707_v49  ;;  %v1630_v17 = vsel %vm435_vm2, %v10414_v14, %v5185_v54  ;;  %2051 = vmatpush.msrb.mxu2 %v1418_v55  ;;  %v5015_v49 = vunpack.i.l.bf16 %v7308_v7  ;;  %v7670_v14 = vpop.permute.xlu2 %5263  ;;  %v10417_v54 = vunpack.i.h.bf16 %v7409_v3  ;;  %v5021_v55 = vunpack.i.h.bf16 %v7356_v13 }
 0x40d   :  { %1848 = vmatpush.msrb.mxu0 %v1630_v17  ;;  %1868 = vmatpush.msrb.mxu1 %v1631_v48  ;;  %v1557_v17 = vsel %vm356_vm3, %v5105_v18, %v10418_v58  ;;  %v4976_v48 = vunpack.i.h.bf16 %v7261_v23  ;;  %v10420_v3 = vunpack.i.l.bf16 %v7321_v57  ;;  %v10422_v58 = vunpack.i.h.bf16 %v7381_v10  ;;  %v10448_v57 = vld [vmem:[#allocation4_spill] sm:$0xff] }
 0x40e   :  { %1908 = vmatpush.msrb.mxu3 %v1633_v2  ;;  %v1556_v36 = vsel %vm356_vm3, %v10417_v54, %v5105_v18  ;;  %2052 = vmatpush.msrb.mxu2 %v1344_v34  ;;  %v1559_v2 = vsel %vm356_vm3, %v10419_v30, %v5111_v43  ;;  %v4970_v18 = vunpack.i.l.bf16 %v7300_v52  ;;  %v10421_v54 = vunpack.i.h.bf16 %v7341_v24 }
 0x40f   :  { %1849 = vmatpush.msrb.mxu0 %v1556_v36  ;;  %1869 = vmatpush.msrb.mxu1 %v1557_v17  ;;  %v1485_v50 = vsel %vm277_vm4, %v10420_v3, %v5066_v40  ;;  %v7691_v34 = vpop.permute.xlu1 %5253  ;;  %v1483_v17 = vsel %vm277_vm4, %v5060_v45, %v10422_v58  ;;  %v10423_v30 = vunpack.i.h.bf16 %v7581_v26  ;;  %v5265_v22 = vunpack.i.l.bf16 %v7670_v14 }
 0x410   :  { %1909 = vmatpush.msrb.mxu3 %v1559_v2  ;;  %v1482_v36 = vsel %vm277_vm4, %v10421_v54, %v5060_v45  ;;  %2053 = vmatpush.msrb.mxu2 %v7207_v51  ;;  %v5266_v2 = vunpack.i.h.bf16 %v7670_v14  ;;  %v5256_v24 = vunpack.i.h.bf16 %v7691_v34  ;;  %v5255_v54 = vunpack.i.l.bf16 %v7691_v34  ;;  %v7709_v11 = vpop.permute.xlu0 %5198 }
 0x411   :  { %v1792_v3 = vsel %vm593_vm0, %v10252_v19, %v10423_v30  ;;  %1850 = vmatpush.msrb.mxu0 %v1482_v36  ;;  %1870 = vmatpush.msrb.mxu1 %v1483_v17  ;;  %v10424_v51 = vunpack.i.h.bf16 %v7277_v8  ;;  %v10425_v45 = vunpack.i.h.bf16 %v7308_v7  ;;  %v5200_v30 = vunpack.i.l.bf16 %v7709_v11 }
 0x412   :  { %1910 = vmatpush.msrb.mxu3 %v1485_v50  ;;  %2126 = vmatpush.msra.mxu2 %v1792_v3  ;;  %v10426_v19 = vunpack.i.l.bf16 %v7356_v13  ;;  %v1718_v8 = vsel %vm514_vm1, %v5255_v54, %v5256_v24  ;;  %v5201_v7 = vunpack.i.h.bf16 %v7709_v11  ;;  %v10428_v17 = vunpack.i.h.bf16 %v7300_v52 }
 0x413   :  { %v1408_v10 = vsel %vm198_vm5, %v10424_v51, %v5015_v49  ;;  %v1409_v58 = vsel %vm198_vm5, %v5015_v49, %v10425_v45  ;;  %v10427_v49 = vunpack.i.h.bf16 %v7288_v47  ;;  %v5210_v51 = vunpack.i.l.bf16 %v7513_v27  ;;  %4504 = vmatmul.msk.f32.vlgmr.msrb.gmra.mxu2 %vm633_vm7, %v7473_v20 }
 0x414   :  { %1851 = vmatpush.msrb.mxu0 %v1408_v10  ;;  %1871 = vmatpush.msrb.mxu1 %v1409_v58  ;;  %v1411_v36 = vsel %vm198_vm5, %v10426_v19, %v5021_v55  ;;  %v1335_v3 = vsel %vm119_vm6, %v4970_v18, %v10428_v17  ;;  %v10255_v19 = vunpack.i.l.bf16 %v7399_v39  ;;  %v10429_v10 = vunpack.i.l.bf16 %v7261_v23 }
 0x415   :  { %1911 = vmatpush.msrb.mxu3 %v1411_v36  ;;  %v1334_v50 = vsel %vm119_vm6, %v10427_v49, %v4970_v18  ;;  %2127 = vmatpush.msra.mxu2 %v1718_v8  ;;  %v1644_v47 = vsel %vm435_vm2, %v5265_v22, %v5266_v2  ;;  %v5211_v52 = vunpack.i.h.bf16 %v7513_v27  ;;  %v5136_v18 = vunpack.i.h.bf16 %v7372_v15 }
 0x416   :  { %1852 = vmatpush.msrb.mxu0 %v1334_v50  ;;  %1872 = vmatpush.msrb.mxu1 %v1335_v3  ;;  %v1337_v45 = vsel %vm119_vm6, %v10429_v10, %v4976_v48  ;;  %v10254_v58 = vunpack.i.h.bf16 %v7401_v42  ;;  %v10430_v36 = vunpack.i.h.bf16 %v7564_v5  ;;  %v10253_v49 = vunpack.i.l.bf16 %v7343_v33 }
 0x417   :  { %1912 = vmatpush.msrb.mxu3 %v1337_v45  ;;  %2128 = vmatpush.msra.mxu2 %v1644_v47  ;;  %v10431_v50 = vunpack.i.l.bf16 %v7414_v62  ;;  %v10432_v3 = vunpack.i.h.bf16 %v7414_v62  ;;  %v5115_v5 = vunpack.i.l.bf16 %v7422_v9  ;;  %v1708_v62 = vsel %vm514_vm1, %v5181_v61, %v5210_v51 }
 0x418   :  { %1853 = vmatpush.msrb.mxu0 %v7122_v25  ;;  %1873 = vmatpush.msrb.mxu1 %v7163_v59  ;;  %v1782_v8 = vsel %vm593_vm0, %v10430_v36, %v5200_v30  ;;  %v5050_v59 = vunpack.i.l.bf16 %v7374_v4  ;;  %v7767_v10 = vpop.permute.xlu0 %5213  ;;  %v10433_v47 = vunpack.i.l.bf16 %v7477_v63  ;;  %v5005_v56 = vunpack.i.l.bf16 %v7296_v46 }
 0x419   :  { %1913 = vmatpush.msrb.mxu3 %v7113_v12  ;;  %v1783_v17 = vsel %vm593_vm0, %v5200_v30, %v10431_v50  ;;  %v1785_v25 = vsel %vm593_vm0, %v10432_v3, %v5201_v7  ;;  %v1570_v12 = vsel %vm356_vm3, %v5136_v18, %v10255_v19  ;;  %v5216_v30 = vunpack.i.h.bf16 %v7767_v10  ;;  %4494 = vmatmul.msk.f32.vlgmr.msrb.gmra.mxu0 %vm633_vm7, %v7473_v20 }
 0x41a   :  { %1926 = vmatpush.msra.mxu0 %v1782_v8  ;;  %1946 = vmatpush.msra.mxu1 %v1783_v17  ;;  %v5215_v45 = vunpack.i.l.bf16 %v7767_v10  ;;  %v1709_v36 = vsel %vm514_vm1, %v5210_v51, %v10433_v47  ;;  %v10434_v8 = vunpack.i.h.bf16 %v7477_v63  ;;  %v5046_v61 = vunpack.i.h.bf16 %v7330_v60  ;;  %v10435_v17 = vld [vmem:[#allocation20_spill] sm:$0xff] }
 0x41b   :  { %1986 = vmatpush.msra.mxu3 %v1785_v25  ;;  %2129 = vmatpush.msra.mxu2 %v1570_v12  ;;  %v5121_v3 = vunpack.i.h.bf16 %v10435_v17  ;;  %v1496_v51 = vsel %vm277_vm4, %v10254_v58, %v10253_v49  ;;  %v10436_v25 = vld [vmem:[#allocation7_spill] sm:$0xff]  ;;  %v10440_v49 = vld [vmem:[#allocation18_spill] sm:$0xff]  ;;  %v5035_v10 = vunpack.i.l.bf16 %v7367_v35  ;;  %v5090_v34 = vunpack.i.l.bf16 %v7401_v42 }
 0x41c   :  { %1927 = vmatpush.msra.mxu0 %v1708_v62  ;;  %v1711_v50 = vsel %vm514_vm1, %v10434_v8, %v5211_v52  ;;  %1947 = vmatpush.msra.mxu1 %v1709_v36  ;;  %v5070_v12 = vunpack.i.l.bf16 %v10436_v25  ;;  %v1634_v63 = vsel %vm435_vm2, %v5186_v29, %v5215_v45  ;;  %v10437_v62 = vld [vmem:[#allocation23_spill] sm:$0xff]  ;;  %v5001_v58 = vunpack.i.h.bf16 %v10440_v49 }
 0x41d   :  { %1987 = vmatpush.msra.mxu3 %v1711_v50  ;;  %2130 = vmatpush.msra.mxu2 %v1496_v51  ;;  %v10438_v47 = vunpack.i.l.bf16 %v10437_v62  ;;  %v10439_v36 = vunpack.i.h.bf16 %v10437_v62  ;;  %v10441_v51 = vld [vmem:[#allocation22_spill] sm:$0xff]  ;;  %v1422_v21 = vsel %vm198_vm5, %v5046_v61, %v5050_v59  ;;  %v5025_v29 = vunpack.i.l.bf16 %v7286_v41 }
 0x41e   :  { %v5076_v19 = vunpack.i.h.bf16 %v10441_v51  ;;  %1928 = vmatpush.msra.mxu0 %v1634_v63  ;;  %v10442_v62 = vunpack.i.h.bf16 %v7422_v9  ;;  %v5031_v63 = vunpack.i.h.bf16 %v7319_v28  ;;  %v1348_v31 = vsel %vm119_vm6, %v5001_v58, %v5005_v56  ;;  %4495 = vmatmul.msk.f32.vlgmr.msrb.gmra.mxu1 %vm633_vm7, %v7473_v20 }
 0x41f   :  { %v1635_v8 = vsel %vm435_vm2, %v5215_v45, %v10438_v47  ;;  %v1637_v50 = vsel %vm435_vm2, %v10439_v36, %v5216_v30  ;;  %2131 = vmatpush.msra.mxu2 %v1422_v21  ;;  %v1560_v45 = vsel %vm356_vm3, %v5111_v43, %v5115_v5  ;;  %v10444_v43 = vld [vmem:[#allocation3_spill] sm:$0xff]  ;;  %4497 = vmatmul.msk.f32.vlgmr.msrb.gmra.mxu3 %vm633_vm7, %v7473_v20  ;;  %v5051_v14 = vunpack.i.h.bf16 %v7374_v4 }
 0x420   :  { %1948 = vmatpush.msra.mxu1 %v1635_v8  ;;  %1988 = vmatpush.msra.mxu3 %v1637_v50  ;;  %v1561_v47 = vsel %vm356_vm3, %v5115_v5, %v10442_v62  ;;  %v10443_v8 = vunpack.i.l.bf16 %v10435_v17  ;;  %v4980_v9 = vunpack.i.l.bf16 %v10444_v43  ;;  %v1486_v5 = vsel %vm277_vm4, %v5066_v40, %v5070_v12 }
 0x421   :  { %1929 = vmatpush.msra.mxu0 %v1560_v45  ;;  %2132 = vmatpush.msra.mxu2 %v1348_v31  ;;  %v10445_v50 = vunpack.i.h.bf16 %v10436_v25  ;;  %v10446_v45 = vld [vmem:[#allocation9_spill] sm:$0xff]  ;;  %v1412_v40 = vsel %vm198_vm5, %v5021_v55, %v5025_v29  ;;  %v10449_v25 = vunpack.i.h.bf16 %v7286_v41  ;;  %v10451_v55 = vunpack.i.h.bf16 %v10444_v43  ;;  %v10453_v43 = vld [vmem:[#allocation15_spill] sm:$0xff] }
 0x422   :  { %1949 = vmatpush.msra.mxu1 %v1561_v47  ;;  %v1563_v36 = vsel %vm356_vm3, %v10443_v8, %v5121_v3  ;;  %v4986_v62 = vunpack.i.h.bf16 %v10446_v45  ;;  %v7842_v47 = vpop.permute.xlu0 %5228  ;;  %v10447_v8 = vunpack.i.l.bf16 %v10441_v51  ;;  %v1338_v13 = vsel %vm119_vm6, %v4976_v48, %v4980_v9 }
 0x423   :  { %1989 = vmatpush.msra.mxu3 %v1563_v36  ;;  %v1487_v21 = vsel %vm277_vm4, %v5070_v12, %v10445_v50  ;;  %1930 = vmatpush.msra.mxu0 %v1486_v5  ;;  %v1413_v12 = vsel %vm198_vm5, %v5025_v29, %v10449_v25  ;;  %v5230_v31 = vunpack.i.l.bf16 %v7842_v47  ;;  %v10450_v5 = vunpack.i.l.bf16 %v7319_v28 }
 0x424   :  { %1950 = vmatpush.msra.mxu1 %v1487_v21  ;;  %v1489_v36 = vsel %vm277_vm4, %v10447_v8, %v5076_v19  ;;  %2133 = vmatpush.msra.mxu2 %v10448_v57  ;;  %v1339_v41 = vsel %vm119_vm6, %v4980_v9, %v10451_v55  ;;  %v5240_v29 = vunpack.i.l.bf16 %v7617_v1  ;;  %v5231_v21 = vunpack.i.h.bf16 %v7842_v47  ;;  %v10454_v9 = vld [vmem:[#allocation8_spill] sm:$0xff]  ;;  %v10455_v57 = vld [vmem:[#allocation5_spill] sm:$0xff] }
 0x425   :  { %1990 = vmatpush.msra.mxu3 %v1489_v36  ;;  %1931 = vmatpush.msra.mxu0 %v1412_v40  ;;  %v1415_v50 = vsel %vm198_vm5, %v10450_v5, %v5031_v63  ;;  %v10452_v8 = vunpack.i.l.bf16 %v10446_v45  ;;  %v5241_v48 = vunpack.i.h.bf16 %v7617_v1  ;;  %v1786_v36 = vsel %vm593_vm0, %v5201_v7, %v5230_v31  ;;  %v10456_v40 = vld [vmem:[#allocation24_spill] sm:$0xff] }
 0x426   :  { %1951 = vmatpush.msra.mxu1 %v1413_v12  ;;  %v10457_v25 = vunpack.i.l.bf16 %v10456_v40  ;;  %v10458_v5 = vunpack.i.h.bf16 %v10456_v40  ;;  %v1712_v7 = vsel %vm514_vm1, %v5211_v52, %v5240_v29  ;;  %4508 = vmatmul.msk.f32.vlgmr.msra.gmra.mxu2 %vm633_vm7, %v7473_v20  ;;  %v4990_v17 = vunpack.i.l.bf16 %v7323_v38 }
 0x427   :  { %1991 = vmatpush.msra.mxu3 %v1415_v50  ;;  %1932 = vmatpush.msra.mxu0 %v1338_v13  ;;  %v1341_v23 = vsel %vm119_vm6, %v10452_v8, %v4986_v62  ;;  %v5125_v13 = vunpack.i.l.bf16 %v7384_v32 }
 0x428   :  { %1952 = vmatpush.msra.mxu1 %v1339_v41  ;;  %v1787_v12 = vsel %vm593_vm0, %v5230_v31, %v10457_v25  ;;  %v1789_v50 = vsel %vm593_vm0, %v10458_v5, %v5231_v21  ;;  %v10459_v41 = vld [vmem:[#allocation26_spill] sm:$0xff]  ;;  %v5080_v25 = vunpack.i.l.bf16 %v7332_v6  ;;  %v1342_v28 = vsel %vm119_vm6, %v4986_v62, %v4990_v17 }
 0x429   :  { %1992 = vmatpush.msra.mxu3 %v1341_v23  ;;  %1933 = vmatpush.msra.mxu0 %v10453_v43  ;;  %v10460_v8 = vunpack.i.l.bf16 %v10459_v41  ;;  %v5131_v43 = vunpack.i.h.bf16 %v7450_v16  ;;  %v10461_v27 = vunpack.i.h.bf16 %v10459_v41  ;;  %v10466_v41 = vunpack.i.h.bf16 %v7332_v6 }
 0x42a   :  { %1953 = vmatpush.msra.mxu1 %v10454_v9  ;;  %v7896_v11 = vpop.permute.xlu0 %5243  ;;  %4498 = vmatmul.msk.f32.vlgmr.msra.gmra.mxu0 %vm633_vm7, %v7473_v20  ;;  %v10469_v6 = vunpack.i.l.bf16 %v7298_v0 }
 0x42b   :  { %1993 = vmatpush.msra.mxu3 %v10455_v57  ;;  %2006 = vmatpush.msrb.mxu0 %v1786_v36  ;;  %v5246_v31 = vunpack.i.h.bf16 %v7896_v11  ;;  %v5245_v55 = vunpack.i.l.bf16 %v7896_v11  ;;  %v1713_v23 = vsel %vm514_vm1, %v5240_v29, %v10460_v8  ;;  %v1715_v52 = vsel %vm514_vm1, %v10461_v27, %v5241_v48 }
 0x42c   :  { %2026 = vmatpush.msrb.mxu1 %v1787_v12  ;;  %v10462_v36 = vunpack.i.l.bf16 %v7524_v53  ;;  %v10463_v57 = vunpack.i.h.bf16 %v7524_v53  ;;  %v5086_v12 = vunpack.i.h.bf16 %v7363_v44  ;;  %v10464_v53 = vunpack.i.h.bf16 %v7384_v32  ;;  %4501 = vmatmul.msk.f32.vlgmr.msra.gmra.mxu3 %vm633_vm7, %v7473_v20 }
 0x42d   :  { %2066 = vmatpush.msrb.mxu3 %v1789_v50  ;;  %2007 = vmatpush.msrb.mxu0 %v1712_v7  ;;  %v1638_v9 = vsel %vm435_vm2, %v5216_v30, %v5245_v55  ;;  %v1564_v30 = vsel %vm356_vm3, %v5121_v3, %v5125_v13  ;;  %v5041_v50 = vunpack.i.h.bf16 %v7298_v0  ;;  %v10465_v7 = vunpack.i.l.bf16 %v7450_v16 }
 0x42e   :  { %2027 = vmatpush.msrb.mxu1 %v1713_v23  ;;  %v1639_v29 = vsel %vm435_vm2, %v5245_v55, %v10462_v36  ;;  %v1641_v40 = vsel %vm435_vm2, %v10463_v57, %v5246_v31  ;;  %v1565_v5 = vsel %vm356_vm3, %v5125_v13, %v10464_v53  ;;  %v1490_v32 = vsel %vm277_vm4, %v5076_v19, %v5080_v25  ;;  %v7973_v36 = vpop.permute.xlu1 %5268 }
 0x42f   :  { %2067 = vmatpush.msrb.mxu3 %v1715_v52  ;;  %4499 = vmatmul.msk.f32.vlgmr.msra.gmra.mxu1 %vm633_vm7, %v7473_v20  ;;  %v1567_v55 = vsel %vm356_vm3, %v10465_v7, %v5131_v43  ;;  %v4996_v3 = vunpack.i.h.bf16 %v7334_v37  ;;  %v1491_v8 = vsel %vm277_vm4, %v5080_v25, %v10466_v41  ;;  %v10467_v23 = vunpack.i.l.bf16 %v7363_v44 }
 0x430   :  { %2008 = vmatpush.msrb.mxu0 %v1638_v9  ;;  %2028 = vmatpush.msrb.mxu1 %v1639_v29  ;;  %v1416_v19 = vsel %vm198_vm5, %v5031_v63, %v5035_v10  ;;  %v10468_v27 = vunpack.i.h.bf16 %v7367_v35  ;;  %v1419_v9 = vsel %vm198_vm5, %v10469_v6, %v5041_v50  ;;  %v10470_v35 = vunpack.i.h.bf16 %v7323_v38  ;;  %v10474_v38 = vld [vmem:[#allocation13_spill] sm:$0xff] }
 0x431   :  { %2068 = vmatpush.msrb.mxu3 %v1641_v40  ;;  %v1493_v51 = vsel %vm277_vm4, %v10467_v23, %v5086_v12  ;;  %v10471_v57 = vunpack.i.l.bf16 %v7334_v37  ;;  %v5271_v45 = vunpack.i.h.bf16 %v7973_v36  ;;  %v5270_v62 = vunpack.i.l.bf16 %v7973_v36  ;;  %v10482_v37 = vld [vmem:[#allocation6_spill] sm:$0xff] }
 0x432   :  { %2009 = vmatpush.msrb.mxu0 %v1564_v30  ;;  %2029 = vmatpush.msrb.mxu1 %v1565_v5  ;;  %v7952_v13 = vpop.permute.xlu0 %5258  ;;  %v1417_v52 = vsel %vm198_vm5, %v5035_v10, %v10468_v27  ;;  %v1343_v29 = vsel %vm119_vm6, %v4990_v17, %v10470_v35  ;;  %v10472_v10 = vld [vmem:[#allocation19_spill] sm:$0xff]  ;;  %v10473_v30 = vld [vmem:[#allocation12_spill] sm:$0xff]  ;;  %v10475_v5 = vunpack.i.l.bf16 %v7581_v26  ;;  %v10476_v17 = vunpack.i.h.bf16 %v7581_v26  ;;  %v10486_v35 = vld [vmem:[#allocation10_spill] sm:$0xff] }
 0x433   :  { %2069 = vmatpush.msrb.mxu3 %v1567_v55  ;;  %v5260_v63 = vunpack.i.l.bf16 %v7952_v13  ;;  %v1345_v40 = vsel %vm119_vm6, %v10471_v57, %v4996_v3  ;;  %v5261_v25 = vunpack.i.h.bf16 %v7952_v13  ;;  %v1717_v26 = vsel %vm514_vm1, %v5270_v62, %v5255_v54  ;;  %v10484_v13 = vld [vmem:[#allocation21_spill] sm:$0xff]  ;;  %v8108_v57 = vld [vmem:[%s10172_s4 + $0xa0] sm:$0xff] }
 0x434   :  { %2010 = vmatpush.msrb.mxu0 %v1490_v32  ;;  %2030 = vmatpush.msrb.mxu1 %v1491_v8  ;;  %v1716_v8 = vsel %vm514_vm1, %v5241_v48, %v5270_v62  ;;  %v1719_v23 = vsel %vm514_vm1, %v5256_v24, %v5271_v45  ;;  %v5096_v24 = vunpack.i.h.bf16 %v7343_v33  ;;  %v5000_v27 = vunpack.i.l.bf16 %v10440_v49 }
 0x435   :  { %2070 = vmatpush.msrb.mxu3 %v1493_v51  ;;  %v1790_v53 = vsel %vm593_vm0, %v5231_v21, %v5260_v63  ;;  %v1791_v7 = vsel %vm593_vm0, %v5260_v63, %v10475_v5  ;;  %v1793_v32 = vsel %vm593_vm0, %v10476_v17, %v5261_v25  ;;  %v5135_v21 = vunpack.i.l.bf16 %v7372_v15 }
 0x436   :  { %2011 = vmatpush.msrb.mxu0 %v1416_v19  ;;  %2031 = vmatpush.msrb.mxu1 %v1417_v52  ;;  %v5141_v51 = vunpack.i.h.bf16 %v7399_v39  ;;  %v5045_v19 = vunpack.i.l.bf16 %v7330_v60  ;;  %v1494_v16 = vsel %vm277_vm4, %v5086_v12, %v5090_v34  ;;  %v10479_v52 = vunpack.i.l.bf16 %v7343_v33  ;;  %v1702_v4 = vpop.permute.xlu1 %1701  ;;  %v10480_v12 = vld [vmem:[#allocation11_spill] sm:$0xff] }
 0x437   :  { %2071 = vmatpush.msrb.mxu3 %v1419_v9  ;;  %v1568_v11 = vsel %vm356_vm3, %v5131_v43, %v5135_v21  ;;  %v10478_v43 = vunpack.i.h.bf16 %v7401_v42  ;;  %v1423_v42 = vsel %vm198_vm5, %v5050_v59, %v5051_v14  ;;  %v1346_v33 = vsel %vm119_vm6, %v4996_v3, %v5000_v27  ;;  %v10481_v59 = vld [vmem:[#allocation14_spill] sm:$0xff] }
 0x438   :  { %2012 = vmatpush.msrb.mxu0 %v1342_v28  ;;  %2032 = vmatpush.msrb.mxu1 %v1343_v29  ;;  %v1420_v6 = vsel %vm198_vm5, %v5041_v50, %v5045_v19  ;;  %v1421_v44 = vsel %vm198_vm5, %v5045_v19, %v5046_v61  ;;  %v1347_v0 = vsel %vm119_vm6, %v5000_v27, %v5001_v58  ;;  %v1776_v61 = vpop.permute.xlu2 %1775  ;;  %v10483_v50 = vld [vmem:[#allocation25_spill] sm:$0xff]  ;;  %v10487_v29 = vld [vmem:[#allocation16_spill] sm:$0xff] }
 0x439   :  { %2072 = vmatpush.msrb.mxu3 %v1345_v40  ;;  %v1495_v15 = vsel %vm277_vm4, %v5090_v34, %v10478_v43  ;;  %v1794_v58 = vsel %vm593_vm0, %v5261_v25, %v1776_v61  ;;  %v1572_v3 = vsel %vm356_vm3, %v5141_v51, %v10483_v50  ;;  %v1498_v9 = vsel %vm277_vm4, %v5096_v24, %v10484_v13  ;;  %v10485_v28 = vld [vmem:[#allocation17_spill] sm:$0xff]  ;;  %v8115_v25 = vld [vmem:[%s10172_s4 + $0xa8] sm:$0xff] }
 0x43a   :  { %2013 = vmatpush.msrb.mxu0 %v10472_v10  ;;  %2033 = vmatpush.msrb.mxu1 %v10473_v30  ;;  %v8003_v55 = vpop.permute.xlu0 %5273  ;;  %v1424_v63 = vsel %vm198_vm5, %v5051_v14, %v10485_v28  ;;  %v8126_v10 = vld [vmem:[%s10172_s4 + $0xb0] sm:$0xff] }
 0x43b   :  { %2073 = vmatpush.msrb.mxu3 %v10474_v38  ;;  %4502 = vmatmul.msk.f32.vlgmr.msrb.gmra.mxu0 %vm633_vm7, %v7473_v20  ;;  %v5276_v41 = vunpack.i.h.bf16 %v8003_v55  ;;  %v5275_v47 = vunpack.i.l.bf16 %v8003_v55  ;;  %v8137_v55 = vld [vmem:[%s10172_s4 + $0xb8] sm:$0xff] }
 0x43c   :  { %4505 = vmatmul.msk.f32.vlgmr.msrb.gmra.mxu3 %vm633_vm7, %v7473_v20  ;;  %2086 = vmatpush.msra.mxu0 %v1790_v53 }
 0x43d   :  { %2106 = vmatpush.msra.mxu1 %v1791_v7  ;;  %2146 = vmatpush.msra.mxu3 %v1793_v32  ;;  %v1642_v1 = vsel %vm435_vm2, %v5246_v31, %v5275_v47  ;;  %v1643_v48 = vsel %vm435_vm2, %v5275_v47, %v5265_v22  ;;  %v1645_v54 = vsel %vm435_vm2, %v5266_v2, %v5276_v41  ;;  %v10477_v2 = vunpack.i.l.bf16 %v7399_v39 }
 0x43e   :  { %4503 = vmatmul.msk.f32.vlgmr.msrb.gmra.mxu1 %vm633_vm7, %v7473_v20  ;;  %2087 = vmatpush.msra.mxu0 %v1716_v8  ;;  %v1569_v22 = vsel %vm356_vm3, %v5135_v21, %v5136_v18  ;;  %v5006_v18 = vunpack.i.h.bf16 %v7296_v46  ;;  %v1497_v39 = vsel %vm277_vm4, %v10479_v52, %v5096_v24  ;;  %v1720_v46 = vsel %vm514_vm1, %v5271_v45, %v1702_v4 }
 0x43f   :  { %2107 = vmatpush.msra.mxu1 %v1717_v26  ;;  %2147 = vmatpush.msra.mxu3 %v1719_v23  ;;  %v1571_v31 = vsel %vm356_vm3, %v10477_v2, %v5141_v51  ;;  %v8146_v26 = vld [vmem:[%s10172_s4 + $0xc8] sm:$0xff] }
 0x440   :  { %2088 = vmatpush.msra.mxu0 %v1642_v1  ;;  %v1349_v60 = vsel %vm119_vm6, %v5005_v56, %v5006_v18  ;;  %v1350_v36 = vsel %vm119_vm6, %v5006_v18, %v10486_v35  ;;  %v8151_v1 = vld [vmem:[%s10172_s4 + $0xc0] sm:$0xff] }
 0x441   :  { %2108 = vmatpush.msra.mxu1 %v1643_v48  ;;  %2148 = vmatpush.msra.mxu3 %v1645_v54  ;;  %v8158_v54 = vld [vmem:[%s10172_s4 + $0xd0] sm:$0xff] }
 0x442   :  { %2089 = vmatpush.msra.mxu0 %v1568_v11  ;;  %v1628_v49 = vpop.permute.xlu0 %1627 }
 0x443   :  { %2109 = vmatpush.msra.mxu1 %v1569_v22  ;;  %2149 = vmatpush.msra.mxu3 %v1571_v31  ;;  %v1646_v56 = vsel %vm435_vm2, %v5276_v41, %v1628_v49  ;;  %v8169_v22 = vld [vmem:[%s10172_s4 + $0xd8] sm:$0xff] }
 0x444   :  { %2090 = vmatpush.msra.mxu0 %v1494_v16 }
 0x445   :  { %2110 = vmatpush.msra.mxu1 %v1495_v15  ;;  %2150 = vmatpush.msra.mxu3 %v1497_v39 }
 0x446   :  { %2091 = vmatpush.msra.mxu0 %v1420_v6  ;;  %v8180_v6 = vld [vmem:[%s10172_s4 + $0xe0] sm:$0xff] }
 0x447   :  { %2111 = vmatpush.msra.mxu1 %v1421_v44  ;;  %2151 = vmatpush.msra.mxu3 %v1423_v42 }
 0x448   :  { %2092 = vmatpush.msra.mxu0 %v1346_v33 }
 0x449   :  { %2112 = vmatpush.msra.mxu1 %v1347_v0  ;;  %2152 = vmatpush.msra.mxu3 %v1349_v60  ;;  %v8187_v60 = vld [vmem:[%s10172_s4 + $0xe8] sm:$0xff] }
 0x44a   :  { %2093 = vmatpush.msra.mxu0 %v10480_v12 }
 0x44b   :  { %2113 = vmatpush.msra.mxu1 %v10481_v59  ;;  %2153 = vmatpush.msra.mxu3 %v10482_v37 }
 0x44c   :  { %4506 = vmatmul.msk.f32.vlgmr.msra.gmra.mxu0 %vm633_vm7, %v7473_v20  ;;  %4509 = vmatmul.msk.f32.vlgmr.msra.gmra.mxu3 %vm633_vm7, %v7473_v20 }
 0x44d   :  { %2166 = vmatpush.msrb.mxu0 %v1794_v58  ;;  %4507 = vmatmul.msk.f32.vlgmr.msra.gmra.mxu1 %vm633_vm7, %v7473_v20 }
 0x44f   :  { %2167 = vmatpush.msrb.mxu0 %v1720_v46 }
 0x451   :  { %2168 = vmatpush.msrb.mxu0 %v1646_v56  ;;  %v8200_v56 = vld [vmem:[%s10172_s4 + $0xf0] sm:$0xff] }
 0x453   :  { %2169 = vmatpush.msrb.mxu0 %v1572_v3 }
 0x455   :  { %2170 = vmatpush.msrb.mxu0 %v1498_v9 }
 0x457   :  { %2171 = vmatpush.msrb.mxu0 %v1424_v63  ;;  %v8209_v63 = vld [vmem:[%s10172_s4 + $0xf8] sm:$0xff] }
 0x459   :  { %2172 = vmatpush.msrb.mxu0 %v1350_v36 }
 0x45b   :  { %2173 = vmatpush.msrb.mxu0 %v10487_v29 }
 0x45c   :  { %4510 = vmatmul.msk.f32.vlgmr.msrb.gmra.mxu0 %vm633_vm7, %v7473_v20 }
 0x473   :  { %v8132_v7 = vpop.f32.mrf.mxu2 }
 0x474   :  { %v2200_v47 = vmul.f32 %v8137_v55, %v8132_v7 }
 0x476   :  { %v2238_v51 = vmul.f32 %v2200_v47, %v2200_v47 }
 0x483   :  { %v8164_v11 = vpop.f32.mrf.mxu2 }
 0x484   :  { %v2204_v15 = vmul.f32 %v8169_v22, %v8164_v11 }
 0x486   :  { %v2242_v33 = vmul.f32 %v2204_v15, %v2204_v15 }
 0x48c   :  { %v8117_v45 = vpop.f32.mrf.mxu3 }
 0x48d   :  { %v2197_v62 = vmul.f32 %v8108_v57, %v8117_v45 }
 0x48f   :  { %v2235_v30 = vmul.f32 %v2197_v62, %v2197_v62 }
 0x496   :  { %v8110_v40 = vpop.f32.mrf.mxu0  ;;  %v8204_v28 = vpop.f32.mrf.mxu2 }
 0x497   :  { %v2198_v20 = vmul.f32 %v8115_v25, %v8110_v40 }
 0x499   :  { %v2236_v38 = vmul.f32 %v2198_v20, %v2198_v20  ;;  %v2215_v17 = vadd.f32 %v2198_v20, %v2197_v62  ;;  %v2208_v62 = vmul.f32 %v8209_v63, %v8204_v28 }
 0x49b   :  { %v8128_v53 = vpop.f32.mrf.mxu1  ;;  %v2253_v32 = vadd.f32 %v2236_v38, %v2235_v30  ;;  %v8218_v30 = vld [vmem:[%s10172_s4 + $0x100] sm:$0xff] }
 0x49c   :  { %v2199_v5 = vmul.f32 %v8126_v10, %v8128_v53 }
 0x49e   :  { %v2237_v41 = vmul.f32 %v2199_v5, %v2199_v5  ;;  %v2216_v21 = vadd.f32 %v2215_v17, %v2199_v5  ;;  %v2246_v17 = vmul.f32 %v2208_v62, %v2208_v62 }
 0x4a0   :  { %v2254_v23 = vadd.f32 %v2253_v32, %v2237_v41  ;;  %v2217_v34 = vadd.f32 %v2216_v21, %v2200_v47  ;;  %v8225_v41 = vld [vmem:[%s10172_s4 + $0x108] sm:$0xff] }
 0x4a2   :  { %v8162_v19 = vpop.f32.mrf.mxu3  ;;  %v2255_v14 = vadd.f32 %v2254_v23, %v2238_v51  ;;  %v8232_v23 = vld [vmem:[%s10172_s4 + $0x110] sm:$0xff] }
 0x4a3   :  { %v2201_v2 = vmul.f32 %v8151_v1, %v8162_v19 }
 0x4a5   :  { %v2218_v27 = vadd.f32 %v2217_v34, %v2201_v2  ;;  %v2239_v16 = vmul.f32 %v2201_v2, %v2201_v2 }
 0x4a7   :  { %v8141_v8 = vpop.f32.mrf.mxu0  ;;  %v2256_v18 = vadd.f32 %v2255_v14, %v2239_v16 }
 0x4a8   :  { %v2202_v24 = vmul.f32 %v8146_v26, %v8141_v8 }
 0x4a9   :  { %v8240_v16 = vpop.f32.mrf.mxu2 }
 0x4aa   :  { %v2240_v43 = vmul.f32 %v2202_v24, %v2202_v24  ;;  %v2219_v52 = vadd.f32 %v2218_v27, %v2202_v24 }
 0x4ac   :  { %v8153_v48 = vpop.f32.mrf.mxu1  ;;  %v2257_v44 = vadd.f32 %v2256_v18, %v2240_v43  ;;  %v8245_v43 = vld [vmem:[%s10172_s4 + $0x118] sm:$0xff] }
 0x4ad   :  { %v2203_v31 = vmul.f32 %v8158_v54, %v8153_v48 }
 0x4af   :  { %v2241_v39 = vmul.f32 %v2203_v31, %v2203_v31  ;;  %v2220_v42 = vadd.f32 %v2219_v52, %v2203_v31  ;;  %v8182_v0 = vpop.f32.mrf.mxu3 }
 0x4b0   :  { %v2205_v12 = vmul.f32 %v8180_v6, %v8182_v0 }
 0x4b1   :  { %v2258_v61 = vadd.f32 %v2257_v44, %v2241_v39  ;;  %v2221_v4 = vadd.f32 %v2220_v42, %v2204_v15  ;;  %v2212_v44 = vmul.f32 %v8245_v43, %v8240_v16 }
 0x4b2   :  { %v2243_v58 = vmul.f32 %v2205_v12, %v2205_v12 }
 0x4b3   :  { %v2259_v37 = vadd.f32 %v2258_v61, %v2242_v33  ;;  %v2222_v50 = vadd.f32 %v2221_v4, %v2205_v12  ;;  %v8252_v33 = vld [vmem:[%s10172_s4 + $0x120] sm:$0xff]  ;;  %v2250_v12 = vmul.f32 %v2212_v44, %v2212_v44 }
 0x4b5   :  { %v2260_v3 = vadd.f32 %v2259_v37, %v2243_v58 }
 0x4b8   :  { %v8191_v59 = vpop.f32.mrf.mxu0 }
 0x4b9   :  { %v2206_v49 = vmul.f32 %v8187_v60, %v8191_v59 }
 0x4bb   :  { %v8195_v46 = vpop.f32.mrf.mxu1  ;;  %v2244_v13 = vmul.f32 %v2206_v49, %v2206_v49  ;;  %v2223_v35 = vadd.f32 %v2222_v50, %v2206_v49  ;;  %v8258_v49 = vld [vmem:[%s10172_s4 + $0x128] sm:$0xff] }
 0x4bc   :  { %v2207_v9 = vmul.f32 %v8200_v56, %v8195_v46 }
 0x4bd   :  { %v2261_v36 = vadd.f32 %v2260_v3, %v2244_v13 }
 0x4be   :  { %v2245_v29 = vmul.f32 %v2207_v9, %v2207_v9  ;;  %v2224_v38 = vadd.f32 %v2223_v35, %v2207_v9 }
 0x4bf   :  { %v8213_v20 = vpop.f32.mrf.mxu3 }
 0x4c0   :  { %v2262_v5 = vadd.f32 %v2261_v36, %v2245_v29  ;;  %v2209_v32 = vmul.f32 %v8218_v30, %v8213_v20  ;;  %v2225_v47 = vadd.f32 %v2224_v38, %v2208_v62 }
 0x4c2   :  { %v2263_v51 = vadd.f32 %v2262_v5, %v2246_v17  ;;  %v2247_v34 = vmul.f32 %v2209_v32, %v2209_v32  ;;  %v2226_v2 = vadd.f32 %v2225_v47, %v2209_v32 }
 0x4c4   :  { %v2264_v15 = vadd.f32 %v2263_v51, %v2247_v34 }
 0x4c9   :  { %v8227_v21 = vpop.f32.mrf.mxu0 }
 0x4ca   :  { %v2210_v24 = vmul.f32 %v8225_v41, %v8227_v21  ;;  %v8236_v14 = vpop.f32.mrf.mxu1 }
 0x4cb   :  { %v2211_v27 = vmul.f32 %v8232_v23, %v8236_v14 }
 0x4cc   :  { %v2248_v31 = vmul.f32 %v2210_v24, %v2210_v24  ;;  %v2227_v18 = vadd.f32 %v2226_v2, %v2210_v24 }
 0x4cd   :  { %v2249_v39 = vmul.f32 %v2211_v27, %v2211_v27 }
 0x4ce   :  { %v2265_v52 = vadd.f32 %v2264_v15, %v2248_v31  ;;  %v2228_v61 = vadd.f32 %v2227_v18, %v2211_v27 }
 0x4cf   :  { %v2155_v42 = vpop.f32.mrf.mxu3 }
 0x4d0   :  { %v2266_v4 = vadd.f32 %v2265_v52, %v2249_v39  ;;  %v2213_v37 = vmul.f32 %v8252_v33, %v2155_v42  ;;  %v2229_v58 = vadd.f32 %v2228_v61, %v2212_v44  ;;  %v4529_v39 = vld [vmem:[%s10173_s2 + $0x8] sm:$0xff] }
 0x4d2   :  { %v2251_v50 = vmul.f32 %v2213_v37, %v2213_v37  ;;  %v2267_v3 = vadd.f32 %v2266_v4, %v2250_v12  ;;  %v2230_v35 = vadd.f32 %v2229_v58, %v2213_v37  ;;  %v4530_v12 = vld [vmem:[%s10174_s3 + $0x8] sm:$0xff] }
 0x4d4   :  { %v2268_v62 = vadd.f32 %v2267_v3, %v2251_v50 }
 0x4d9   :  { %v2175_v13 = vpop.f32.mrf.mxu0 }
 0x4da   :  { %v2214_v9 = vmul.f32 %v8258_v49, %v2175_v13 }
 0x4dc   :  { %v2231_v36 = vadd.f32 %v2230_v35, %v2214_v9  ;;  %v2252_v29 = vmul.f32 %v2214_v9, %v2214_v9 }
 0x4de   :  { %2232 = vadd.xlane.f32.xlu2 %v2231_v36  ;;  %v2269_v38 = vadd.f32 %v2268_v62, %v2252_v29 }
 0x4e0   :  { %2270 = vadd.xlane.f32.xlu1 %v2269_v38 }
 0x551   :  { %v2233_v5 = vpop.xlane.xlu2 %2232 }
 0x552   :  { %v2234_v17 = vmul.f32 0.0009765625, %v2233_v5 }
 0x553   :  { %v2271_v32 = vpop.xlane.xlu1 %2270 }
 0x554   :  { %v2273_v47 = vmul.f32 %v2234_v17, %v2234_v17  ;;  %v2272_v51 = vmul.f32 0.0009765625, %v2271_v32 }
 0x556   :  { %v2274_v34 = vsub.f32 %v2272_v51, %v2273_v47 }
 0x558   :  { %v2277_v24 = vadd.f32 1e-05, %v2274_v34 }
 0x55a   :  { %5875 = vrsqrt.f32 %v2277_v24  ;;  %vm2284_vm12 = vweird.f32 %v2277_v24 }
 0x560   :  { %v5876_v2 = vpop.eup %5875 }
 0x561   :  { %v2279_v31 = vmul.f32 %v5876_v2, %v2277_v24  ;;  %vm2285_vm11 = vweird.f32 %v5876_v2 }
 0x562   :  { %vm2286_vm13 = vmor %vm2284_vm12, %vm2285_vm11 }
 0x563   :  { %v2280_v27 = vmul.f32 %v5876_v2, %v2279_v31 }
 0x565   :  { %v2281_v15 = vmul.f32 0.5, %v2280_v27 }
 0x567   :  { %v2282_v18 = vsub.f32 1.5, %v2281_v15 }
 0x569   :  { %v2283_v52 = vmul.f32 %v5876_v2, %v2282_v18 }
 0x56b   :  { %v2287_v44 = vsel %vm2286_vm13, %v5876_v2, %v2283_v52 }
 0x56c   :  { %v2288_v61 = vmul.f32 %v4529_v39, %v2287_v44 }
 0x56e   :  { %2295 = vperm.xlu0 %4961, %v2288_v61   ;;  %v2291_v4 = vmul.f32 %v2288_v61, %v2234_v17 }
 0x570   :  { %v2292_v37 = vsub.f32 %v4530_v12, %v2291_v4 }
 0x576   :  { %2318 = vperm.xlu0 %4961, %v2292_v37  }
 0x5e0   :  { %v8267_v58 = vpop.permute.xlu0 %2295 }
 0x5e1   :  { %v2306_v50 = vmul.f32 %v8267_v58, %v8182_v0  ;;  %v2307_v3 = vmul.f32 %v8267_v58, %v8191_v59  ;;  %v2304_v9 = vmul.f32 %v8267_v58, %v8153_v48  ;;  %v2305_v35 = vmul.f32 %v8267_v58, %v8164_v11 }
 0x5e2   :  { %v2298_v29 = vmul.f32 %v8267_v58, %v8117_v45  ;;  %v2299_v62 = vmul.f32 %v8267_v58, %v8110_v40  ;;  %v2314_v38 = vmul.f32 %v8267_v58, %v2155_v42  ;;  %v2315_v0 = vmul.f32 %v8267_v58, %v2175_v13 }
 0x5e3   :  { %v2300_v2 = vmul.f32 %v8267_v58, %v8128_v53  ;;  %v2301_v31 = vmul.f32 %v8267_v58, %v8132_v7  ;;  %v2302_v4 = vmul.f32 %v8267_v58, %v8162_v19  ;;  %v2303_v12 = vmul.f32 %v8267_v58, %v8141_v8 }
 0x5e8   :  { %v8277_v36 = vpop.permute.xlu0 %2318 }
 0x5e9   :  { %v2329_v59 = vadd.f32 %v8277_v36, %v2306_v50  ;;  %v2330_v5 = vadd.f32 %v8277_v36, %v2307_v3  ;;  %v2327_v48 = vadd.f32 %v8277_v36, %v2304_v9  ;;  %v2328_v11 = vadd.f32 %v8277_v36, %v2305_v35 }
 0x5ea   :  { %v2321_v17 = vadd.f32 %v8277_v36, %v2298_v29  ;;  %v2322_v32 = vadd.f32 %v8277_v36, %v2299_v62  ;;  %v2337_v45 = vadd.f32 %v8277_v36, %v2314_v38  ;;  %v2338_v40 = vadd.f32 %v8277_v36, %v2315_v0 }
 0x5eb   :  { %v2347_v47 = vmax.f32 %v2329_v59, 0.0  ;;  %v2348_v42 = vmax.f32 %v2330_v5, 0.0  ;;  %v2345_v51 = vmax.f32 %v2327_v48, 0.0  ;;  %v2346_v13 = vmax.f32 %v2328_v11, 0.0 }
 0x5ec   :  { %v2339_v34 = vmax.f32 %v2321_v17, 0.0  ;;  %v2340_v24 = vmax.f32 %v2322_v32, 0.0  ;;  %v2355_v44 = vmax.f32 %v2337_v45, 0.0  ;;  %v2356_v7 = vmax.f32 %v2338_v40, 0.0 }
 0x5ed   :  { %v8298_v27 = vmul.f32 %v8180_v6, %v2347_v47  ;;  %v8301_v15 = vmul.f32 %v8187_v60, %v2348_v42  ;;  %v8304_v18 = vmul.f32 %v8158_v54, %v2345_v51  ;;  %v8307_v52 = vmul.f32 %v8169_v22, %v2346_v13 }
 0x5ee   :  { %v8310_v39 = vmul.f32 %v8108_v57, %v2339_v34  ;;  %v8313_v53 = vmul.f32 %v8115_v25, %v2340_v24  ;;  %v2323_v54 = vadd.f32 %v8277_v36, %v2300_v2  ;;  %v2324_v22 = vadd.f32 %v8277_v36, %v2301_v31 }
 0x5ef   :  { %v8317_v6 = vpack.i.bf16 %v8301_v15, %v8298_v27  ;;  %v8321_v60 = vpack.i.bf16 %v8307_v52, %v8304_v18  ;;  %v8337_v37 = vmul.f32 %v8252_v33, %v2355_v44  ;;  %v2374_v50 = vmul.f32 %v8258_v49, %v2356_v7 }
 0x5f0   :  { %v5277_v57 = vpack.i.bf16 %v8313_v53, %v8310_v39  ;;  %v2341_v25 = vmax.f32 %v2323_v54, 0.0  ;;  %v2342_v61 = vmax.f32 %v2324_v22, 0.0  ;;  %v2325_v3 = vadd.f32 %v8277_v36, %v2302_v4 }
 0x5f1   :  { %5298 = vrot.lane.b32.xlu1 %v8317_v6, %s5881_s30  ;;  %5293 = vrot.lane.b32.xlu2 %v8321_v60, %s5881_s30  ;;  %10488 = vst [vmem:[#allocation20_spill] sm:$0xff] %v8337_v37  ;;  %v2326_v9 = vadd.f32 %v8277_v36, %v2303_v12  ;;  %v8349_v19 = vpack.i.bf16 %v2374_v50, %v8337_v37 }
 0x5f2   :  { %5278 = vrot.lane.b32.xlu0 %v5277_v57, %s5881_s30  ;;  %v8343_v35 = vmul.f32 %v8126_v10, %v2341_v25  ;;  %v8346_v29 = vmul.f32 %v8137_v55, %v2342_v61  ;;  %v2343_v8 = vmax.f32 %v2325_v3, 0.0  ;;  %v2308_v49 = vmul.f32 %v8267_v58, %v8195_v46 }
 0x5f3   :  { %v2344_v62 = vmax.f32 %v2326_v9, 0.0  ;;  %v2309_v38 = vmul.f32 %v8267_v58, %v8204_v28  ;;  %v2310_v10 = vmul.f32 %v8267_v58, %v8213_v20  ;;  %v2311_v55 = vmul.f32 %v8267_v58, %v8227_v21 }
 0x5f4   :  { %v5282_v33 = vpack.i.bf16 %v8346_v29, %v8343_v35  ;;  %v2331_v0 = vadd.f32 %v8277_v36, %v2308_v49  ;;  %v8368_v59 = vmul.f32 %v8151_v1, %v2343_v8 }
 0x5f5   :  { %v2332_v46 = vadd.f32 %v8277_v36, %v2309_v38  ;;  %v8371_v28 = vmul.f32 %v8146_v26, %v2344_v62  ;;  %v2333_v5 = vadd.f32 %v8277_v36, %v2310_v10  ;;  %v2334_v48 = vadd.f32 %v8277_v36, %v2311_v55 }
 0x5f6   :  { %v2349_v20 = vmax.f32 %v2331_v0, 0.0 }
 0x5f7   :  { %v5332_v21 = vpack.i.bf16 %v8371_v28, %v8368_v59  ;;  %v2350_v11 = vmax.f32 %v2332_v46, 0.0  ;;  %v2351_v17 = vmax.f32 %v2333_v5, 0.0  ;;  %v2352_v32 = vmax.f32 %v2334_v48, 0.0 }
 0x5f8   :  { %v8382_v26 = vmul.f32 %v8200_v56, %v2349_v20  ;;  %v2312_v56 = vmul.f32 %v8267_v58, %v8236_v14 }
 0x5f9   :  { %5318 = vrot.lane.b32.xlu2 %v8349_v19, %s5881_s30  ;;  %5323 = vrot.lane.b32.xlu1 %v5277_v57, %s5882_s10  ;;  %v8385_v1 = vmul.f32 %v8209_v63, %v2350_v11  ;;  %v8388_v45 = vmul.f32 %v8218_v30, %v2351_v17  ;;  %v8391_v40 = vmul.f32 %v8225_v41, %v2352_v32 }
 0x5fa   :  { %5283 = vrot.lane.b32.xlu0 %v5282_v33, %s5881_s30  ;;  %v2313_v63 = vmul.f32 %v8267_v58, %v8240_v16  ;;  %v2335_v30 = vadd.f32 %v8277_v36, %v2312_v56  ;;  %v5392_v58 = vpack.i.bf16 %v8343_v35, %v8313_v53  ;;  %v5472_v24 = vpack.i.bf16 %v8382_v26, %v8301_v15 }
 0x5fb   :  { %10489 = vst [vmem:[#allocation7_spill] sm:$0xff] %v8385_v1  ;;  %v8395_v47 = vpack.i.bf16 %v8385_v1, %v8382_v26  ;;  %v5352_v42 = vpack.i.bf16 %v8391_v40, %v8388_v45  ;;  %v5482_v31 = vpack.i.bf16 %v8385_v1, %v8298_v27 }
 0x5fc   :  { %10490 = vst [vmem:[#allocation23_spill] sm:$0xff] %v8388_v45  ;;  %v2336_v41 = vadd.f32 %v8277_v36, %v2313_v63  ;;  %v2353_v51 = vmax.f32 %v2335_v30, 0.0  ;;  %v5442_v36 = vpack.i.bf16 %v8307_v52, %v8368_v59 }
 0x5fd   :  { %10491 = vst [vmem:[#allocation18_spill] sm:$0xff] %v8391_v40 }
 0x5fe   :  { %v2354_v13 = vmax.f32 %v2336_v41, 0.0  ;;  %v8415_v34 = vmul.f32 %v8232_v23, %v2353_v51  ;;  %v5412_v23 = vpack.i.bf16 %v8310_v39, %v8346_v29 }
 0x600   :  { %10492 = vst [vmem:[#allocation22_spill] sm:$0xff] %v8415_v34  ;;  %v8418_v14 = vmul.f32 %v8245_v43, %v2354_v13  ;;  %v5437_v43 = vpack.i.bf16 %v8304_v18, %v8371_v28 }
 0x601   :  { %5333 = vrot.lane.b32.xlu2 %v5332_v21, %s5882_s10  ;;  %5338 = vrot.lane.b32.xlu1 %v8321_v60, %s5882_s10 }
 0x602   :  { %5288 = vrot.lane.b32.xlu0 %v5332_v21, %s5881_s30  ;;  %10493 = vst [vmem:[#allocation3_spill] sm:$0xff] %v8418_v14  ;;  %v5312_v16 = vpack.i.bf16 %v8418_v14, %v8415_v34  ;;  %v8495_v4 = vpack.i.bf16 %v8418_v14, %v8388_v45 }
 0x609   :  { %5348 = vrot.lane.b32.xlu2 %v8395_v47, %s5882_s10  ;;  %5353 = vrot.lane.b32.xlu1 %v5352_v42, %s5882_s10 }
 0x60a   :  { %5303 = vrot.lane.b32.xlu0 %v8395_v47, %s5881_s30 }
 0x611   :  { %5363 = vrot.lane.b32.xlu2 %v8349_v19, %s5882_s10  ;;  %5368 = vrot.lane.b32.xlu1 %v5277_v57, %s5883_s11 }
 0x612   :  { %5308 = vrot.lane.b32.xlu0 %v5352_v42, %s5881_s30 }
 0x619   :  { %5378 = vrot.lane.b32.xlu2 %v5332_v21, %s5883_s11  ;;  %5383 = vrot.lane.b32.xlu1 %v8321_v60, %s5883_s11 }
 0x61a   :  { %5313 = vrot.lane.b32.xlu0 %v5312_v16, %s5881_s30 }
 0x621   :  { %5393 = vrot.lane.b32.xlu2 %v5392_v58, %s5887_s15  ;;  %5398 = vrot.lane.b32.xlu1 %v5392_v58, %s5886_s14 }
 0x622   :  { %5328 = vrot.lane.b32.xlu0 %v5282_v33, %s5882_s10 }
 0x629   :  { %5408 = vrot.lane.b32.xlu2 %v5392_v58, %s5885_s13  ;;  %5413 = vrot.lane.b32.xlu1 %v5412_v23, %s5886_s14 }
 0x62a   :  { %5343 = vrot.lane.b32.xlu0 %v8317_v6, %s5882_s10 }
 0x631   :  { %5423 = vrot.lane.b32.xlu2 %v5412_v23, %s5885_s13  ;;  %5428 = vrot.lane.b32.xlu1 %v5412_v23, %s5884_s12 }
 0x632   :  { %5358 = vrot.lane.b32.xlu0 %v5312_v16, %s5882_s10 }
 0x639   :  { %5438 = vrot.lane.b32.xlu2 %v5437_v43, %s5886_s14  ;;  %5443 = vrot.lane.b32.xlu1 %v5442_v36, %s5887_s15 }
 0x63a   :  { %5373 = vrot.lane.b32.xlu0 %v5282_v33, %s5883_s11 }
 0x641   :  { %5453 = vrot.lane.b32.xlu2 %v5442_v36, %s5886_s14  ;;  %5458 = vrot.lane.b32.xlu1 %v5437_v43, %s5884_s12 }
 0x642   :  { %5388 = vrot.lane.b32.xlu0 %v8317_v6, %s5883_s11  ;;  %v8472_v6 = vpack.i.bf16 %v8415_v34, %v8391_v40 }
 0x649   :  { %5468 = vrot.lane.b32.xlu2 %v5442_v36, %s5884_s12  ;;  %5473 = vrot.lane.b32.xlu1 %v5472_v24, %s5887_s15 }
 0x64a   :  { %5403 = vrot.lane.b32.xlu0 %v5412_v23, %s5887_s15 }
 0x64b   :  { %v8456_v2 = vpop.permute.xlu2 %5293 }
 0x64c   :  { %v10264_v22 = vunpack.i.h.bf16 %v8456_v2  ;;  %v10263_v0 = vunpack.i.l.bf16 %v8456_v2 }
 0x651   :  { %5483 = vrot.lane.b32.xlu2 %v5482_v31, %s5887_s15  ;;  %5488 = vrot.lane.b32.xlu1 %v5472_v24, %s5885_s13 }
 0x652   :  { %5418 = vrot.lane.b32.xlu0 %v5392_v58, %s5884_s12 }
 0x653   :  { %v8463_v44 = vpop.permute.xlu2 %5318 }
 0x654   :  { %10494 = vst [vmem:[#allocation9_spill] sm:$0xff] %v8463_v44 }
 0x659   :  { %5498 = vrot.lane.b32.xlu2 %v5472_v24, %s5884_s12  ;;  %5503 = vrot.lane.b32.xlu1 %v5482_v31, %s5885_s13 }
 0x65a   :  { %5433 = vrot.lane.b32.xlu0 %v5437_v43, %s5887_s15 }
 0x65b   :  { %v8468_v7 = vpop.permute.xlu2 %5333 }
 0x65c   :  { %v10268_v38 = vunpack.i.h.bf16 %v8468_v7 }
 0x661   :  { %5513 = vrot.lane.b32.xlu2 %v5482_v31, %s5884_s12  ;;  %5518 = vrot.lane.b32.xlu1 %v8472_v6, %s5887_s15 }
 0x662   :  { %5448 = vrot.lane.b32.xlu0 %v5437_v43, %s5885_s13 }
 0x663   :  { %v8478_v60 = vpop.permute.xlu1 %5298  ;;  %v8480_v54 = vpop.permute.xlu2 %5348 }
 0x664   :  { %v10259_v57 = vunpack.i.l.bf16 %v8478_v60  ;;  %v8484_v25 = vpop.permute.xlu0 %5278  ;;  %v10258_v42 = vunpack.i.h.bf16 %v8480_v54  ;;  %v10260_v51 = vunpack.i.h.bf16 %v8478_v60 }
 0x665   :  { %v10277_v9 = vunpack.i.h.bf16 %v8484_v25 }
 0x666   :  { %v8491_v61 = vsel %vm119_vm6, %v10264_v22, %v10259_v57  ;;  %v10275_v57 = vunpack.i.l.bf16 %v8463_v44 }
 0x669   :  { %5528 = vrot.lane.b32.xlu2 %v8495_v4, %s5887_s15  ;;  %5533 = vrot.lane.b32.xlu1 %v8472_v6, %s5885_s13 }
 0x66a   :  { %5463 = vrot.lane.b32.xlu0 %v5442_v36, %s5885_s13 }
 0x66b   :  { %v8502_v12 = vpop.permute.xlu2 %5363  ;;  %v8504_v50 = vpop.permute.xlu1 %5323 }
 0x66c   :  { %10495 = vst [vmem:[#allocation4_spill] sm:$0xff] %v8502_v12  ;;  %v8506_v3 = vpop.permute.xlu0 %5283 }
 0x66d   :  { %v10271_v8 = vunpack.i.l.bf16 %v8506_v3  ;;  %v10272_v46 = vunpack.i.h.bf16 %v8506_v3 }
 0x66f   :  { %v8515_v62 = vsel %vm119_vm6, %v10277_v9, %v10271_v8 }
 0x671   :  { %5543 = vrot.lane.b32.xlu2 %v8472_v6, %s5884_s12  ;;  %5548 = vrot.lane.b32.xlu1 %v8495_v4, %s5885_s13 }
 0x672   :  { %5478 = vrot.lane.b32.xlu0 %v5472_v24, %s5886_s14 }
 0x673   :  { %v8522_v33 = vpop.permute.xlu2 %5378  ;;  %v8524_v49 = vpop.permute.xlu1 %5338 }
 0x674   :  { %v10267_v10 = vunpack.i.l.bf16 %v8524_v49  ;;  %v8528_v55 = vpop.permute.xlu0 %5288 }
 0x675   :  { %v10266_v5 = vunpack.i.h.bf16 %v8528_v55  ;;  %v10265_v48 = vunpack.i.l.bf16 %v8528_v55 }
 0x676   :  { %v8539_v20 = vsel %vm198_vm5, %v10268_v38, %v10267_v10 }
 0x677   :  { %v8546_v21 = vsel %vm119_vm6, %v10266_v5, %v10263_v0  ;;  %v8553_v11 = vsel %vm119_vm6, %v10272_v46, %v10265_v48 }
 0x679   :  { %5558 = vrot.lane.b32.xlu2 %v8495_v4, %s5884_s12  ;;  %5563 = vrot.lane.b32.xlu1 %v8495_v4, %s5883_s11 }
 0x67a   :  { %5493 = vrot.lane.b32.xlu0 %v5482_v31, %s5886_s14 }
 0x67b   :  { %v8560_v17 = vpop.permute.xlu2 %5393  ;;  %v8562_v32 = vpop.permute.xlu1 %5353 }
 0x67c   :  { %v10278_v56 = vunpack.i.h.bf16 %v8560_v17  ;;  %v10279_v63 = vunpack.i.l.bf16 %v8560_v17  ;;  %v10256_v30 = vunpack.i.l.bf16 %v8562_v32  ;;  %v8568_v41 = vpop.permute.xlu0 %5303  ;;  %v10503_v1 = vunpack.i.l.bf16 %v8560_v17 }
 0x67d   :  { %v10257_v13 = vunpack.i.l.bf16 %v8568_v41  ;;  %v10262_v24 = vunpack.i.h.bf16 %v8568_v41 }
 0x67e   :  { %v2886_v16 = vsel %vm593_vm0, %v10279_v63, %v10278_v56  ;;  %v8582_v58 = vsel %vm198_vm5, %v10258_v42, %v10256_v30  ;;  %v10270_v30 = vunpack.i.h.bf16 %v8522_v33  ;;  %v10295_v56 = vunpack.i.l.bf16 %v8502_v12 }
 0x67f   :  { %2952 = vmatpush.msrb.mxu2 %v2886_v16  ;;  %v8589_v23 = vsel %vm119_vm6, %v10260_v51, %v10257_v13  ;;  %v10290_v63 = vunpack.i.h.bf16 %v8562_v32 }
 0x681   :  { %5573 = vrot.lane.b32.xlu2 %v8349_v19, %s5886_s14  ;;  %5578 = vrot.lane.b32.xlu1 %v8349_v19, %s5885_s13 }
 0x682   :  { %5508 = vrot.lane.b32.xlu0 %v8395_v47, %s5883_s11 }
 0x683   :  { %v8597_v43 = vpop.permute.xlu1 %5368  ;;  %v5409_v5 = vpop.permute.xlu2 %5408 }
 0x684   :  { %v8599_v36 = vpop.permute.xlu0 %5308  ;;  %v5411_v38 = vunpack.i.h.bf16 %v5409_v5 }
 0x685   :  { %10496 = vst [vmem:[#allocation15_spill] sm:$0xff] %v8599_v36  ;;  %v10261_v31 = vunpack.i.l.bf16 %v8599_v36  ;;  %v10274_v51 = vunpack.i.h.bf16 %v8599_v36 }
 0x687   :  { %v8608_v16 = vsel %vm119_vm6, %v10262_v24, %v10261_v31 }
 0x689   :  { %5588 = vrot.lane.b32.xlu2 %v8349_v19, %s5883_s11 }
 0x68a   :  { %5523 = vrot.lane.b32.xlu0 %v8472_v6, %s5886_s14 }
 0x68b   :  { %v8614_v47 = vpop.permute.xlu1 %5383  ;;  %v8681_v37 = vpop.permute.xlu2 %5423 }
 0x68c   :  { %v10269_v13 = vunpack.i.l.bf16 %v8614_v47  ;;  %v8618_v42 = vpop.permute.xlu0 %5313 }
 0x68d   :  { %10497 = vst [vmem:[#allocation8_spill] sm:$0xff] %v8618_v42  ;;  %v10276_v31 = vunpack.i.h.bf16 %v8618_v42  ;;  %v10273_v24 = vunpack.i.l.bf16 %v8618_v42 }
 0x68e   :  { %v8629_v0 = vsel %vm277_vm4, %v10270_v30, %v10269_v13  ;;  %v5410_v13 = vunpack.i.l.bf16 %v5409_v5 }
 0x68f   :  { %v8636_v22 = vsel %vm119_vm6, %v10274_v51, %v10273_v24  ;;  %v8643_v48 = vsel %vm119_vm6, %v10276_v31, %v10275_v57  ;;  %v10281_v31 = vunpack.i.h.bf16 %v8524_v49 }
 0x690   :  { %10498 = vst [vmem:[#allocation5_spill] sm:$0xff] %v8636_v22  ;;  %v2746_v51 = vsel %vm435_vm2, %v5410_v13, %v5411_v38 }
 0x691   :  { %10499 = vst [vmem:[#allocation24_spill] sm:$0xff] %v8643_v48 }
 0x692   :  { %5538 = vrot.lane.b32.xlu0 %v8495_v4, %s5886_s14  ;;  %v10283_v4 = vunpack.i.l.bf16 %v8480_v54 }
 0x693   :  { %v5399_v10 = vpop.permute.xlu1 %5398  ;;  %v8703_v44 = vpop.permute.xlu2 %5438 }
 0x694   :  { %v5401_v30 = vunpack.i.h.bf16 %v5399_v10  ;;  %v5400_v8 = vunpack.i.l.bf16 %v5399_v10  ;;  %v8647_v46 = vpop.permute.xlu0 %5328 }
 0x696   :  { %v2816_v24 = vsel %vm514_vm1, %v5400_v8, %v5401_v30 }
 0x697   :  { %2953 = vmatpush.msrb.mxu2 %v2816_v24 }
 0x699   :  { %2954 = vmatpush.msrb.mxu2 %v2746_v51 }
 0x69a   :  { %5553 = vrot.lane.b32.xlu0 %v8472_v6, %s5883_s11 }
 0x69b   :  { %v5414_v51 = vpop.permute.xlu1 %5413 }
 0x69c   :  { %v8653_v57 = vpop.permute.xlu0 %5343  ;;  %v5416_v12 = vunpack.i.h.bf16 %v5414_v51  ;;  %v5415_v45 = vunpack.i.l.bf16 %v5414_v51 }
 0x69d   :  { %v10284_v5 = vunpack.i.h.bf16 %v8653_v57  ;;  %v10280_v10 = vunpack.i.l.bf16 %v8653_v57 }
 0x69e   :  { %v2817_v22 = vsel %vm514_vm1, %v5401_v30, %v5415_v45 }
 0x69f   :  { %v8664_v24 = vsel %vm198_vm5, %v10281_v31, %v10280_v10  ;;  %v8671_v6 = vsel %vm198_vm5, %v10284_v5, %v10283_v4 }
 0x6a2   :  { %5568 = vrot.lane.b32.xlu0 %v8349_v19, %s5887_s15 }
 0x6a3   :  { %v8701_v48 = vpop.permute.xlu1 %5428 }
 0x6a4   :  { %v8675_v9 = vpop.permute.xlu0 %5358 }
 0x6a5   :  { %10500 = vst [vmem:[#allocation26_spill] sm:$0xff] %v8675_v9  ;;  %v10296_v10 = vunpack.i.h.bf16 %v8675_v9  ;;  %v10289_v31 = vunpack.i.l.bf16 %v8675_v9 }
 0x6a7   :  { %v8688_v4 = vsel %vm198_vm5, %v10290_v63, %v10289_v31  ;;  %v8695_v5 = vsel %vm198_vm5, %v10296_v10, %v10295_v56  ;;  %v8709_v63 = vpop.permute.xlu2 %5453 }
 0x6a8   :  { %10501 = vst [vmem:[#allocation19_spill] sm:$0xff] %v8688_v4  ;;  %v10504_v4 = vunpack.i.h.bf16 %v8560_v17 }
 0x6a9   :  { %10502 = vst [vmem:[#allocation12_spill] sm:$0xff] %v8695_v5 }
 0x6aa   :  { %5583 = vrot.lane.b32.xlu0 %v8349_v19, %s5884_s12  ;;  %v5426_v19 = vunpack.i.h.bf16 %v8681_v37 }
 0x6ab   :  { %v8707_v31 = vpop.permute.xlu1 %5443 }
 0x6ac   :  { %v8699_v14 = vpop.permute.xlu0 %5373  ;;  %v5445_v56 = vunpack.i.l.bf16 %v8707_v31 }
 0x6b3   :  { %v8726_v42 = vpop.permute.xlu1 %5458 }
 0x6b4   :  { %v8705_v34 = vpop.permute.xlu0 %5388 }
 0x6bc   :  { %v5404_v40 = vpop.permute.xlu0 %5403 }
 0x6bd   :  { %v5406_v10 = vunpack.i.h.bf16 %v5404_v40  ;;  %v5405_v5 = vunpack.i.l.bf16 %v5404_v40  ;;  %v2815_v40 = vsel %vm514_vm1, %v5416_v12, %v5400_v8  ;;  %v5370_v12 = vunpack.i.l.bf16 %v8597_v43 }
 0x6be   :  { %v5431_v8 = vunpack.i.h.bf16 %v8701_v48 }
 0x6bf   :  { %v2885_v36 = vsel %vm593_vm0, %v5406_v10, %v10503_v1  ;;  %v2887_v9 = vsel %vm593_vm0, %v10504_v4, %v5405_v5  ;;  %v2888_v51 = vsel %vm593_vm0, %v5405_v5, %v5445_v56  ;;  %v10505_v1 = vunpack.i.l.bf16 %v8709_v63 }
 0x6c0   :  { %2932 = vmatpush.msrb.mxu1 %v2885_v36  ;;  %2972 = vmatpush.msrb.mxu3 %v2887_v9  ;;  %v2745_v4 = vsel %vm435_vm2, %v5426_v19, %v5410_v13  ;;  %v10506_v5 = vunpack.i.l.bf16 %v8681_v37  ;;  %v5371_v36 = vunpack.i.h.bf16 %v8597_v43  ;;  %v5326_v13 = vunpack.i.h.bf16 %v8504_v50 }
 0x6c1   :  { %2992 = vmatpush.msra.mxu0 %v2888_v51  ;;  %v2818_v17 = vsel %vm514_vm1, %v5415_v45, %v10505_v1  ;;  %v5375_v45 = vunpack.i.l.bf16 %v8699_v14  ;;  %v5325_v19 = vunpack.i.l.bf16 %v8504_v50  ;;  %v5280_v50 = vunpack.i.l.bf16 %v8484_v25 }
 0x6c2   :  { %2933 = vmatpush.msrb.mxu1 %v2815_v40  ;;  %2973 = vmatpush.msrb.mxu3 %v2817_v22  ;;  %v2747_v9 = vsel %vm435_vm2, %v5411_v38, %v10506_v5  ;;  %v5430_v22 = vunpack.i.l.bf16 %v8701_v48  ;;  %v5376_v38 = vunpack.i.h.bf16 %v8699_v14  ;;  %v5330_v40 = vunpack.i.l.bf16 %v8647_v46  ;;  %v8750_v5 = vpop.permute.xlu2 %5468 }
 0x6c3   :  { %2993 = vmatpush.msra.mxu0 %v2818_v17 }
 0x6c4   :  { %v5419_v30 = vpop.permute.xlu0 %5418  ;;  %2934 = vmatpush.msrb.mxu1 %v2745_v4  ;;  %2974 = vmatpush.msrb.mxu3 %v2747_v9  ;;  %v5331_v4 = vunpack.i.h.bf16 %v8647_v46  ;;  %v2605_v9 = vsel %vm277_vm4, %v5370_v12, %v5371_v36  ;;  %v5446_v12 = vunpack.i.h.bf16 %v8707_v31  ;;  %v10516_v46 = vunpack.i.l.bf16 %v8524_v49 }
 0x6c5   :  { %v5421_v10 = vunpack.i.h.bf16 %v5419_v30  ;;  %v5420_v51 = vunpack.i.l.bf16 %v5419_v30  ;;  %v2606_v30 = vsel %vm277_vm4, %v5371_v36, %v5375_v45 }
 0x6c6   :  { %v2537_v36 = vsel %vm198_vm5, %v5330_v40, %v5331_v4 }
 0x6c7   :  { %v2675_v43 = vsel %vm356_vm3, %v5431_v8, %v5420_v51  ;;  %v2676_v1 = vsel %vm356_vm3, %v5420_v51, %v5421_v10  ;;  %v2677_v17 = vsel %vm356_vm3, %v5421_v10, %v5430_v22  ;;  %v2607_v8 = vsel %vm277_vm4, %v5375_v45, %v5376_v38 }
 0x6c8   :  { %2935 = vmatpush.msrb.mxu1 %v2675_v43  ;;  %2955 = vmatpush.msrb.mxu2 %v2676_v1  ;;  %v2535_v10 = vsel %vm198_vm5, %v5325_v19, %v5326_v13  ;;  %v2536_v51 = vsel %vm198_vm5, %v5326_v13, %v5330_v40  ;;  %v8760_v43 = vpop.permute.xlu1 %5473  ;;  %v10507_v45 = vunpack.i.h.bf16 %v8484_v25  ;;  %v5441_v13 = vunpack.i.h.bf16 %v8703_v44 }
 0x6c9   :  { %2975 = vmatpush.msrb.mxu3 %v2677_v17  ;;  %v10509_v40 = vunpack.i.l.bf16 %v8506_v3 }
 0x6ca   :  { %2936 = vmatpush.msrb.mxu1 %v2605_v9  ;;  %2956 = vmatpush.msrb.mxu2 %v2606_v30  ;;  %v2465_v19 = vsel %vm119_vm6, %v5280_v50, %v10507_v45  ;;  %v5440_v30 = vunpack.i.l.bf16 %v8703_v44 }
 0x6cb   :  { %2976 = vmatpush.msrb.mxu3 %v2607_v8  ;;  %v10508_v8 = vunpack.i.h.bf16 %v8506_v3  ;;  %v8790_v3 = vld [vmem:[%s10171_s1 + $0x10] sm:$0xff] }
 0x6cc   :  { %v5434_v1 = vpop.permute.xlu0 %5433  ;;  %2937 = vmatpush.msrb.mxu1 %v2535_v10  ;;  %2957 = vmatpush.msrb.mxu2 %v2536_v51  ;;  %v5456_v51 = vunpack.i.h.bf16 %v8709_v63 }
 0x6cd   :  { %v5436_v17 = vunpack.i.h.bf16 %v5434_v1  ;;  %v5435_v9 = vunpack.i.l.bf16 %v5434_v1  ;;  %2977 = vmatpush.msrb.mxu3 %v2537_v36  ;;  %v2467_v10 = vsel %vm119_vm6, %v10509_v40, %v10508_v8  ;;  %v5461_v36 = vunpack.i.h.bf16 %v8726_v42 }
 0x6ce   :  { %2938 = vmatpush.msrb.mxu1 %v2465_v19  ;;  %2958 = vmatpush.msrb.mxu2 %v8515_v62  ;;  %v8793_v62 = vpop.permute.xlu2 %5483 }
 0x6cf   :  { %2978 = vmatpush.msrb.mxu3 %v2467_v10  ;;  %v2889_v25 = vsel %vm593_vm0, %v5445_v56, %v5435_v9  ;;  %v2890_v50 = vsel %vm593_vm0, %v5435_v9, %v5436_v17  ;;  %v2891_v44 = vsel %vm593_vm0, %v5436_v17, %v5446_v12  ;;  %v10510_v56 = vunpack.i.l.bf16 %v8709_v63 }
 0x6d0   :  { %2939 = vmatpush.msrb.mxu1 %v8310_v39  ;;  %2959 = vmatpush.msrb.mxu2 %v8313_v53  ;;  %v2820_v39 = vsel %vm514_vm1, %v5440_v30, %v5441_v13  ;;  %v2821_v53 = vsel %vm514_vm1, %v5441_v13, %v5456_v51  ;;  %v5460_v17 = vunpack.i.l.bf16 %v8726_v42  ;;  %v8810_v19 = vpop.permute.xlu1 %5488  ;;  %v5470_v42 = vunpack.i.l.bf16 %v8750_v5 }
 0x6d1   :  { %2979 = vmatpush.msrb.mxu3 %v8343_v35  ;;  %v2819_v1 = vsel %vm514_vm1, %v10510_v56, %v5440_v30  ;;  %4533 = vmatmul.msk.f32.vlgmr.msrb.gmra.mxu2 %vm633_vm7, %v8790_v3  ;;  %v10511_v56 = vunpack.i.l.bf16 %v8681_v37  ;;  %v5491_v14 = vunpack.i.h.bf16 %v8810_v19  ;;  %v5390_v63 = vunpack.i.l.bf16 %v8705_v34 }
 0x6d2   :  { %3012 = vmatpush.msra.mxu1 %v2889_v25  ;;  %3032 = vmatpush.msra.mxu2 %v2890_v50  ;;  %v2680_v30 = vsel %vm356_vm3, %v5460_v17, %v5461_v36  ;;  %v5476_v50 = vunpack.i.h.bf16 %v8760_v43  ;;  %v2678_v37 = vsel %vm356_vm3, %v5430_v22, %v5470_v42 }
 0x6d3   :  { %3052 = vmatpush.msra.mxu3 %v2891_v44  ;;  %4532 = vmatmul.msk.f32.vlgmr.msrb.gmra.mxu1 %vm633_vm7, %v8790_v3  ;;  %v5475_v44 = vunpack.i.l.bf16 %v8760_v43 }
 0x6d4   :  { %3013 = vmatpush.msra.mxu1 %v2819_v1  ;;  %3033 = vmatpush.msra.mxu2 %v2820_v39  ;;  %v5449_v35 = vpop.permute.xlu0 %5448 }
 0x6d5   :  { %3053 = vmatpush.msra.mxu3 %v2821_v53  ;;  %v5451_v9 = vunpack.i.h.bf16 %v5449_v35  ;;  %v5450_v45 = vunpack.i.l.bf16 %v5449_v35  ;;  %v5380_v53 = vunpack.i.l.bf16 %v8522_v33  ;;  %v5386_v35 = vunpack.i.h.bf16 %v8614_v47 }
 0x6d6   :  { %4534 = vmatmul.msk.f32.vlgmr.msrb.gmra.mxu3 %vm633_vm7, %v8790_v3  ;;  %v8814_v8 = vpop.permute.xlu2 %5498 }
 0x6d7   :  { %v2750_v13 = vsel %vm435_vm2, %v5450_v45, %v5451_v9  ;;  %v2608_v48 = vsel %vm277_vm4, %v5376_v38, %v5380_v53  ;;  %v5490_v38 = vunpack.i.l.bf16 %v8810_v19  ;;  %v5485_v19 = vunpack.i.l.bf16 %v8793_v62 }
 0x6d8   :  { %3034 = vmatpush.msra.mxu2 %v2750_v13  ;;  %v5471_v13 = vunpack.i.h.bf16 %v8750_v5  ;;  %v2612_v5 = vsel %vm277_vm4, %v5386_v35, %v5390_v63 }
 0x6da   :  { %3035 = vmatpush.msra.mxu2 %v2680_v30  ;;  %v8835_v30 = vpop.permute.xlu1 %5503 }
 0x6dc   :  { %v8816_v40 = vpop.permute.xlu0 %5463  ;;  %3036 = vmatpush.msra.mxu2 %v8629_v0 }
 0x6dd   :  { %v5466_v10 = vunpack.i.h.bf16 %v8816_v40  ;;  %v5465_v25 = vunpack.i.l.bf16 %v8816_v40 }
 0x6de   :  { %3037 = vmatpush.msra.mxu2 %v8539_v20  ;;  %v2679_v20 = vsel %vm356_vm3, %v5470_v42, %v5460_v17  ;;  %v10512_v17 = vunpack.i.h.bf16 %v8522_v33  ;;  %v8866_v33 = vpop.permute.xlu2 %5513 }
 0x6df   :  { %v2748_v1 = vsel %vm435_vm2, %v10511_v56, %v5465_v25  ;;  %v2749_v39 = vsel %vm435_vm2, %v5465_v25, %v5450_v45  ;;  %v2751_v0 = vsel %vm435_vm2, %v5451_v9, %v5466_v10  ;;  %v5335_v9 = vunpack.i.l.bf16 %v8468_v7 }
 0x6e0   :  { %2994 = vmatpush.msra.mxu0 %v2748_v1  ;;  %3014 = vmatpush.msra.mxu1 %v2749_v39  ;;  %v2681_v45 = vsel %vm356_vm3, %v5461_v36, %v5471_v13  ;;  %v2609_v42 = vsel %vm277_vm4, %v5380_v53, %v10512_v17  ;;  %v10514_v39 = vunpack.i.h.bf16 %v8468_v7  ;;  %v10515_v53 = vunpack.i.h.bf16 %v8524_v49 }
 0x6e1   :  { %3038 = vmatpush.msra.mxu2 %v8546_v21  ;;  %3054 = vmatpush.msra.mxu3 %v2751_v0  ;;  %v2894_v21 = vsel %vm593_vm0, %v5475_v44, %v5476_v50  ;;  %v2538_v25 = vsel %vm198_vm5, %v5331_v4, %v5335_v9  ;;  %v5500_v7 = vunpack.i.l.bf16 %v8814_v8  ;;  %v10518_v49 = vunpack.i.l.bf16 %v8528_v55 }
 0x6e2   :  { %2995 = vmatpush.msra.mxu0 %v2678_v37  ;;  %3015 = vmatpush.msra.mxu1 %v2679_v20  ;;  %v2539_v0 = vsel %vm198_vm5, %v5335_v9, %v10514_v39  ;;  %v2541_v4 = vsel %vm198_vm5, %v10516_v46, %v10515_v53  ;;  %v5501_v20 = vunpack.i.h.bf16 %v8814_v8  ;;  %v10517_v9 = vunpack.i.h.bf16 %v8528_v55 }
 0x6e3   :  { %3039 = vmatpush.msra.mxu2 %v8371_v28  ;;  %3055 = vmatpush.msra.mxu3 %v2681_v45  ;;  %v10513_v28 = vunpack.i.l.bf16 %v8614_v47  ;;  %v2754_v17 = vsel %vm435_vm2, %v5490_v38, %v5491_v14  ;;  %v5486_v8 = vunpack.i.h.bf16 %v8793_v62  ;;  %v2893_v55 = vsel %vm593_vm0, %v5485_v19, %v5475_v44 }
 0x6e4   :  { %v5479_v22 = vpop.permute.xlu0 %5478  ;;  %2996 = vmatpush.msra.mxu0 %v2608_v48  ;;  %3016 = vmatpush.msra.mxu1 %v2609_v42  ;;  %v2469_v45 = vsel %vm119_vm6, %v10518_v49, %v10517_v9  ;;  %v10520_v48 = vunpack.i.l.bf16 %v8456_v2  ;;  %v5506_v44 = vunpack.i.h.bf16 %v8835_v30  ;;  %v5515_v43 = vunpack.i.l.bf16 %v8866_v33 }
 0x6e5   :  { %3112 = vmatpush.msrb.mxu2 %v2894_v21  ;;  %v2611_v36 = vsel %vm277_vm4, %v10513_v28, %v5386_v35  ;;  %v5481_v56 = vunpack.i.h.bf16 %v5479_v22  ;;  %v5480_v1 = vunpack.i.l.bf16 %v5479_v22  ;;  %v10519_v21 = vunpack.i.h.bf16 %v8456_v2 }
 0x6e6   :  { %3056 = vmatpush.msra.mxu3 %v2611_v36  ;;  %2997 = vmatpush.msra.mxu0 %v2538_v25  ;;  %v2892_v2 = vsel %vm593_vm0, %v5446_v12, %v5485_v19  ;;  %v2895_v42 = vsel %vm593_vm0, %v5476_v50, %v5486_v8  ;;  %v5516_v25 = vunpack.i.h.bf16 %v8866_v33  ;;  %v8931_v39 = vpop.permute.xlu2 %5528  ;;  %v2682_v53 = vsel %vm356_vm3, %v5471_v13, %v5515_v43 }
 0x6e7   :  { %4537 = vmatmul.msk.f32.vlgmr.msra.gmra.mxu2 %vm633_vm7, %v8790_v3  ;;  %3017 = vmatpush.msra.mxu1 %v2539_v0  ;;  %v2824_v37 = vsel %vm514_vm1, %v5480_v1, %v5481_v56  ;;  %v2471_v22 = vsel %vm119_vm6, %v10520_v48, %v10519_v21  ;;  %v5391_v0 = vunpack.i.h.bf16 %v8705_v34  ;;  %v2683_v34 = vsel %vm356_vm3, %v5515_v43, %v5500_v7 }
 0x6e8   :  { %3057 = vmatpush.msra.mxu3 %v2541_v4  ;;  %2998 = vmatpush.msra.mxu0 %v8553_v11  ;;  %v8895_v11 = vpop.permute.xlu1 %5518  ;;  %v10521_v4 = vunpack.i.h.bf16 %v8653_v57  ;;  %v10522_v19 = vunpack.i.l.bf16 %v8653_v57  ;;  %v5530_v47 = vunpack.i.l.bf16 %v8931_v39  ;;  %v10523_v9 = vunpack.i.h.bf16 %v8478_v60 }
 0x6e9   :  { %3113 = vmatpush.msrb.mxu2 %v2824_v37  ;;  %3018 = vmatpush.msra.mxu1 %v2469_v45  ;;  %v2613_v13 = vsel %vm277_vm4, %v5390_v63, %v5391_v0  ;;  %v5520_v35 = vunpack.i.l.bf16 %v8895_v11  ;;  %v10524_v57 = vunpack.i.l.bf16 %v8478_v60  ;;  %v5521_v21 = vunpack.i.h.bf16 %v8895_v11 }
 0x6ea   :  { %3058 = vmatpush.msra.mxu3 %v2471_v22  ;;  %2999 = vmatpush.msra.mxu0 %v8346_v29  ;;  %v2543_v37 = vsel %vm198_vm5, %v10522_v19, %v10521_v4  ;;  %v10526_v48 = vunpack.i.l.bf16 %v8480_v54  ;;  %v5531_v60 = vunpack.i.h.bf16 %v8931_v39  ;;  %v10527_v11 = vunpack.i.h.bf16 %v8568_v41 }
 0x6eb   :  { %3114 = vmatpush.msrb.mxu2 %v2754_v17  ;;  %3019 = vmatpush.msra.mxu1 %v8368_v59  ;;  %v2684_v59 = vsel %vm356_vm3, %v5500_v7, %v5501_v20  ;;  %v2473_v49 = vsel %vm119_vm6, %v10524_v57, %v10523_v9 }
 0x6ec   :  { %3059 = vmatpush.msra.mxu3 %v8304_v18  ;;  %3072 = vmatpush.msrb.mxu0 %v2892_v2  ;;  %v8909_v29 = vpop.permute.xlu0 %5493  ;;  %v5505_v18 = vunpack.i.l.bf16 %v8835_v30 }
 0x6ed   :  { %3092 = vmatpush.msrb.mxu1 %v2893_v55  ;;  %v5496_v31 = vunpack.i.h.bf16 %v8909_v29  ;;  %v5495_v12 = vunpack.i.l.bf16 %v8909_v29  ;;  %3115 = vmatpush.msrb.mxu2 %v2684_v59 }
 0x6ee   :  { %3132 = vmatpush.msrb.mxu3 %v2895_v42  ;;  %4535 = vmatmul.msk.f32.vlgmr.msra.gmra.mxu0 %vm633_vm7, %v8790_v3  ;;  %v8976_v45 = vpop.permute.xlu2 %5543  ;;  %v2897_v42 = vsel %vm593_vm0, %v5530_v47, %v5520_v35 }
 0x6ef   :  { %4536 = vmatmul.msk.f32.vlgmr.msra.gmra.mxu1 %vm633_vm7, %v8790_v3  ;;  %v2822_v50 = vsel %vm514_vm1, %v5456_v51, %v5495_v12  ;;  %v2823_v28 = vsel %vm514_vm1, %v5495_v12, %v5480_v1  ;;  %v2825_v36 = vsel %vm514_vm1, %v5481_v56, %v5496_v31  ;;  %4538 = vmatmul.msk.f32.vlgmr.msra.gmra.mxu3 %vm633_vm7, %v8790_v3 }
 0x6f0   :  { %3073 = vmatpush.msrb.mxu0 %v2822_v50  ;;  %3093 = vmatpush.msrb.mxu1 %v2823_v28  ;;  %v2752_v51 = vsel %vm435_vm2, %v5466_v10, %v5505_v18  ;;  %v2753_v56 = vsel %vm435_vm2, %v5505_v18, %v5490_v38  ;;  %v2755_v1 = vsel %vm435_vm2, %v5491_v14, %v5506_v44  ;;  %v8946_v46 = vpop.permute.xlu1 %5533  ;;  %v5545_v18 = vunpack.i.l.bf16 %v8976_v45 }
 0x6f1   :  { %3133 = vmatpush.msrb.mxu3 %v2825_v36  ;;  %v2685_v10 = vsel %vm356_vm3, %v5501_v20, %v5516_v25  ;;  %v5535_v59 = vunpack.i.l.bf16 %v8946_v46 }
 0x6f2   :  { %3074 = vmatpush.msrb.mxu0 %v2752_v51  ;;  %3094 = vmatpush.msrb.mxu1 %v2753_v56 }
 0x6f3   :  { %3134 = vmatpush.msrb.mxu3 %v2755_v1 }
 0x6f4   :  { %v8948_v40 = vpop.permute.xlu0 %5508  ;;  %3075 = vmatpush.msrb.mxu0 %v2682_v53  ;;  %3095 = vmatpush.msrb.mxu1 %v2683_v34 }
 0x6f5   :  { %v5511_v38 = vunpack.i.h.bf16 %v8948_v40  ;;  %v5510_v14 = vunpack.i.l.bf16 %v8948_v40  ;;  %3135 = vmatpush.msrb.mxu3 %v2685_v10  ;;  %v10530_v40 = vunpack.i.l.bf16 %v8562_v32 }
 0x6f6   :  { %3076 = vmatpush.msrb.mxu0 %v2612_v5  ;;  %3096 = vmatpush.msrb.mxu1 %v2613_v13 }
 0x6f7   :  { %v2614_v20 = vsel %vm277_vm4, %v5391_v0, %v5510_v14  ;;  %v2615_v7 = vsel %vm277_vm4, %v5510_v14, %v5511_v38 }
 0x6f8   :  { %3077 = vmatpush.msrb.mxu0 %v8664_v24  ;;  %3097 = vmatpush.msrb.mxu1 %v2543_v37  ;;  %v10525_v24 = vunpack.i.h.bf16 %v8480_v54 }
 0x6f9   :  { %3116 = vmatpush.msrb.mxu2 %v2614_v20  ;;  %3136 = vmatpush.msrb.mxu3 %v2615_v7 }
 0x6fa   :  { %3078 = vmatpush.msrb.mxu0 %v8491_v61  ;;  %3098 = vmatpush.msrb.mxu1 %v2473_v49  ;;  %v2545_v22 = vsel %vm198_vm5, %v10526_v48, %v10525_v24  ;;  %v10528_v61 = vunpack.i.l.bf16 %v8568_v41  ;;  %v5536_v41 = vunpack.i.h.bf16 %v8946_v46 }
 0x6fb   :  { %3117 = vmatpush.msrb.mxu2 %v8671_v6  ;;  %3137 = vmatpush.msrb.mxu3 %v2545_v22  ;;  %v2896_v6 = vsel %vm593_vm0, %v5486_v8, %v5530_v47  ;;  %v5546_v8 = vunpack.i.h.bf16 %v8976_v45  ;;  %v10529_v47 = vunpack.i.h.bf16 %v8562_v32  ;;  %v10534_v45 = vld [vmem:[#allocation19_spill] sm:$0xff] }
 0x6fc   :  { %v5524_v17 = vpop.permute.xlu0 %5523  ;;  %3079 = vmatpush.msrb.mxu0 %v8307_v52  ;;  %3099 = vmatpush.msrb.mxu1 %v8298_v27  ;;  %v2475_v2 = vsel %vm119_vm6, %v10528_v61, %v10527_v11  ;;  %v8999_v52 = vpop.permute.xlu1 %5548  ;;  %v2898_v27 = vsel %vm593_vm0, %v5520_v35, %v5521_v21  ;;  %v10531_v35 = vld [vmem:[#allocation26_spill] sm:$0xff]  ;;  %v10538_v22 = vld [vmem:[#allocation7_spill] sm:$0xff] }
 0x6fd   :  { %v5526_v55 = vunpack.i.h.bf16 %v5524_v17  ;;  %v5525_v54 = vunpack.i.l.bf16 %v5524_v17  ;;  %3118 = vmatpush.msrb.mxu2 %v8589_v23  ;;  %3138 = vmatpush.msrb.mxu3 %v2475_v2  ;;  %v2899_v23 = vsel %vm593_vm0, %v5521_v21, %v5531_v60  ;;  %v5550_v43 = vunpack.i.l.bf16 %v8999_v52 }
 0x6fe   :  { %3152 = vmatpush.msra.mxu0 %v2896_v6  ;;  %3172 = vmatpush.msra.mxu1 %v2897_v42  ;;  %v2688_v36 = vsel %vm356_vm3, %v5545_v18, %v5546_v8  ;;  %v5551_v0 = vunpack.i.h.bf16 %v8999_v52  ;;  %v10532_v9 = vunpack.i.h.bf16 %v10531_v35  ;;  %v10533_v57 = vunpack.i.l.bf16 %v10531_v35  ;;  %v10542_v6 = vld [vmem:[#allocation5_spill] sm:$0xff] }
 0x6ff   :  { %3119 = vmatpush.msrb.mxu2 %v8301_v15  ;;  %3139 = vmatpush.msrb.mxu3 %v8382_v26  ;;  %v2828_v62 = vsel %vm514_vm1, %v5525_v54, %v5526_v55  ;;  %v2758_v15 = vsel %vm435_vm2, %v5535_v59, %v5536_v41  ;;  %v9021_v26 = vpop.permute.xlu2 %5558  ;;  %v2756_v46 = vsel %vm435_vm2, %v5506_v44, %v5550_v43  ;;  %v10547_v52 = vld [vmem:[#allocation9_spill] sm:$0xff] }
 0x700   :  { %4541 = vmatmul.msk.f32.vlgmr.msrb.gmra.mxu2 %vm633_vm7, %v8790_v3  ;;  %4539 = vmatmul.msk.f32.vlgmr.msrb.gmra.mxu0 %vm633_vm7, %v8790_v3  ;;  %v5560_v63 = vunpack.i.l.bf16 %v9021_v26  ;;  %v5561_v53 = vunpack.i.h.bf16 %v9021_v26  ;;  %v2757_v29 = vsel %vm435_vm2, %v5550_v43, %v5535_v59  ;;  %v2549_v49 = vsel %vm198_vm5, %v10533_v57, %v10532_v9  ;;  %v10544_v59 = vld [vmem:[#allocation18_spill] sm:$0xff] }
 0x701   :  { %3192 = vmatpush.msra.mxu2 %v2898_v27  ;;  %3212 = vmatpush.msra.mxu3 %v2899_v23  ;;  %v10545_v23 = vld [vmem:[#allocation22_spill] sm:$0xff] }
 0x702   :  { %4542 = vmatmul.msk.f32.vlgmr.msrb.gmra.mxu3 %vm633_vm7, %v8790_v3  ;;  %4540 = vmatmul.msk.f32.vlgmr.msrb.gmra.mxu1 %vm633_vm7, %v8790_v3  ;;  %v2686_v14 = vsel %vm356_vm3, %v5516_v25, %v5560_v63  ;;  %v2687_v5 = vsel %vm356_vm3, %v5560_v63, %v5545_v18  ;;  %v2689_v44 = vsel %vm356_vm3, %v5546_v8, %v5561_v53  ;;  %v9169_v57 = vld [vmem:[%s10172_s4 + $0x158] sm:$0xff] }
 0x703   :  { %3193 = vmatpush.msra.mxu2 %v2828_v62 }
 0x704   :  { %v9023_v12 = vpop.permute.xlu0 %5538  ;;  %v9039_v34 = vpop.permute.xlu1 %5563 }
 0x705   :  { %3194 = vmatpush.msra.mxu2 %v2758_v15  ;;  %v5541_v50 = vunpack.i.h.bf16 %v9023_v12  ;;  %v5540_v28 = vunpack.i.l.bf16 %v9023_v12  ;;  %v5565_v10 = vunpack.i.l.bf16 %v9039_v34  ;;  %v5566_v13 = vunpack.i.h.bf16 %v9039_v34  ;;  %v10546_v12 = vld [vmem:[#allocation4_spill] sm:$0xff]  ;;  %v10552_v34 = vld [vmem:[#allocation3_spill] sm:$0xff] }
 0x707   :  { %3195 = vmatpush.msra.mxu2 %v2688_v36  ;;  %v2826_v51 = vsel %vm514_vm1, %v5496_v31, %v5540_v28  ;;  %v2827_v56 = vsel %vm514_vm1, %v5540_v28, %v5525_v54  ;;  %v2829_v1 = vsel %vm514_vm1, %v5526_v55, %v5541_v50  ;;  %v2759_v31 = vsel %vm435_vm2, %v5536_v41, %v5551_v0  ;;  %v5574_v7 = vpop.permute.xlu2 %5573  ;;  %v10543_v41 = vld [vmem:[#allocation23_spill] sm:$0xff] }
 0x708   :  { %3153 = vmatpush.msra.mxu0 %v2826_v51  ;;  %3173 = vmatpush.msra.mxu1 %v2827_v56  ;;  %v2616_v33 = vsel %vm277_vm4, %v5511_v38, %v5565_v10  ;;  %v2547_v38 = vsel %vm198_vm5, %v10530_v40, %v10529_v47  ;;  %v5576_v42 = vunpack.i.h.bf16 %v5574_v7  ;;  %v5575_v27 = vunpack.i.l.bf16 %v5574_v7  ;;  %v9160_v47 = vld [vmem:[%s10172_s4 + $0x150] sm:$0xff] }
 0x709   :  { %3213 = vmatpush.msra.mxu3 %v2829_v1 }
 0x70a   :  { %3154 = vmatpush.msra.mxu0 %v2756_v46  ;;  %3174 = vmatpush.msra.mxu1 %v2757_v29  ;;  %v2830_v39 = vsel %vm514_vm1, %v5541_v50, %v5575_v27  ;;  %v5366_v29 = vunpack.i.h.bf16 %v10546_v12 }
 0x70b   :  { %3214 = vmatpush.msra.mxu3 %v2759_v31 }
 0x70c   :  { %v5554_v30 = vpop.permute.xlu0 %5553  ;;  %3155 = vmatpush.msra.mxu0 %v2686_v14  ;;  %3175 = vmatpush.msra.mxu1 %v2687_v5  ;;  %v5579_v2 = vpop.permute.xlu1 %5578  ;;  %v10548_v5 = vunpack.i.l.bf16 %v10546_v12  ;;  %v9223_v12 = vld [vmem:[%s10172_s4 + $0x188] sm:$0xff] }
 0x70d   :  { %v5556_v4 = vunpack.i.h.bf16 %v5554_v30  ;;  %v5555_v19 = vunpack.i.l.bf16 %v5554_v30  ;;  %3215 = vmatpush.msra.mxu3 %v2689_v44  ;;  %v5581_v18 = vunpack.i.h.bf16 %v5579_v2  ;;  %v5580_v15 = vunpack.i.l.bf16 %v5579_v2  ;;  %v10549_v30 = vld [vmem:[#allocation12_spill] sm:$0xff] }
 0x70e   :  { %3156 = vmatpush.msra.mxu0 %v2616_v33  ;;  %v2551_v26 = vsel %vm198_vm5, %v10548_v5, %v5366_v29 }
 0x70f   :  { %v2617_v25 = vsel %vm277_vm4, %v5565_v10, %v5555_v19  ;;  %v2618_v37 = vsel %vm277_vm4, %v5555_v19, %v5556_v4  ;;  %v2619_v20 = vsel %vm277_vm4, %v5556_v4, %v5566_v13  ;;  %v5589_v43 = vpop.permute.xlu2 %5588  ;;  %v2760_v36 = vsel %vm435_vm2, %v5551_v0, %v5580_v15  ;;  %v10551_v4 = vld [vmem:[#allocation24_spill] sm:$0xff]  ;;  %v9140_v19 = vld [vmem:[%s10172_s4 + $0x140] sm:$0xff] }
 0x710   :  { %3157 = vmatpush.msra.mxu0 %v8582_v58  ;;  %3176 = vmatpush.msra.mxu1 %v2617_v25  ;;  %v10535_v58 = vld [vmem:[#allocation15_spill] sm:$0xff]  ;;  %v2761_v63 = vsel %vm435_vm2, %v5580_v15, %v5581_v18  ;;  %v5591_v51 = vunpack.i.h.bf16 %v5589_v43  ;;  %v5590_v56 = vunpack.i.l.bf16 %v5589_v43  ;;  %v5321_v0 = vunpack.i.h.bf16 %v10547_v52  ;;  %v9147_v25 = vld [vmem:[%s10172_s4 + $0x148] sm:$0xff]  ;;  %v9205_v18 = vld [vmem:[%s10172_s4 + $0x178] sm:$0xff] }
 0x711   :  { %3196 = vmatpush.msra.mxu2 %v2618_v37  ;;  %3216 = vmatpush.msra.mxu3 %v2619_v20  ;;  %v10536_v21 = vunpack.i.h.bf16 %v10535_v58  ;;  %v10537_v24 = vunpack.i.l.bf16 %v10535_v58 }
 0x712   :  { %3158 = vmatpush.msra.mxu0 %v8608_v16  ;;  %3177 = vmatpush.msra.mxu1 %v2547_v38  ;;  %v10539_v16 = vld [vmem:[#allocation8_spill] sm:$0xff]  ;;  %v2620_v10 = vsel %vm277_vm4, %v5566_v13, %v5590_v56  ;;  %v2621_v14 = vsel %vm277_vm4, %v5590_v56, %v5591_v51 }
 0x713   :  { %3197 = vmatpush.msra.mxu2 %v10534_v45  ;;  %3217 = vmatpush.msra.mxu3 %v2549_v49  ;;  %v2477_v32 = vsel %vm119_vm6, %v10537_v24, %v10536_v21  ;;  %v10540_v17 = vunpack.i.h.bf16 %v10539_v16  ;;  %v10541_v11 = vunpack.i.l.bf16 %v10539_v16  ;;  %v10553_v13 = vld [vmem:[#allocation20_spill] sm:$0xff] }
 0x714   :  { %v5569_v48 = vpop.permute.xlu0 %5568  ;;  %3159 = vmatpush.msra.mxu0 %v10538_v22  ;;  %3178 = vmatpush.msra.mxu1 %v2477_v32  ;;  %v9178_v32 = vld [vmem:[%s10172_s4 + $0x160] sm:$0xff] }
 0x715   :  { %v2479_v61 = vsel %vm119_vm6, %v10541_v11, %v10540_v17  ;;  %v5571_v55 = vunpack.i.h.bf16 %v5569_v48  ;;  %v5570_v54 = vunpack.i.l.bf16 %v5569_v48  ;;  %3198 = vmatpush.msra.mxu2 %v10542_v6  ;;  %4543 = vmatmul.msk.f32.vlgmr.msra.gmra.mxu0 %vm633_vm7, %v8790_v3 }
 0x716   :  { %3218 = vmatpush.msra.mxu3 %v2479_v61  ;;  %3179 = vmatpush.msra.mxu1 %v10543_v41  ;;  %v9187_v61 = vld [vmem:[%s10172_s4 + $0x168] sm:$0xff] }
 0x717   :  { %3199 = vmatpush.msra.mxu2 %v10544_v59  ;;  %v2900_v62 = vsel %vm593_vm0, %v5531_v60, %v5570_v54  ;;  %v2901_v8 = vsel %vm593_vm0, %v5570_v54, %v5571_v55  ;;  %4544 = vmatmul.msk.f32.vlgmr.msra.gmra.mxu1 %vm633_vm7, %v8790_v3  ;;  %v2831_v60 = vsel %vm514_vm1, %v5575_v27, %v5576_v42  ;;  %v9196_v27 = vld [vmem:[%s10172_s4 + $0x170] sm:$0xff] }
 0x718   :  { %3219 = vmatpush.msra.mxu3 %v10545_v23  ;;  %4545 = vmatmul.msk.f32.vlgmr.msra.gmra.mxu2 %vm633_vm7, %v8790_v3 }
 0x719   :  { %3232 = vmatpush.msrb.mxu0 %v2900_v62  ;;  %3252 = vmatpush.msrb.mxu1 %v2901_v8 }
 0x71a   :  { %4546 = vmatmul.msk.f32.vlgmr.msra.gmra.mxu3 %vm633_vm7, %v8790_v3 }
 0x71b   :  { %3233 = vmatpush.msrb.mxu0 %v2830_v39  ;;  %3253 = vmatpush.msrb.mxu1 %v2831_v60 }
 0x71c   :  { %v5584_v28 = vpop.permute.xlu0 %5583 }
 0x71d   :  { %v5586_v1 = vunpack.i.h.bf16 %v5584_v28  ;;  %v5585_v46 = vunpack.i.l.bf16 %v5584_v28  ;;  %3234 = vmatpush.msrb.mxu0 %v2760_v36  ;;  %3254 = vmatpush.msrb.mxu1 %v2761_v63  ;;  %v9214_v36 = vld [vmem:[%s10172_s4 + $0x180] sm:$0xff] }
 0x71f   :  { %v2690_v50 = vsel %vm356_vm3, %v5561_v53, %v5585_v46  ;;  %v2691_v31 = vsel %vm356_vm3, %v5585_v46, %v5586_v1  ;;  %v10550_v53 = vunpack.i.l.bf16 %v10547_v52 }
 0x720   :  { %3235 = vmatpush.msrb.mxu0 %v2690_v50  ;;  %3255 = vmatpush.msrb.mxu1 %v2691_v31 }
 0x721   :  { %v2481_v44 = vsel %vm119_vm6, %v10550_v53, %v5321_v0 }
 0x722   :  { %3236 = vmatpush.msrb.mxu0 %v2620_v10  ;;  %3256 = vmatpush.msrb.mxu1 %v2621_v14  ;;  %v9232_v10 = vld [vmem:[%s10172_s4 + $0x190] sm:$0xff] }
 0x724   :  { %3237 = vmatpush.msrb.mxu0 %v10549_v30  ;;  %3257 = vmatpush.msrb.mxu1 %v2551_v26  ;;  %v9239_v26 = vld [vmem:[%s10172_s4 + $0x198] sm:$0xff] }
 0x726   :  { %3238 = vmatpush.msrb.mxu0 %v10551_v4  ;;  %3258 = vmatpush.msrb.mxu1 %v2481_v44 }
 0x728   :  { %3239 = vmatpush.msrb.mxu0 %v10552_v34  ;;  %3259 = vmatpush.msrb.mxu1 %v10553_v13 }
 0x729   :  { %4547 = vmatmul.msk.f32.vlgmr.msrb.gmra.mxu0 %vm633_vm7, %v8790_v3  ;;  %4548 = vmatmul.msk.f32.vlgmr.msrb.gmra.mxu1 %vm633_vm7, %v8790_v3 }
 0x750   :  { %v9149_v37 = vpop.f32.mrf.mxu1 }
 0x751   :  { %v3282_v20 = vmul.f32 %v9140_v19, %v9149_v37 }
 0x753   :  { %v3318_v40 = vmul.f32 %v3282_v20, %v3282_v20 }
 0x754   :  { %v9142_v33 = vpop.f32.mrf.mxu2 }
 0x755   :  { %v3283_v3 = vmul.f32 %v9147_v25, %v9142_v33 }
 0x757   :  { %v3319_v38 = vmul.f32 %v3283_v3, %v3283_v3  ;;  %v3299_v49 = vadd.f32 %v3283_v3, %v3282_v20  ;;  %v9250_v20 = vld [vmem:[%s10172_s4 + $0x1a0] sm:$0xff] }
 0x759   :  { %v9155_v7 = vpop.f32.mrf.mxu3  ;;  %v3335_v45 = vadd.f32 %v3319_v38, %v3318_v40  ;;  %v9255_v38 = vld [vmem:[%s10172_s4 + $0x1a8] sm:$0xff] }
 0x75a   :  { %v3284_v35 = vmul.f32 %v9160_v47, %v9155_v7 }
 0x75c   :  { %v3320_v58 = vmul.f32 %v3284_v35, %v3284_v35  ;;  %v3300_v48 = vadd.f32 %v3299_v49, %v3284_v35 }
 0x75e   :  { %v3336_v22 = vadd.f32 %v3335_v45, %v3320_v58 }
 0x76a   :  { %v9182_v11 = vpop.f32.mrf.mxu2 }
 0x76b   :  { %v9164_v9 = vpop.f32.mrf.mxu0  ;;  %v3287_v6 = vmul.f32 %v9187_v61, %v9182_v11 }
 0x76c   :  { %v3285_v21 = vmul.f32 %v9169_v57, %v9164_v9  ;;  %v9173_v24 = vpop.f32.mrf.mxu1 }
 0x76d   :  { %v3286_v17 = vmul.f32 %v9178_v32, %v9173_v24  ;;  %v3323_v23 = vmul.f32 %v3287_v6, %v3287_v6 }
 0x76e   :  { %v3321_v16 = vmul.f32 %v3285_v21, %v3285_v21  ;;  %v3301_v2 = vadd.f32 %v3300_v48, %v3285_v21 }
 0x76f   :  { %v3322_v54 = vmul.f32 %v3286_v17, %v3286_v17 }
 0x770   :  { %v3337_v55 = vadd.f32 %v3336_v22, %v3321_v16  ;;  %v3302_v41 = vadd.f32 %v3301_v2, %v3286_v17  ;;  %v9268_v17 = vld [vmem:[%s10172_s4 + $0x1b0] sm:$0xff] }
 0x772   :  { %v9191_v42 = vpop.f32.mrf.mxu3  ;;  %v3338_v59 = vadd.f32 %v3337_v55, %v3322_v54  ;;  %v3303_v15 = vadd.f32 %v3302_v41, %v3287_v6 }
 0x773   :  { %v3288_v62 = vmul.f32 %v9196_v27, %v9191_v42 }
 0x774   :  { %v3339_v43 = vadd.f32 %v3338_v59, %v3323_v23 }
 0x775   :  { %v3324_v39 = vmul.f32 %v3288_v62, %v3288_v62  ;;  %v3304_v63 = vadd.f32 %v3303_v15, %v3288_v62  ;;  %v9275_v62 = vld [vmem:[%s10172_s4 + $0x1b8] sm:$0xff]  ;;  %v9280_v15 = vld [vmem:[%s10172_s4 + $0x1c0] sm:$0xff] }
 0x777   :  { %v3340_v51 = vadd.f32 %v3339_v43, %v3324_v39 }
 0x77d   :  { %v9200_v8 = vpop.f32.mrf.mxu0 }
 0x77e   :  { %v3289_v60 = vmul.f32 %v9205_v18, %v9200_v8 }
 0x77f   :  { %v9209_v28 = vpop.f32.mrf.mxu1 }
 0x780   :  { %v3325_v56 = vmul.f32 %v3289_v60, %v3289_v60  ;;  %v3290_v1 = vmul.f32 %v9214_v36, %v9209_v28  ;;  %v3305_v29 = vadd.f32 %v3304_v63, %v3289_v60 }
 0x782   :  { %v3341_v50 = vadd.f32 %v3340_v51, %v3325_v56  ;;  %v3326_v31 = vmul.f32 %v3290_v1, %v3290_v1  ;;  %v3306_v14 = vadd.f32 %v3305_v29, %v3290_v1 }
 0x783   :  { %v9218_v46 = vpop.f32.mrf.mxu2 }
 0x784   :  { %v3291_v52 = vmul.f32 %v9223_v12, %v9218_v46  ;;  %v3342_v30 = vadd.f32 %v3341_v50, %v3326_v31 }
 0x785   :  { %v9227_v0 = vpop.f32.mrf.mxu3 }
 0x786   :  { %v3327_v53 = vmul.f32 %v3291_v52, %v3291_v52  ;;  %v3292_v44 = vmul.f32 %v9232_v10, %v9227_v0  ;;  %v3307_v4 = vadd.f32 %v3306_v14, %v3291_v52 }
 0x788   :  { %v3343_v3 = vadd.f32 %v3342_v30, %v3327_v53  ;;  %v3328_v40 = vmul.f32 %v3292_v44, %v3292_v44  ;;  %v3308_v35 = vadd.f32 %v3307_v4, %v3292_v44 }
 0x78a   :  { %v3344_v21 = vadd.f32 %v3343_v3, %v3328_v40 }
 0x792   :  { %v9234_v5 = vpop.f32.mrf.mxu0 }
 0x793   :  { %v3293_v34 = vmul.f32 %v9239_v26, %v9234_v5 }
 0x794   :  { %v9245_v13 = vpop.f32.mrf.mxu1 }
 0x795   :  { %v3329_v49 = vmul.f32 %v3293_v34, %v3293_v34  ;;  %v3294_v45 = vmul.f32 %v9250_v20, %v9245_v13  ;;  %v3309_v48 = vadd.f32 %v3308_v35, %v3293_v34 }
 0x797   :  { %v3345_v2 = vadd.f32 %v3344_v21, %v3329_v49  ;;  %v3330_v55 = vmul.f32 %v3294_v45, %v3294_v45  ;;  %v3310_v54 = vadd.f32 %v3309_v48, %v3294_v45 }
 0x799   :  { %v3346_v59 = vadd.f32 %v3345_v2, %v3330_v55 }
 0x79b   :  { %v9259_v58 = vpop.f32.mrf.mxu2 }
 0x79c   :  { %v3295_v22 = vmul.f32 %v9255_v38, %v9259_v58 }
 0x79d   :  { %v9263_v16 = vpop.f32.mrf.mxu3 }
 0x79e   :  { %v3331_v6 = vmul.f32 %v3295_v22, %v3295_v22  ;;  %v3296_v41 = vmul.f32 %v9268_v17, %v9263_v16  ;;  %v3311_v23 = vadd.f32 %v3310_v54, %v3295_v22  ;;  %v4566_v54 = vld [vmem:[%s10173_s2 + $0x10] sm:$0xff] }
 0x7a0   :  { %v3347_v43 = vadd.f32 %v3346_v59, %v3331_v6  ;;  %v3332_v39 = vmul.f32 %v3296_v41, %v3296_v41  ;;  %v3312_v51 = vadd.f32 %v3311_v23, %v3296_v41  ;;  %v4567_v23 = vld [vmem:[%s10174_s3 + $0x10] sm:$0xff] }
 0x7a2   :  { %v3348_v29 = vadd.f32 %v3347_v43, %v3332_v39 }
 0x7a6   :  { %v9282_v60 = vpop.f32.mrf.mxu0  ;;  %v3261_v63 = vpop.f32.mrf.mxu1 }
 0x7a7   :  { %v3297_v56 = vmul.f32 %v9275_v62, %v9282_v60  ;;  %v3298_v1 = vmul.f32 %v9280_v15, %v3261_v63 }
 0x7a9   :  { %v3313_v50 = vadd.f32 %v3312_v51, %v3297_v56  ;;  %v3333_v31 = vmul.f32 %v3297_v56, %v3297_v56  ;;  %v3334_v52 = vmul.f32 %v3298_v1, %v3298_v1 }
 0x7ab   :  { %v3349_v14 = vadd.f32 %v3348_v29, %v3333_v31  ;;  %v3314_v30 = vadd.f32 %v3313_v50, %v3298_v1 }
 0x7ad   :  { %3315 = vadd.xlane.f32.xlu1 %v3314_v30  ;;  %v3350_v53 = vadd.f32 %v3349_v14, %v3334_v52 }
 0x7af   :  { %3351 = vadd.xlane.f32.xlu0 %v3350_v53 }
 0x820   :  { %v3316_v44 = vpop.xlane.xlu1 %3315 }
 0x821   :  { %v3317_v4 = vmul.f32 0.001457726, %v3316_v44 }
 0x822   :  { %v3352_v34 = vpop.xlane.xlu0 %3351 }
 0x823   :  { %v3354_v3 = vmul.f32 %v3317_v4, %v3317_v4  ;;  %v3353_v40 = vmul.f32 0.001457726, %v3352_v34 }
 0x825   :  { %v3355_v35 = vsub.f32 %v3353_v40, %v3354_v3 }
 0x827   :  { %v3358_v49 = vadd.f32 1e-05, %v3355_v35 }
 0x829   :  { %5877 = vrsqrt.f32 %v3358_v49  ;;  %vm3365_vm15 = vweird.f32 %v3358_v49 }
 0x82f   :  { %v5878_v45 = vpop.eup %5877 }
 0x830   :  { %v3360_v21 = vmul.f32 %v5878_v45, %v3358_v49  ;;  %vm3366_vm14 = vweird.f32 %v5878_v45 }
 0x831   :  { %vm3367_vm8 = vmor %vm3365_vm15, %vm3366_vm14 }
 0x832   :  { %v3361_v48 = vmul.f32 %v5878_v45, %v3360_v21 }
 0x834   :  { %v3362_v22 = vmul.f32 0.5, %v3361_v48 }
 0x836   :  { %v3363_v2 = vsub.f32 1.5, %v3362_v22 }
 0x838   :  { %v3364_v55 = vmul.f32 %v5878_v45, %v3363_v2 }
 0x83a   :  { %v3368_v6 = vsel %vm3367_vm8, %v5878_v45, %v3364_v55 }
 0x83b   :  { %v3369_v41 = vmul.f32 %v4566_v54, %v3368_v6 }
 0x83d   :  { %3376 = vperm.xlu2 %5592, %v3369_v41   ;;  %v3372_v59 = vmul.f32 %v3369_v41, %v3317_v4 }
 0x83f   :  { %v3373_v43 = vsub.f32 %v4567_v23, %v3372_v59 }
 0x845   :  { %3398 = vperm.xlu2 %5592, %v3373_v43  }
 0x897   :  { %v9293_v39 = vpop.permute.xlu2 %3376 }
 0x898   :  { %v3387_v51 = vmul.f32 %v9293_v39, %v9209_v28  ;;  %v3388_v56 = vmul.f32 %v9293_v39, %v9218_v46  ;;  %v3385_v1 = vmul.f32 %v9293_v39, %v9191_v42  ;;  %v3386_v29 = vmul.f32 %v9293_v39, %v9200_v8 }
 0x899   :  { %v3379_v31 = vmul.f32 %v9293_v39, %v9149_v37  ;;  %v3380_v52 = vmul.f32 %v9293_v39, %v9142_v33  ;;  %v3395_v14 = vmul.f32 %v9293_v39, %v3261_v63  ;;  %v3381_v37 = vmul.f32 %v9293_v39, %v9155_v7 }
 0x89a   :  { %v3382_v33 = vmul.f32 %v9293_v39, %v9164_v9 }
 0x89f   :  { %v9303_v50 = vpop.permute.xlu2 %3398 }
 0x8a0   :  { %v3409_v28 = vadd.f32 %v9303_v50, %v3387_v51  ;;  %v3410_v46 = vadd.f32 %v9303_v50, %v3388_v56  ;;  %v3407_v30 = vadd.f32 %v9303_v50, %v3385_v1  ;;  %v3408_v42 = vadd.f32 %v9303_v50, %v3386_v29 }
 0x8a1   :  { %v3401_v8 = vadd.f32 %v9303_v50, %v3379_v31  ;;  %v3402_v53 = vadd.f32 %v9303_v50, %v3380_v52  ;;  %v3403_v35 = vadd.f32 %v9303_v50, %v3381_v37  ;;  %v3404_v49 = vadd.f32 %v9303_v50, %v3382_v33 }
 0x8a2   :  { %v3426_v44 = vmax.f32 %v3409_v28, 0.0  ;;  %v3427_v63 = vmax.f32 %v3410_v46, 0.0  ;;  %v3424_v4 = vmax.f32 %v3407_v30, 0.0  ;;  %v3425_v34 = vmax.f32 %v3408_v42, 0.0 }
 0x8a3   :  { %v3418_v3 = vmax.f32 %v3401_v8, 0.0  ;;  %v3419_v40 = vmax.f32 %v3402_v53, 0.0  ;;  %v3421_v55 = vmax.f32 %v3404_v49, 0.0 }
 0x8a4   :  { %v9323_v45 = vmul.f32 %v9214_v36, %v3426_v44  ;;  %v9326_v21 = vmul.f32 %v9223_v12, %v3427_v63  ;;  %v9329_v7 = vmul.f32 %v9196_v27, %v3424_v4  ;;  %v9332_v9 = vmul.f32 %v9205_v18, %v3425_v34 }
 0x8a5   :  { %v9335_v48 = vmul.f32 %v9140_v19, %v3418_v3  ;;  %v9338_v22 = vmul.f32 %v9147_v25, %v3419_v40  ;;  %v3417_v12 = vadd.f32 %v9303_v50, %v3395_v14  ;;  %v3420_v18 = vmax.f32 %v3403_v35, 0.0 }
 0x8a6   :  { %v5613_v2 = vpack.i.bf16 %v9326_v21, %v9323_v45  ;;  %v5608_v36 = vpack.i.bf16 %v9332_v9, %v9329_v7  ;;  %v3383_v19 = vmul.f32 %v9293_v39, %v9173_v24  ;;  %v3384_v25 = vmul.f32 %v9293_v39, %v9182_v11 }
 0x8a7   :  { %v9347_v27 = vpack.i.bf16 %v9338_v22, %v9335_v48  ;;  %v3434_v54 = vmax.f32 %v3417_v12, 0.0  ;;  %v9358_v6 = vmul.f32 %v9160_v47, %v3420_v18  ;;  %v9361_v41 = vmul.f32 %v9169_v57, %v3421_v55 }
 0x8a8   :  { %5614 = vrot.lane.b32.xlu0 %v5613_v2, %s5881_s30  ;;  %5609 = vrot.lane.b32.xlu1 %v5608_v36, %s5881_s30  ;;  %v3405_v59 = vadd.f32 %v9303_v50, %v3383_v19  ;;  %v3406_v23 = vadd.f32 %v9303_v50, %v3384_v25  ;;  %v3389_v47 = vmul.f32 %v9293_v39, %v9227_v0 }
 0x8a9   :  { %5594 = vrot.lane.b32.xlu2 %v9347_v27, %s5881_s30  ;;  %v9366_v43 = vmul.f32 %v9280_v15, %v3434_v54  ;;  %v5598_v24 = vpack.i.bf16 %v9361_v41, %v9358_v6  ;;  %v3390_v57 = vmul.f32 %v9293_v39, %v9234_v5 }
 0x8aa   :  { %v3422_v51 = vmax.f32 %v3405_v59, 0.0  ;;  %v3423_v56 = vmax.f32 %v3406_v23, 0.0  ;;  %v3411_v1 = vadd.f32 %v9303_v50, %v3389_v47 }
 0x8ab   :  { %v3412_v29 = vadd.f32 %v9303_v50, %v3390_v57 }
 0x8ac   :  { %v9380_v11 = vmul.f32 %v9178_v32, %v3422_v51  ;;  %v9383_v15 = vmul.f32 %v9187_v61, %v3423_v56  ;;  %v3428_v52 = vmax.f32 %v3411_v1, 0.0  ;;  %v3391_v32 = vmul.f32 %v9293_v39, %v9245_v13 }
 0x8ad   :  { %v3429_v14 = vmax.f32 %v3412_v29, 0.0  ;;  %v3392_v61 = vmul.f32 %v9293_v39, %v9259_v58 }
 0x8ae   :  { %v5603_v31 = vpack.i.bf16 %v9383_v15, %v9380_v11  ;;  %v9399_v0 = vmul.f32 %v9232_v10, %v3428_v52  ;;  %v3413_v28 = vadd.f32 %v9303_v50, %v3391_v32  ;;  %v5663_v30 = vpack.i.bf16 %v9380_v11, %v9358_v6 }
 0x8af   :  { %v9402_v5 = vmul.f32 %v9239_v26, %v3429_v14  ;;  %v3414_v46 = vadd.f32 %v9303_v50, %v3392_v61  ;;  %v3393_v10 = vmul.f32 %v9293_v39, %v9263_v16  ;;  %v3394_v26 = vmul.f32 %v9293_v39, %v9282_v60 }
 0x8b0   :  { %3535 = vrot.lane.b32.xlu0 %v9366_v43, %s5881_s30  ;;  %5634 = vrot.lane.b32.xlu1 %v9347_v27, %s5882_s10  ;;  %v3430_v13 = vmax.f32 %v3413_v28, 0.0  ;;  %v5688_v16 = vpack.i.bf16 %v9361_v41, %v9383_v15 }
 0x8b1   :  { %5599 = vrot.lane.b32.xlu2 %v5598_v24, %s5881_s30  ;;  %v5618_v42 = vpack.i.bf16 %v9402_v5, %v9399_v0  ;;  %v3431_v8 = vmax.f32 %v3414_v46, 0.0  ;;  %v3415_v37 = vadd.f32 %v9303_v50, %v3393_v10  ;;  %v3416_v33 = vadd.f32 %v9303_v50, %v3394_v26 }
 0x8b2   :  { %v9419_v58 = vmul.f32 %v9250_v20, %v3430_v13 }
 0x8b3   :  { %v9422_v53 = vmul.f32 %v9255_v38, %v3431_v8  ;;  %v3432_v63 = vmax.f32 %v3415_v37, 0.0  ;;  %v3433_v4 = vmax.f32 %v3416_v33, 0.0 }
 0x8b4   :  { %v5783_v39 = vpack.i.bf16 %v9419_v58, %v9399_v0 }
 0x8b5   :  { %v5623_v44 = vpack.i.bf16 %v9422_v53, %v9419_v58  ;;  %v9433_v20 = vmul.f32 %v9268_v17, %v3432_v63  ;;  %v9436_v38 = vmul.f32 %v9275_v62, %v3433_v4  ;;  %v5703_v17 = vpack.i.bf16 %v9323_v45, %v9329_v7 }
 0x8b6   :  { %v9458_v62 = vpack.i.bf16 %v9332_v9, %v9326_v21  ;;  %v9483_v34 = vpack.i.bf16 %v9402_v5, %v9422_v53 }
 0x8b7   :  { %v9442_v60 = vpack.i.bf16 %v9436_v38, %v9433_v20 }
 0x8b8   :  { %5644 = vrot.lane.b32.xlu0 %v9347_v27, %s5887_s15  ;;  %5649 = vrot.lane.b32.xlu1 %v9347_v27, %s5886_s14 }
 0x8b9   :  { %5604 = vrot.lane.b32.xlu2 %v5603_v31, %s5881_s30 }
 0x8c0   :  { %5659 = vrot.lane.b32.xlu0 %v9347_v27, %s5885_s13  ;;  %5664 = vrot.lane.b32.xlu1 %v5663_v30, %s5886_s14 }
 0x8c1   :  { %5619 = vrot.lane.b32.xlu2 %v5618_v42, %s5881_s30 }
 0x8c8   :  { %5674 = vrot.lane.b32.xlu0 %v5663_v30, %s5885_s13  ;;  %5679 = vrot.lane.b32.xlu1 %v9347_v27, %s5883_s11 }
 0x8c9   :  { %5624 = vrot.lane.b32.xlu2 %v5623_v44, %s5881_s30 }
 0x8d0   :  { %5689 = vrot.lane.b32.xlu0 %v5688_v16, %s5887_s15  ;;  %5694 = vrot.lane.b32.xlu1 %v5663_v30, %s5883_s11 }
 0x8d1   :  { %5629 = vrot.lane.b32.xlu2 %v9442_v60, %s5881_s30 }
 0x8d8   :  { %5704 = vrot.lane.b32.xlu0 %v5703_v17, %s5887_s15  ;;  %5709 = vrot.lane.b32.xlu1 %v5688_v16, %s5885_s13 }
 0x8d9   :  { %5639 = vrot.lane.b32.xlu2 %v5663_v30, %s5882_s10 }
 0x8e0   :  { %5719 = vrot.lane.b32.xlu0 %v5688_v16, %s5884_s12  ;;  %5724 = vrot.lane.b32.xlu1 %v5703_v17, %s5885_s13 }
 0x8e1   :  { %5654 = vrot.lane.b32.xlu2 %v5663_v30, %s5887_s15 }
 0x8e8   :  { %5734 = vrot.lane.b32.xlu0 %v5703_v17, %s5884_s12  ;;  %5739 = vrot.lane.b32.xlu1 %v9458_v62, %s5887_s15 }
 0x8e9   :  { %5669 = vrot.lane.b32.xlu2 %v9347_v27, %s5884_s12 }
 0x8f0   :  { %5749 = vrot.lane.b32.xlu0 %v5703_v17, %s5883_s11  ;;  %5754 = vrot.lane.b32.xlu1 %v9458_v62, %s5886_s14 }
 0x8f1   :  { %5684 = vrot.lane.b32.xlu2 %v5663_v30, %s5884_s12 }
 0x8f8   :  { %5764 = vrot.lane.b32.xlu0 %v5703_v17, %s5882_s10  ;;  %5769 = vrot.lane.b32.xlu1 %v9458_v62, %s5885_s13 }
 0x8f9   :  { %5699 = vrot.lane.b32.xlu2 %v5688_v16, %s5886_s14 }
 0x900   :  { %5779 = vrot.lane.b32.xlu0 %v9458_v62, %s5884_s12  ;;  %5784 = vrot.lane.b32.xlu1 %v5783_v39, %s5885_s13 }
 0x901   :  { %5714 = vrot.lane.b32.xlu2 %v5703_v17, %s5886_s14 }
 0x903   :  { %v9479_v50 = vpop.permute.xlu2 %5594 }
 0x904   :  { %v5597_v40 = vunpack.i.h.bf16 %v9479_v50 }
 0x908   :  { %5794 = vrot.lane.b32.xlu0 %v5783_v39, %s5884_s12  ;;  %5799 = vrot.lane.b32.xlu1 %v9483_v34, %s5887_s15 }
 0x909   :  { %5729 = vrot.lane.b32.xlu2 %v5688_v16, %s5883_s11 }
 0x90b   :  { %v9489_v3 = vpop.permute.xlu2 %5599 }
 0x90c   :  { %v5601_v35 = vunpack.i.l.bf16 %v9489_v3  ;;  %v5602_v36 = vunpack.i.h.bf16 %v9489_v3 }
 0x90e   :  { %v9498_v49 = vsel %vm119_vm6, %v5597_v40, %v5601_v35 }
 0x910   :  { %5809 = vrot.lane.b32.xlu0 %v5783_v39, %s5883_s11  ;;  %5814 = vrot.lane.b32.xlu1 %v9483_v34, %s5886_s14 }
 0x911   :  { %5744 = vrot.lane.b32.xlu2 %v5688_v16, %s5882_s10 }
 0x913   :  { %v9504_v2 = vpop.permute.xlu2 %5604 }
 0x914   :  { %v10314_v12 = vunpack.i.l.bf16 %v9504_v2  ;;  %v5607_v18 = vunpack.i.h.bf16 %v9504_v2 }
 0x916   :  { %v9513_v27 = vsel %vm119_vm6, %v5602_v36, %v10314_v12 }
 0x918   :  { %5824 = vrot.lane.b32.xlu0 %v5783_v39, %s5882_s10  ;;  %5829 = vrot.lane.b32.xlu1 %v9483_v34, %s5885_s13 }
 0x919   :  { %5759 = vrot.lane.b32.xlu2 %v5783_v39, %s5887_s15 }
 0x91a   :  { %v9520_v55 = vpop.permute.xlu0 %5614  ;;  %v9522_v19 = vpop.permute.xlu1 %5609 }
 0x91b   :  { %v10311_v25 = vunpack.i.h.bf16 %v9520_v55  ;;  %v10310_v54 = vunpack.i.l.bf16 %v9520_v55  ;;  %v10313_v59 = vunpack.i.h.bf16 %v9522_v19  ;;  %v10312_v23 = vunpack.i.l.bf16 %v9522_v19  ;;  %v9528_v24 = vpop.permute.xlu2 %5619 }
 0x91c   :  { %v10308_v51 = vunpack.i.l.bf16 %v9528_v24  ;;  %v10309_v52 = vunpack.i.h.bf16 %v9528_v24 }
 0x91d   :  { %v9536_v56 = vsel %vm119_vm6, %v5607_v18, %v10312_v23  ;;  %v9543_v47 = vsel %vm119_vm6, %v10313_v59, %v10310_v54 }
 0x91e   :  { %v9550_v57 = vsel %vm119_vm6, %v10311_v25, %v10308_v51 }
 0x920   :  { %5839 = vrot.lane.b32.xlu0 %v9483_v34, %s5884_s12  ;;  %5844 = vrot.lane.b32.xlu1 %v9442_v60, %s5885_s13 }
 0x921   :  { %5774 = vrot.lane.b32.xlu2 %v5783_v39, %s5886_s14 }
 0x922   :  { %v3536_v1 = vpop.permute.xlu0 %3535  ;;  %v9557_v29 = vpop.permute.xlu1 %5634 }
 0x923   :  { %v9559_v31 = vpop.permute.xlu2 %5624  ;;  %v5637_v23 = vunpack.i.h.bf16 %v9557_v29  ;;  %v5636_v59 = vunpack.i.l.bf16 %v9557_v29 }
 0x924   :  { %v10306_v14 = vunpack.i.l.bf16 %v9559_v31  ;;  %v10307_v46 = vunpack.i.h.bf16 %v9559_v31 }
 0x926   :  { %v9568_v32 = vsel %vm119_vm6, %v10309_v52, %v10306_v14 }
 0x928   :  { %5854 = vrot.lane.b32.xlu0 %v9442_v60, %s5884_s12  ;;  %5859 = vrot.lane.b32.xlu1 %v9483_v34, %s5882_s10 }
 0x929   :  { %5789 = vrot.lane.b32.xlu2 %v9458_v62, %s5883_s11 }
 0x92a   :  { %v5645_v61 = vpop.permute.xlu0 %5644  ;;  %v5650_v28 = vpop.permute.xlu1 %5649 }
 0x92b   :  { %v5647_v30 = vunpack.i.h.bf16 %v5645_v61  ;;  %v5646_v42 = vunpack.i.l.bf16 %v5645_v61  ;;  %v9577_v13 = vpop.permute.xlu2 %5629  ;;  %v5652_v8 = vunpack.i.h.bf16 %v5650_v28  ;;  %v5651_v10 = vunpack.i.l.bf16 %v5650_v28 }
 0x92c   :  { %v10305_v26 = vunpack.i.h.bf16 %v9577_v13  ;;  %v10304_v37 = vunpack.i.l.bf16 %v9577_v13 }
 0x92d   :  { %v3933_v33 = vsel %vm593_vm0, %v5646_v42, %v5647_v30  ;;  %v3867_v4 = vsel %vm514_vm1, %v5651_v10, %v5652_v8 }
 0x92e   :  { %3978 = vmatpush.msrb.mxu2 %v3933_v33  ;;  %v9587_v44 = vsel %vm119_vm6, %v10307_v46, %v10304_v37  ;;  %v9592_v63 = vsel %vm119_vm6, %v10305_v26, %v3536_v1 }
 0x930   :  { %3597 = vrot.lane.b32.xlu0 %v9433_v20, %s5882_s10  ;;  %3931 = vrot.lane.b32.xlu1 %v9366_v43, %s5887_s15 }
 0x931   :  { %3979 = vmatpush.msrb.mxu2 %v3867_v4  ;;  %5804 = vrot.lane.b32.xlu2 %v9458_v62, %s5882_s10 }
 0x932   :  { %v5660_v16 = vpop.permute.xlu0 %5659  ;;  %v9601_v17 = vpop.permute.xlu1 %5664 }
 0x933   :  { %v5662_v39 = vunpack.i.h.bf16 %v5660_v16  ;;  %v5661_v61 = vunpack.i.l.bf16 %v5660_v16  ;;  %v9603_v28 = vpop.permute.xlu2 %5639  ;;  %v5666_v33 = vunpack.i.l.bf16 %v9601_v17 }
 0x935   :  { %v3801_v1 = vsel %vm435_vm2, %v5661_v61, %v5662_v39 }
 0x936   :  { %3980 = vmatpush.msrb.mxu2 %v3801_v1  ;;  %v3868_v1 = vsel %vm514_vm1, %v5652_v8, %v5666_v33 }
 0x938   :  { %3799 = vrot.lane.b32.xlu0 %v9366_v43, %s5885_s13  ;;  %3733 = vrot.lane.b32.xlu1 %v9366_v43, %s5884_s12 }
 0x939   :  { %5819 = vrot.lane.b32.xlu2 %v9442_v60, %s5887_s15 }
 0x93a   :  { %v9612_v62 = vpop.permute.xlu0 %5674  ;;  %v5680_v42 = vpop.permute.xlu1 %5679 }
 0x93b   :  { %v5655_v10 = vpop.permute.xlu2 %5654  ;;  %v5676_v16 = vunpack.i.l.bf16 %v9612_v62  ;;  %v5682_v51 = vunpack.i.h.bf16 %v5680_v42  ;;  %v5681_v52 = vunpack.i.l.bf16 %v5680_v42  ;;  %v3603_v42 = vsel %vm198_vm5, %v5636_v59, %v5637_v23 }
 0x93c   :  { %v5656_v4 = vunpack.i.l.bf16 %v5655_v10 }
 0x93e   :  { %v3934_v61 = vsel %vm593_vm0, %v5647_v30, %v5656_v4  ;;  %v3802_v30 = vsel %vm435_vm2, %v5662_v39, %v5676_v16  ;;  %v5596_v39 = vunpack.i.l.bf16 %v9479_v50 }
 0x93f   :  { %3998 = vmatpush.msrb.mxu3 %v3934_v61  ;;  %v5657_v61 = vunpack.i.h.bf16 %v5655_v10  ;;  %v3669_v10 = vsel %vm277_vm4, %v5681_v52, %v5682_v51 }
 0x940   :  { %3667 = vrot.lane.b32.xlu0 %v9366_v43, %s5883_s11  ;;  %v3537_v52 = vsel %vm119_vm6, %v5596_v39, %v5597_v40 }
 0x941   :  { %5834 = vrot.lane.b32.xlu2 %v9442_v60, %s5886_s14  ;;  %3999 = vmatpush.msrb.mxu3 %v3868_v1 }
 0x942   :  { %v9624_v37 = vpop.permute.xlu0 %5689  ;;  %v9626_v26 = vpop.permute.xlu1 %5694 }
 0x943   :  { %v5692_v14 = vunpack.i.h.bf16 %v9624_v37  ;;  %v5670_v46 = vpop.permute.xlu2 %5669  ;;  %4000 = vmatpush.msrb.mxu3 %v3802_v30  ;;  %v5691_v29 = vunpack.i.l.bf16 %v9624_v37 }
 0x944   :  { %v5672_v8 = vunpack.i.h.bf16 %v5670_v46  ;;  %v5671_v54 = vunpack.i.l.bf16 %v5670_v46 }
 0x945   :  { %v3935_v25 = vsel %vm593_vm0, %v5656_v4, %v5692_v14  ;;  %v3936_v1 = vsel %vm593_vm0, %v5692_v14, %v5657_v61  ;;  %v3937_v59 = vsel %vm593_vm0, %v5657_v61, %v5691_v29  ;;  %v5667_v61 = vunpack.i.h.bf16 %v9601_v17 }
 0x946   :  { %v3735_v12 = vsel %vm356_vm3, %v5671_v54, %v5672_v8  ;;  %4018 = vmatpush.msra.mxu0 %v3935_v25  ;;  %4038 = vmatpush.msra.mxu1 %v3936_v1 }
 0x947   :  { %3981 = vmatpush.msrb.mxu2 %v3735_v12  ;;  %v5696_v12 = vunpack.i.l.bf16 %v9626_v26 }
 0x949   :  { %5849 = vrot.lane.b32.xlu2 %v9483_v34, %s5883_s11  ;;  %3982 = vmatpush.msrb.mxu2 %v3669_v10  ;;  %v5641_v34 = vunpack.i.l.bf16 %v9603_v28  ;;  %v3670_v37 = vsel %vm277_vm4, %v5682_v51, %v5696_v12 }
 0x94a   :  { %v9641_v46 = vpop.permute.xlu0 %5704  ;;  %v9643_v14 = vpop.permute.xlu1 %5709 }
 0x94b   :  { %v5685_v54 = vpop.permute.xlu2 %5684  ;;  %3983 = vmatpush.msrb.mxu2 %v3603_v42  ;;  %v3604_v30 = vsel %vm198_vm5, %v5637_v23, %v5641_v34  ;;  %v5712_v51 = vunpack.i.h.bf16 %v9643_v14  ;;  %v5711_v10 = vunpack.i.l.bf16 %v9643_v14 }
 0x94c   :  { %v5686_v25 = vunpack.i.l.bf16 %v5685_v54 }
 0x94d   :  { %3984 = vmatpush.msrb.mxu2 %v3537_v52  ;;  %v3803_v14 = vsel %vm435_vm2, %v5676_v16, %v5712_v51 }
 0x94e   :  { %v3736_v4 = vsel %vm356_vm3, %v5672_v8, %v5686_v25  ;;  %v5706_v8 = vunpack.i.l.bf16 %v9641_v46 }
 0x94f   :  { %3985 = vmatpush.msrb.mxu2 %v9335_v48  ;;  %4001 = vmatpush.msrb.mxu3 %v3736_v4  ;;  %v5677_v4 = vunpack.i.h.bf16 %v9612_v62 }
 0x950   :  { %v3938_v17 = vsel %vm593_vm0, %v5691_v29, %v5706_v8 }
 0x951   :  { %4058 = vmatpush.msra.mxu2 %v3937_v59  ;;  %5864 = vrot.lane.b32.xlu2 %v9442_v60, %s5883_s11  ;;  %v9670_v60 = vld [vmem:[%s10171_s1 + $0x18] sm:$0xff] }
 0x952   :  { %4002 = vmatpush.msrb.mxu3 %v3670_v37  ;;  %v5720_v50 = vpop.permute.xlu0 %5719  ;;  %v9660_v40 = vpop.permute.xlu1 %5724  ;;  %4569 = vmatmul.msk.f32.vlgmr.msrb.gmra.mxu2 %vm633_vm7, %v9670_v60  ;;  %v3804_v37 = vsel %vm435_vm2, %v5712_v51, %v5677_v4  ;;  %v5868_v51 = vpack.i.bf16 %v9366_v43, %v9436_v38 }
 0x953   :  { %v5700_v48 = vpop.permute.xlu2 %5699  ;;  %v5722_v59 = vunpack.i.h.bf16 %v5720_v50  ;;  %v5726_v62 = vunpack.i.l.bf16 %v9660_v40 }
 0x954   :  { %4003 = vmatpush.msrb.mxu3 %v3604_v30  ;;  %v5702_v1 = vunpack.i.h.bf16 %v5700_v48  ;;  %v5701_v39 = vunpack.i.l.bf16 %v5700_v48 }
 0x956   :  { %4004 = vmatpush.msrb.mxu3 %v9498_v49  ;;  %v3869_v23 = vsel %vm514_vm1, %v5666_v33, %v5702_v1  ;;  %v3870_v42 = vsel %vm514_vm1, %v5702_v1, %v5667_v61  ;;  %v3871_v52 = vsel %vm514_vm1, %v5667_v61, %v5701_v39  ;;  %v5721_v49 = vunpack.i.l.bf16 %v5720_v50 }
 0x957   :  { %4019 = vmatpush.msra.mxu0 %v3869_v23  ;;  %4039 = vmatpush.msra.mxu1 %v3870_v42  ;;  %v5687_v33 = vunpack.i.h.bf16 %v5685_v54  ;;  %v3737_v54 = vsel %vm356_vm3, %v5686_v25, %v5722_v59  ;;  %v3806_v23 = vsel %vm435_vm2, %v5711_v10, %v5726_v62 }
 0x958   :  { %4005 = vmatpush.msrb.mxu3 %v9338_v22  ;;  %4059 = vmatpush.msra.mxu2 %v3871_v52  ;;  %v3805_v22 = vsel %vm435_vm2, %v5677_v4, %v5711_v10 }
 0x959   :  { %3865 = vrot.lane.b32.xlu2 %v9366_v43, %s5886_s14  ;;  %4020 = vmatpush.msra.mxu0 %v3803_v14  ;;  %v3738_v48 = vsel %vm356_vm3, %v5722_v59, %v5687_v33  ;;  %v3739_v61 = vsel %vm356_vm3, %v5687_v33, %v5721_v49  ;;  %v5697_v43 = vunpack.i.h.bf16 %v9626_v26 }
 0x95a   :  { %4078 = vmatpush.msra.mxu3 %v3938_v17  ;;  %4040 = vmatpush.msra.mxu1 %v3804_v37  ;;  %v9694_v50 = vpop.permute.xlu0 %5734  ;;  %v9696_v30 = vpop.permute.xlu1 %5739 }
 0x95b   :  { %4060 = vmatpush.msra.mxu2 %v3805_v22  ;;  %v9698_v29 = vpop.permute.xlu2 %5714  ;;  %4570 = vmatmul.msk.f32.vlgmr.msrb.gmra.mxu3 %vm633_vm7, %v9670_v60  ;;  %v5736_v1 = vunpack.i.l.bf16 %v9694_v50 }
 0x95c   :  { %v5716_v16 = vunpack.i.l.bf16 %v9698_v29  ;;  %4021 = vmatpush.msra.mxu0 %v3737_v54  ;;  %4041 = vmatpush.msra.mxu1 %v3738_v48 }
 0x95d   :  { %4061 = vmatpush.msra.mxu2 %v3739_v61  ;;  %v3740_v4 = vsel %vm356_vm3, %v5721_v49, %v5736_v1 }
 0x95e   :  { %v3872_v25 = vsel %vm514_vm1, %v5701_v39, %v5716_v16 }
 0x95f   :  { %4079 = vmatpush.msra.mxu3 %v3872_v25 }
 0x961   :  { %5869 = vrot.lane.b32.xlu2 %v5868_v51, %s5882_s10  ;;  %4080 = vmatpush.msra.mxu3 %v3806_v23 }
 0x962   :  { %v9717_v42 = vpop.permute.xlu0 %5749  ;;  %v9719_v52 = vpop.permute.xlu1 %5754 }
 0x963   :  { %v5751_v39 = vunpack.i.l.bf16 %v9717_v42  ;;  %v5730_v59 = vpop.permute.xlu2 %5729  ;;  %4081 = vmatpush.msra.mxu3 %v3740_v4 }
 0x964   :  { %v5732_v17 = vunpack.i.h.bf16 %v5730_v59  ;;  %v5731_v33 = vunpack.i.l.bf16 %v5730_v59 }
 0x966   :  { %v3671_v10 = vsel %vm277_vm4, %v5696_v12, %v5732_v17  ;;  %v3672_v14 = vsel %vm277_vm4, %v5732_v17, %v5697_v43  ;;  %v3673_v37 = vsel %vm277_vm4, %v5697_v43, %v5731_v33  ;;  %v3674_v49 = vsel %vm277_vm4, %v5731_v33, %v5751_v39 }
 0x967   :  { %4022 = vmatpush.msra.mxu0 %v3671_v10  ;;  %4042 = vmatpush.msra.mxu1 %v3672_v14  ;;  %v5642_v12 = vunpack.i.h.bf16 %v9603_v28  ;;  %v5742_v43 = vunpack.i.h.bf16 %v9696_v30  ;;  %v3539_v28 = vsel %vm119_vm6, %v5601_v35, %v5602_v36  ;;  %v10554_v17 = vunpack.i.l.bf16 %v9504_v2 }
 0x968   :  { %4062 = vmatpush.msra.mxu2 %v3673_v37  ;;  %4082 = vmatpush.msra.mxu3 %v3674_v49  ;;  %v5707_v10 = vunpack.i.h.bf16 %v9641_v46  ;;  %v5757_v14 = vunpack.i.h.bf16 %v9719_v52  ;;  %v5717_v36 = vunpack.i.h.bf16 %v9698_v29  ;;  %v5727_v37 = vunpack.i.h.bf16 %v9660_v40 }
 0x969   :  { %v3541_v33 = vsel %vm119_vm6, %v10554_v17, %v5607_v18 }
 0x96a   :  { %v9734_v22 = vpop.permute.xlu0 %5764  ;;  %v9736_v54 = vpop.permute.xlu1 %5769 }
 0x96b   :  { %v5766_v26 = vunpack.i.l.bf16 %v9734_v22  ;;  %v5745_v48 = vpop.permute.xlu2 %5744  ;;  %v5772_v2 = vunpack.i.h.bf16 %v9736_v54 }
 0x96c   :  { %v5747_v61 = vunpack.i.h.bf16 %v5745_v48  ;;  %v5746_v25 = vunpack.i.l.bf16 %v5745_v48  ;;  %v5737_v48 = vunpack.i.h.bf16 %v9694_v50 }
 0x96d   :  { %v3807_v29 = vsel %vm435_vm2, %v5726_v62, %v5772_v2 }
 0x96e   :  { %v3605_v51 = vsel %vm198_vm5, %v5641_v34, %v5747_v61  ;;  %v3606_v23 = vsel %vm198_vm5, %v5747_v61, %v5642_v12  ;;  %v3607_v4 = vsel %vm198_vm5, %v5642_v12, %v5746_v25  ;;  %v3608_v59 = vsel %vm198_vm5, %v5746_v25, %v5766_v26 }
 0x96f   :  { %4023 = vmatpush.msra.mxu0 %v3605_v51  ;;  %4043 = vmatpush.msra.mxu1 %v3606_v23  ;;  %v5741_v34 = vunpack.i.l.bf16 %v9696_v30 }
 0x970   :  { %4063 = vmatpush.msra.mxu2 %v3607_v4  ;;  %4083 = vmatpush.msra.mxu3 %v3608_v59 }
 0x971   :  { %4024 = vmatpush.msra.mxu0 %v3539_v28  ;;  %4044 = vmatpush.msra.mxu1 %v9513_v27  ;;  %v5756_v27 = vunpack.i.l.bf16 %v9719_v52  ;;  %v3940_v52 = vsel %vm593_vm0, %v5742_v43, %v5707_v10 }
 0x972   :  { %4064 = vmatpush.msra.mxu2 %v3541_v33  ;;  %4084 = vmatpush.msra.mxu3 %v9536_v56  ;;  %v5780_v3 = vpop.permute.xlu0 %5779  ;;  %v9764_v35 = vpop.permute.xlu1 %5784  ;;  %v3939_v56 = vsel %vm593_vm0, %v5706_v8, %v5742_v43 }
 0x973   :  { %v9768_v30 = vpop.permute.xlu2 %5759  ;;  %4025 = vmatpush.msra.mxu0 %v9358_v6  ;;  %4045 = vmatpush.msra.mxu1 %v9361_v41  ;;  %v5771_v6 = vunpack.i.l.bf16 %v9736_v54  ;;  %v3941_v41 = vsel %vm593_vm0, %v5707_v10, %v5741_v34  ;;  %v5782_v49 = vunpack.i.h.bf16 %v5780_v3  ;;  %v5781_v8 = vunpack.i.l.bf16 %v5780_v3 }
 0x974   :  { %v5761_v18 = vunpack.i.l.bf16 %v9768_v30  ;;  %4065 = vmatpush.msra.mxu2 %v9380_v11  ;;  %4085 = vmatpush.msra.mxu3 %v9383_v15  ;;  %v3873_v11 = vsel %vm514_vm1, %v5716_v16, %v5757_v14  ;;  %v3874_v15 = vsel %vm514_vm1, %v5757_v14, %v5717_v36  ;;  %v3875_v54 = vsel %vm514_vm1, %v5717_v36, %v5756_v27 }
 0x975   :  { %4098 = vmatpush.msrb.mxu0 %v3939_v56  ;;  %4118 = vmatpush.msrb.mxu1 %v3940_v52  ;;  %v3808_v16 = vsel %vm435_vm2, %v5772_v2, %v5727_v37  ;;  %v3809_v12 = vsel %vm435_vm2, %v5727_v37, %v5771_v6  ;;  %v3741_v61 = vsel %vm356_vm3, %v5736_v1, %v5782_v49  ;;  %v5786_v4 = vunpack.i.l.bf16 %v9764_v35 }
 0x976   :  { %4138 = vmatpush.msrb.mxu2 %v3941_v41  ;;  %v3942_v46 = vsel %vm593_vm0, %v5741_v34, %v5761_v18  ;;  %4571 = vmatmul.msk.f32.vlgmr.msra.gmra.mxu0 %vm633_vm7, %v9670_v60  ;;  %v3742_v25 = vsel %vm356_vm3, %v5782_v49, %v5737_v48  ;;  %v3743_v40 = vsel %vm356_vm3, %v5737_v48, %v5781_v8  ;;  %v5752_v14 = vunpack.i.h.bf16 %v9717_v42 }
 0x977   :  { %4099 = vmatpush.msrb.mxu0 %v3873_v11  ;;  %4119 = vmatpush.msrb.mxu1 %v3874_v15  ;;  %v3810_v43 = vsel %vm435_vm2, %v5771_v6, %v5786_v4  ;;  %v5767_v42 = vunpack.i.h.bf16 %v9734_v22  ;;  %v10556_v22 = vunpack.i.l.bf16 %v9522_v19 }
 0x978   :  { %4139 = vmatpush.msrb.mxu2 %v3875_v54  ;;  %4158 = vmatpush.msrb.mxu3 %v3942_v46 }
 0x979   :  { %4100 = vmatpush.msrb.mxu0 %v3807_v29  ;;  %4120 = vmatpush.msrb.mxu1 %v3808_v16  ;;  %v10555_v29 = vunpack.i.h.bf16 %v9522_v19 }
 0x97a   :  { %4140 = vmatpush.msrb.mxu2 %v3809_v12  ;;  %v9803_v51 = vpop.permute.xlu0 %5794  ;;  %v9805_v23 = vpop.permute.xlu1 %5799  ;;  %4572 = vmatmul.msk.f32.vlgmr.msra.gmra.mxu1 %vm633_vm7, %v9670_v60  ;;  %v10557_v12 = vunpack.i.h.bf16 %v9520_v55 }
 0x97b   :  { %4101 = vmatpush.msrb.mxu0 %v3741_v61  ;;  %4121 = vmatpush.msrb.mxu1 %v3742_v25  ;;  %v9810_v62 = vpop.permute.xlu2 %5774  ;;  %v5796_v1 = vunpack.i.l.bf16 %v9803_v51  ;;  %v5802_v48 = vunpack.i.h.bf16 %v9805_v23  ;;  %v5801_v16 = vunpack.i.l.bf16 %v9805_v23  ;;  %v10558_v61 = vunpack.i.l.bf16 %v9520_v55 }
 0x97c   :  { %4141 = vmatpush.msrb.mxu2 %v3743_v40  ;;  %v5776_v50 = vunpack.i.l.bf16 %v9810_v62  ;;  %4574 = vmatmul.msk.f32.vlgmr.msra.gmra.mxu3 %vm633_vm7, %v9670_v60  ;;  %v5762_v40 = vunpack.i.h.bf16 %v9768_v30 }
 0x97d   :  { %4573 = vmatmul.msk.f32.vlgmr.msra.gmra.mxu2 %vm633_vm7, %v9670_v60  ;;  %v3744_v34 = vsel %vm356_vm3, %v5781_v8, %v5796_v1  ;;  %v3545_v25 = vsel %vm119_vm6, %v10558_v61, %v10557_v12 }
 0x97e   :  { %v3876_v59 = vsel %vm514_vm1, %v5756_v27, %v5776_v50 }
 0x97f   :  { %4159 = vmatpush.msrb.mxu3 %v3876_v59 }
 0x981   :  { %4160 = vmatpush.msrb.mxu3 %v3810_v43  ;;  %v5777_v43 = vunpack.i.h.bf16 %v9810_v62  ;;  %v5797_v62 = vunpack.i.h.bf16 %v9803_v51 }
 0x982   :  { %v9825_v28 = vpop.permute.xlu0 %5809  ;;  %v9831_v33 = vpop.permute.xlu1 %5814 }
 0x983   :  { %v5811_v17 = vunpack.i.l.bf16 %v9825_v28  ;;  %v5790_v10 = vpop.permute.xlu2 %5789  ;;  %4161 = vmatpush.msrb.mxu3 %v3744_v34  ;;  %v5817_v59 = vunpack.i.h.bf16 %v9831_v33  ;;  %v5816_v23 = vunpack.i.l.bf16 %v9831_v33  ;;  %v3944_v33 = vsel %vm593_vm0, %v5802_v48, %v5762_v40 }
 0x984   :  { %v5792_v3 = vunpack.i.h.bf16 %v5790_v10  ;;  %v5791_v36 = vunpack.i.l.bf16 %v5790_v10  ;;  %v5787_v10 = vunpack.i.h.bf16 %v9764_v35 }
 0x986   :  { %v3675_v27 = vsel %vm277_vm4, %v5751_v39, %v5792_v3  ;;  %v3676_v2 = vsel %vm277_vm4, %v5792_v3, %v5752_v14  ;;  %v3677_v56 = vsel %vm277_vm4, %v5752_v14, %v5791_v36  ;;  %v3678_v52 = vsel %vm277_vm4, %v5791_v36, %v5811_v17 }
 0x987   :  { %4102 = vmatpush.msrb.mxu0 %v3675_v27  ;;  %4122 = vmatpush.msrb.mxu1 %v3676_v2  ;;  %v3879_v36 = vsel %vm514_vm1, %v5777_v43, %v5816_v23 }
 0x988   :  { %4142 = vmatpush.msrb.mxu2 %v3677_v56  ;;  %4162 = vmatpush.msrb.mxu3 %v3678_v52 }
 0x98a   :  { %v9842_v37 = vpop.permute.xlu0 %5824  ;;  %v9846_v11 = vpop.permute.xlu1 %5829 }
 0x98b   :  { %v5826_v6 = vunpack.i.l.bf16 %v9842_v37  ;;  %v5805_v41 = vpop.permute.xlu2 %5804  ;;  %v5832_v55 = vunpack.i.h.bf16 %v9846_v11 }
 0x98c   :  { %v5807_v39 = vunpack.i.h.bf16 %v5805_v41  ;;  %v5806_v49 = vunpack.i.l.bf16 %v5805_v41 }
 0x98d   :  { %v3812_v27 = vsel %vm435_vm2, %v5832_v55, %v5787_v10 }
 0x98e   :  { %v3609_v15 = vsel %vm198_vm5, %v5766_v26, %v5807_v39  ;;  %v3610_v46 = vsel %vm198_vm5, %v5807_v39, %v5767_v42  ;;  %v3611_v8 = vsel %vm198_vm5, %v5767_v42, %v5806_v49  ;;  %v3612_v54 = vsel %vm198_vm5, %v5806_v49, %v5826_v6 }
 0x98f   :  { %4103 = vmatpush.msrb.mxu0 %v3609_v15  ;;  %4123 = vmatpush.msrb.mxu1 %v3610_v46  ;;  %v3543_v26 = vsel %vm119_vm6, %v10556_v22, %v10555_v29 }
 0x990   :  { %4143 = vmatpush.msrb.mxu2 %v3611_v8  ;;  %4163 = vmatpush.msrb.mxu3 %v3612_v54  ;;  %v5812_v54 = vunpack.i.h.bf16 %v9825_v28 }
 0x991   :  { %4104 = vmatpush.msrb.mxu0 %v3543_v26  ;;  %4124 = vmatpush.msrb.mxu1 %v9543_v47 }
 0x992   :  { %4144 = vmatpush.msrb.mxu2 %v3545_v25  ;;  %4164 = vmatpush.msrb.mxu3 %v9550_v57  ;;  %v5840_v19 = vpop.permute.xlu0 %5839  ;;  %v3943_v57 = vsel %vm593_vm0, %v5761_v18, %v5802_v48  ;;  %v9898_v3 = vpop.permute.xlu1 %5844 }
 0x993   :  { %v9874_v34 = vpop.permute.xlu2 %5819  ;;  %4105 = vmatpush.msrb.mxu0 %v9329_v7  ;;  %4125 = vmatpush.msrb.mxu1 %v9332_v9  ;;  %v5831_v7 = vunpack.i.l.bf16 %v9846_v11  ;;  %v3945_v9 = vsel %vm593_vm0, %v5762_v40, %v5801_v16  ;;  %v5842_v14 = vunpack.i.h.bf16 %v5840_v19  ;;  %v5841_v18 = vunpack.i.l.bf16 %v5840_v19 }
 0x994   :  { %v5821_v47 = vunpack.i.l.bf16 %v9874_v34  ;;  %4145 = vmatpush.msrb.mxu2 %v9323_v45  ;;  %4165 = vmatpush.msrb.mxu3 %v9326_v21  ;;  %v3877_v45 = vsel %vm514_vm1, %v5776_v50, %v5817_v59  ;;  %v3878_v21 = vsel %vm514_vm1, %v5817_v59, %v5777_v43  ;;  %v3811_v50 = vsel %vm435_vm2, %v5786_v4, %v5832_v55 }
 0x995   :  { %4178 = vmatpush.msra.mxu0 %v3943_v57  ;;  %4198 = vmatpush.msra.mxu1 %v3944_v33  ;;  %v3813_v2 = vsel %vm435_vm2, %v5787_v10, %v5831_v7  ;;  %v3745_v56 = vsel %vm356_vm3, %v5796_v1, %v5842_v14  ;;  %v3746_v52 = vsel %vm356_vm3, %v5842_v14, %v5797_v62  ;;  %v5846_v42 = vunpack.i.l.bf16 %v9898_v3 }
 0x996   :  { %4218 = vmatpush.msra.mxu2 %v3945_v9  ;;  %v3946_v30 = vsel %vm593_vm0, %v5801_v16, %v5821_v47  ;;  %4575 = vmatmul.msk.f32.vlgmr.msrb.gmra.mxu0 %vm633_vm7, %v9670_v60  ;;  %v3747_v35 = vsel %vm356_vm3, %v5797_v62, %v5841_v18  ;;  %v5827_v16 = vunpack.i.h.bf16 %v9842_v37  ;;  %v5822_v19 = vunpack.i.h.bf16 %v9874_v34 }
 0x997   :  { %4179 = vmatpush.msra.mxu0 %v3877_v45  ;;  %4199 = vmatpush.msra.mxu1 %v3878_v21  ;;  %v3814_v49 = vsel %vm435_vm2, %v5831_v7, %v5846_v42  ;;  %v10560_v43 = vunpack.i.l.bf16 %v9528_v24  ;;  %v10562_v33 = vunpack.i.l.bf16 %v9559_v31  ;;  %v5847_v9 = vunpack.i.h.bf16 %v9898_v3 }
 0x998   :  { %4219 = vmatpush.msra.mxu2 %v3879_v36  ;;  %4238 = vmatpush.msra.mxu3 %v3946_v30  ;;  %v3947_v14 = vsel %vm593_vm0, %v5821_v47, %v5822_v19 }
 0x999   :  { %4180 = vmatpush.msra.mxu0 %v3811_v50  ;;  %4200 = vmatpush.msra.mxu1 %v3812_v27 }
 0x99a   :  { %4220 = vmatpush.msra.mxu2 %v3813_v2  ;;  %v9911_v41 = vpop.permute.xlu0 %5854  ;;  %4578 = vmatmul.msk.f32.vlgmr.msrb.gmra.mxu3 %vm633_vm7, %v9670_v60  ;;  %v5860_v11 = vpop.permute.xlu1 %5859 }
 0x99b   :  { %4181 = vmatpush.msra.mxu0 %v3745_v56  ;;  %4201 = vmatpush.msra.mxu1 %v3746_v52  ;;  %v9916_v4 = vpop.permute.xlu2 %5834  ;;  %v5856_v1 = vunpack.i.l.bf16 %v9911_v41  ;;  %v5862_v48 = vunpack.i.h.bf16 %v5860_v11  ;;  %v5861_v26 = vunpack.i.l.bf16 %v5860_v11  ;;  %v5857_v45 = vunpack.i.h.bf16 %v9911_v41 }
 0x99c   :  { %4221 = vmatpush.msra.mxu2 %v3747_v35  ;;  %v5836_v51 = vunpack.i.l.bf16 %v9916_v4  ;;  %4576 = vmatmul.msk.f32.vlgmr.msrb.gmra.mxu1 %vm633_vm7, %v9670_v60  ;;  %v5837_v55 = vunpack.i.h.bf16 %v9916_v4  ;;  %v10563_v41 = vunpack.i.h.bf16 %v9577_v13  ;;  %v10564_v35 = vunpack.i.l.bf16 %v9577_v13 }
 0x99d   :  { %4577 = vmatmul.msk.f32.vlgmr.msrb.gmra.mxu2 %vm633_vm7, %v9670_v60  ;;  %v3748_v15 = vsel %vm356_vm3, %v5841_v18, %v5856_v1  ;;  %v3613_v40 = vsel %vm198_vm5, %v5826_v6, %v5862_v48  ;;  %v3614_v59 = vsel %vm198_vm5, %v5862_v48, %v5827_v16  ;;  %v3615_v28 = vsel %vm198_vm5, %v5827_v16, %v5861_v26 }
 0x99e   :  { %v3880_v39 = vsel %vm514_vm1, %v5816_v23, %v5836_v51  ;;  %v10561_v6 = vunpack.i.h.bf16 %v9559_v31  ;;  %v3881_v21 = vsel %vm514_vm1, %v5836_v51, %v5837_v55  ;;  %v3749_v47 = vsel %vm356_vm3, %v5856_v1, %v5857_v45 }
 0x99f   :  { %4239 = vmatpush.msra.mxu3 %v3880_v39  ;;  %v3551_v4 = vsel %vm119_vm6, %v10564_v35, %v10563_v41 }
 0x9a0   :  { %v3549_v10 = vsel %vm119_vm6, %v10562_v33, %v10561_v6 }
 0x9a1   :  { %4240 = vmatpush.msra.mxu3 %v3814_v49 }
 0x9a2   :  { %v9930_v46 = vpop.permute.xlu0 %3597  ;;  %v3932_v37 = vpop.permute.xlu1 %3931 }
 0x9a3   :  { %v5850_v8 = vpop.permute.xlu2 %5849  ;;  %4241 = vmatpush.msra.mxu3 %v3748_v15 }
 0x9a4   :  { %v5852_v29 = vunpack.i.h.bf16 %v5850_v8  ;;  %v5851_v22 = vunpack.i.l.bf16 %v5850_v8 }
 0x9a6   :  { %v3679_v12 = vsel %vm277_vm4, %v5811_v17, %v5852_v29  ;;  %v3680_v61 = vsel %vm277_vm4, %v5852_v29, %v5812_v54  ;;  %v3681_v25 = vsel %vm277_vm4, %v5812_v54, %v5851_v22  ;;  %v10559_v17 = vunpack.i.h.bf16 %v9528_v24 }
 0x9a7   :  { %4182 = vmatpush.msra.mxu0 %v3679_v12  ;;  %4202 = vmatpush.msra.mxu1 %v3680_v61 }
 0x9a8   :  { %4222 = vmatpush.msra.mxu2 %v3681_v25  ;;  %v3547_v23 = vsel %vm119_vm6, %v10560_v43, %v10559_v17 }
 0x9a9   :  { %4183 = vmatpush.msra.mxu0 %v3613_v40  ;;  %4203 = vmatpush.msra.mxu1 %v3614_v59  ;;  %v4590_v59 = vld [vmem:[%s10172_s4 + $0x208] sm:$0xff] }
 0x9aa   :  { %4223 = vmatpush.msra.mxu2 %v3615_v28  ;;  %v3800_v24 = vpop.permute.xlu0 %3799  ;;  %v3734_v18 = vpop.permute.xlu1 %3733 }
 0x9ab   :  { %v5865_v57 = vpop.permute.xlu2 %5864  ;;  %4184 = vmatpush.msra.mxu0 %v3547_v23  ;;  %4204 = vmatpush.msra.mxu1 %v9568_v32  ;;  %v3948_v32 = vsel %vm593_vm0, %v5822_v19, %v3932_v37  ;;  %v3816_v36 = vsel %vm435_vm2, %v5847_v9, %v3800_v24  ;;  %v3750_v62 = vsel %vm356_vm3, %v5857_v45, %v3734_v18  ;;  %v4593_v45 = vld [vmem:[%s10172_s4 + $0x220] sm:$0xff] }
 0x9ac   :  { %v5866_v7 = vunpack.i.l.bf16 %v5865_v57  ;;  %4224 = vmatpush.msra.mxu2 %v3549_v10 }
 0x9ad   :  { %4185 = vmatpush.msra.mxu0 %v9399_v0  ;;  %4205 = vmatpush.msra.mxu1 %v9402_v5  ;;  %v3616_v0 = vsel %vm198_vm5, %v5861_v26, %v9930_v46  ;;  %v5867_v5 = vunpack.i.h.bf16 %v5865_v57  ;;  %v4589_v26 = vld [vmem:[%s10172_s4 + $0x200] sm:$0xff] }
 0x9ae   :  { %4225 = vmatpush.msra.mxu2 %v9419_v58  ;;  %v3682_v31 = vsel %vm277_vm4, %v5851_v22, %v5866_v7  ;;  %v3815_v58 = vsel %vm435_vm2, %v5846_v42, %v5847_v9  ;;  %4579 = vmatmul.msk.f32.vlgmr.msra.gmra.mxu0 %vm633_vm7, %v9670_v60  ;;  %v4585_v42 = vld [vmem:[%s10172_s4 + $0x1e0] sm:$0xff] }
 0x9af   :  { %4258 = vmatpush.msrb.mxu0 %v3947_v14  ;;  %4278 = vmatpush.msrb.mxu1 %v3948_v32  ;;  %v3683_v3 = vsel %vm277_vm4, %v5866_v7, %v5867_v5  ;;  %v4592_v7 = vld [vmem:[%s10172_s4 + $0x218] sm:$0xff] }
 0x9b0   :  { %4242 = vmatpush.msra.mxu3 %v3682_v31  ;;  %4581 = vmatmul.msk.f32.vlgmr.msra.gmra.mxu2 %vm633_vm7, %v9670_v60 }
 0x9b1   :  { %4259 = vmatpush.msrb.mxu0 %v3881_v21  ;;  %4580 = vmatmul.msk.f32.vlgmr.msra.gmra.mxu1 %vm633_vm7, %v9670_v60 }
 0x9b2   :  { %4243 = vmatpush.msra.mxu3 %v3616_v0 }
 0x9b3   :  { %4260 = vmatpush.msrb.mxu0 %v3815_v58  ;;  %v3866_v34 = vpop.permute.xlu2 %3865 }
 0x9b4   :  { %4244 = vmatpush.msra.mxu3 %v9587_v44  ;;  %v3882_v30 = vsel %vm514_vm1, %v5837_v55, %v3866_v34  ;;  %v3668_v44 = vpop.permute.xlu0 %3667  ;;  %v4591_v55 = vld [vmem:[%s10172_s4 + $0x210] sm:$0xff] }
 0x9b5   :  { %4261 = vmatpush.msrb.mxu0 %v3749_v47  ;;  %4279 = vmatpush.msrb.mxu1 %v3882_v30  ;;  %v3684_v50 = vsel %vm277_vm4, %v5867_v5, %v3668_v44  ;;  %v4594_v47 = vld [vmem:[%s10172_s4 + $0x228] sm:$0xff] }
 0x9b6   :  { %4245 = vmatpush.msra.mxu3 %v9422_v53 }
 0x9b7   :  { %4582 = vmatmul.msk.f32.vlgmr.msra.gmra.mxu3 %vm633_vm7, %v9670_v60  ;;  %4262 = vmatpush.msrb.mxu0 %v3683_v3 }
 0x9b8   :  { %4280 = vmatpush.msrb.mxu1 %v3816_v36 }
 0x9ba   :  { %4281 = vmatpush.msrb.mxu1 %v3750_v62  ;;  %v4595_v62 = vld [vmem:[%s10172_s4 + $0x230] sm:$0xff] }
 0x9bb   :  { %v5870_v27 = vpop.permute.xlu2 %5869 }
 0x9bc   :  { %4282 = vmatpush.msrb.mxu1 %v3684_v50  ;;  %v5872_v2 = vunpack.i.h.bf16 %v5870_v27  ;;  %v5871_v53 = vunpack.i.l.bf16 %v5870_v27 }
 0x9be   :  { %v3617_v56 = vsel %vm198_vm5, %v9930_v46, %v5871_v53  ;;  %v3618_v52 = vsel %vm198_vm5, %v5871_v53, %v5872_v2  ;;  %v4588_v46 = vld [vmem:[%s10172_s4 + $0x1f8] sm:$0xff] }
 0x9bf   :  { %4263 = vmatpush.msrb.mxu0 %v3617_v56  ;;  %4283 = vmatpush.msrb.mxu1 %v3618_v52  ;;  %v4596_v52 = vld [vmem:[%s10172_s4 + $0x238] sm:$0xff] }
 0x9c1   :  { %4264 = vmatpush.msrb.mxu0 %v3551_v4  ;;  %4284 = vmatpush.msrb.mxu1 %v9592_v63  ;;  %v4586_v63 = vld [vmem:[%s10172_s4 + $0x1e8] sm:$0xff] }
 0x9c3   :  { %4265 = vmatpush.msrb.mxu0 %v9433_v20  ;;  %4285 = vmatpush.msrb.mxu1 %v9436_v38 }
 0x9c4   :  { %4583 = vmatmul.msk.f32.vlgmr.msrb.gmra.mxu0 %vm633_vm7, %v9670_v60  ;;  %4584 = vmatmul.msk.f32.vlgmr.msrb.gmra.mxu1 %vm633_vm7, %v9670_v60  ;;  %v4587_v60 = vld [vmem:[%s10172_s4 + $0x1f0] sm:$0xff] }
 0x9d5   :  { %v10012_v51 = vpop.f32.mrf.mxu2 }
 0x9d6   :  { %v4307_v20 = vmul.f32 %v4585_v42, %v10012_v51 }
 0x9d8   :  { %v4341_v39 = vmul.f32 %v4307_v20, %v4307_v20 }
 0x9de   :  { %v10007_v13 = vpop.f32.mrf.mxu3 }
 0x9df   :  { %v4308_v38 = vmul.f32 %v4586_v63, %v10007_v13 }
 0x9e1   :  { %v4342_v49 = vmul.f32 %v4308_v38, %v4308_v38  ;;  %v4323_v8 = vadd.f32 %v4308_v38, %v4307_v20  ;;  %v4597_v20 = vld [vmem:[%s10172_s4 + $0x240] sm:$0xff] }
 0x9e3   :  { %v4357_v54 = vadd.f32 %v4342_v49, %v4341_v39  ;;  %v4598_v39 = vld [vmem:[%s10172_s4 + $0x248] sm:$0xff] }
 0x9f3   :  { %v10016_v1 = vpop.f32.mrf.mxu0 }
 0x9f4   :  { %v4309_v11 = vmul.f32 %v4587_v60, %v10016_v1 }
 0x9f6   :  { %v4343_v48 = vmul.f32 %v4309_v11, %v4309_v11  ;;  %v4324_v16 = vadd.f32 %v4323_v8, %v4309_v11 }
 0x9f7   :  { %v10022_v15 = vpop.f32.mrf.mxu1 }
 0x9f8   :  { %v4310_v29 = vmul.f32 %v4588_v46, %v10022_v15  ;;  %v4358_v12 = vadd.f32 %v4357_v54, %v4343_v48 }
 0x9fa   :  { %v4344_v61 = vmul.f32 %v4310_v29, %v4310_v29  ;;  %v4325_v19 = vadd.f32 %v4324_v16, %v4310_v29  ;;  %v4600_v16 = vld [vmem:[%s10172_s4 + $0x258] sm:$0xff] }
 0x9fc   :  { %v4359_v28 = vadd.f32 %v4358_v12, %v4344_v61 }
 0x9ff   :  { %v10034_v40 = vpop.f32.mrf.mxu3 }
 0xa00   :  { %v10028_v22 = vpop.f32.mrf.mxu2  ;;  %v4312_v43 = vmul.f32 %v4590_v59, %v10034_v40 }
 0xa01   :  { %v4311_v25 = vmul.f32 %v4589_v26, %v10028_v22  ;;  %v4599_v26 = vld [vmem:[%s10172_s4 + $0x250] sm:$0xff] }
 0xa02   :  { %v4346_v6 = vmul.f32 %v4312_v43, %v4312_v43 }
 0xa03   :  { %v4345_v17 = vmul.f32 %v4311_v25, %v4311_v25  ;;  %v4326_v37 = vadd.f32 %v4325_v19, %v4311_v25 }
 0xa05   :  { %v4360_v57 = vadd.f32 %v4359_v28, %v4345_v17  ;;  %v4327_v9 = vadd.f32 %v4326_v37, %v4312_v43 }
 0xa07   :  { %v4361_v24 = vadd.f32 %v4360_v57, %v4346_v6 }
 0xa13   :  { %v10040_v23 = vpop.f32.mrf.mxu0 }
 0xa14   :  { %v4313_v33 = vmul.f32 %v4591_v55, %v10040_v23 }
 0xa16   :  { %v4347_v14 = vmul.f32 %v4313_v33, %v4313_v33  ;;  %v4328_v21 = vadd.f32 %v4327_v9, %v4313_v33 }
 0xa18   :  { %v4362_v0 = vadd.f32 %v4361_v24, %v4347_v14 }
 0xa19   :  { %v10046_v10 = vpop.f32.mrf.mxu1 }
 0xa1a   :  { %v4314_v32 = vmul.f32 %v4592_v7, %v10046_v10 }
 0xa1c   :  { %v4348_v5 = vmul.f32 %v4314_v32, %v4314_v32  ;;  %v4329_v30 = vadd.f32 %v4328_v21, %v4314_v32 }
 0xa1d   :  { %v10058_v34 = vpop.f32.mrf.mxu3 }
 0xa1e   :  { %v4363_v18 = vadd.f32 %v4362_v0, %v4348_v5  ;;  %v4316_v36 = vmul.f32 %v4594_v47, %v10058_v34 }
 0xa20   :  { %v10052_v31 = vpop.f32.mrf.mxu2  ;;  %v4350_v2 = vmul.f32 %v4316_v36, %v4316_v36 }
 0xa21   :  { %v4315_v58 = vmul.f32 %v4593_v45, %v10052_v31 }
 0xa23   :  { %v4349_v3 = vmul.f32 %v4315_v58, %v4315_v58  ;;  %v4330_v50 = vadd.f32 %v4329_v30, %v4315_v58 }
 0xa25   :  { %v4364_v27 = vadd.f32 %v4363_v18, %v4349_v3  ;;  %v4331_v41 = vadd.f32 %v4330_v50, %v4316_v36 }
 0xa27   :  { %v4365_v35 = vadd.f32 %v4364_v27, %v4350_v2 }
 0xa2b   :  { %v10064_v44 = vpop.f32.mrf.mxu0 }
 0xa2c   :  { %v4317_v53 = vmul.f32 %v4595_v62, %v10064_v44  ;;  %v4601_v62 = vld [vmem:[%s10173_s2 + $0x18] sm:$0xff] }
 0xa2e   :  { %v10070_v56 = vpop.f32.mrf.mxu1  ;;  %v4351_v4 = vmul.f32 %v4317_v53, %v4317_v53  ;;  %v4332_v38 = vadd.f32 %v4331_v41, %v4317_v53  ;;  %v4602_v53 = vld [vmem:[%s10174_s3 + $0x18] sm:$0xff] }
 0xa2f   :  { %v4318_v42 = vmul.f32 %v4596_v52, %v10070_v56 }
 0xa30   :  { %v4366_v49 = vadd.f32 %v4365_v35, %v4351_v4 }
 0xa31   :  { %v4352_v11 = vmul.f32 %v4318_v42, %v4318_v42  ;;  %v4333_v8 = vadd.f32 %v4332_v38, %v4318_v42 }
 0xa33   :  { %v10076_v63 = vpop.f32.mrf.mxu2  ;;  %v4367_v48 = vadd.f32 %v4366_v49, %v4352_v11 }
 0xa34   :  { %v4319_v46 = vmul.f32 %v4597_v20, %v10076_v63 }
 0xa36   :  { %v4353_v29 = vmul.f32 %v4319_v46, %v4319_v46  ;;  %v4334_v12 = vadd.f32 %v4333_v8, %v4319_v46 }
 0xa38   :  { %v4368_v19 = vadd.f32 %v4367_v48, %v4353_v29 }
 0xa3a   :  { %v10081_v60 = vpop.f32.mrf.mxu3 }
 0xa3b   :  { %v4320_v54 = vmul.f32 %v4598_v39, %v10081_v60 }
 0xa3d   :  { %v4354_v61 = vmul.f32 %v4320_v54, %v4320_v54  ;;  %v4335_v28 = vadd.f32 %v4334_v12, %v4320_v54 }
 0xa3f   :  { %v4369_v55 = vadd.f32 %v4368_v19, %v4354_v61 }
 0xa41   :  { %v10094_v25 = vpop.f32.mrf.mxu0  ;;  %v10096_v59 = vpop.f32.mrf.mxu1 }
 0xa42   :  { %v4321_v17 = vmul.f32 %v4599_v26, %v10094_v25  ;;  %v4322_v43 = vmul.f32 %v4600_v16, %v10096_v59 }
 0xa44   :  { %v4336_v37 = vadd.f32 %v4335_v28, %v4321_v17  ;;  %v4355_v57 = vmul.f32 %v4321_v17, %v4321_v17  ;;  %v4356_v6 = vmul.f32 %v4322_v43, %v4322_v43 }
 0xa46   :  { %v4370_v33 = vadd.f32 %v4369_v55, %v4355_v57  ;;  %v4337_v7 = vadd.f32 %v4336_v37, %v4322_v43 }
 0xa48   :  { %4338 = vadd.xlane.f32.xlu1 %v4337_v7  ;;  %v4371_v9 = vadd.f32 %v4370_v33, %v4356_v6 }
 0xa4a   :  { %4372 = vadd.xlane.f32.xlu2 %v4371_v9 }
 0xabb   :  { %v4339_v24 = vpop.xlane.xlu1 %4338 }
 0xabc   :  { %v4340_v14 = vmul.f32 0.0009765625, %v4339_v24 }
 0xabd   :  { %v4373_v32 = vpop.xlane.xlu2 %4372 }
 0xabe   :  { %v4375_v45 = vmul.f32 %v4340_v14, %v4340_v14  ;;  %v4374_v21 = vmul.f32 0.0009765625, %v4373_v32 }
 0xac0   :  { %v4376_v0 = vsub.f32 %v4374_v21, %v4375_v45 }
 0xac2   :  { %v4379_v5 = vadd.f32 1e-05, %v4376_v0 }
 0xac4   :  { %5879 = vrsqrt.f32 %v4379_v5  ;;  %vm4386_vm1 = vweird.f32 %v4379_v5 }
 0xaca   :  { %v5880_v58 = vpop.eup %5879 }
 0xacb   :  { %v4381_v47 = vmul.f32 %v5880_v58, %v4379_v5  ;;  %vm4387_vm0 = vweird.f32 %v5880_v58 }
 0xacc   :  { %vm4388_vm2 = vmor %vm4386_vm1, %vm4387_vm0 }
 0xacd   :  { %v4382_v30 = vmul.f32 %v5880_v58, %v4381_v47 }
 0xacf   :  { %v4383_v18 = vmul.f32 0.5, %v4382_v30 }
 0xad1   :  { %v4384_v3 = vsub.f32 1.5, %v4383_v18 }
 0xad3   :  { %v4385_v36 = vmul.f32 %v5880_v58, %v4384_v3 }
 0xad5   :  { %v4389_v50 = vsel %vm4388_vm2, %v5880_v58, %v4385_v36 }
 0xad6   :  { %v4390_v27 = vmul.f32 %v4601_v62, %v4389_v50 }
 0xad8   :  { %4397 = vperm.xlu0 %4961, %v4390_v27   ;;  %v4393_v2 = vmul.f32 %v4390_v27, %v4340_v14 }
 0xada   :  { %v4394_v52 = vsub.f32 %v4602_v53, %v4393_v2 }
 0xae0   :  { %4418 = vperm.xlu0 %4961, %v4394_v52  }
 0xb4a   :  { %v4398_v41 = vpop.permute.xlu0 %4397 }
 0xb4b   :  { %v4400_v35 = vmul.f32 %v4398_v41, %v10012_v51  ;;  %v4401_v4 = vmul.f32 %v4398_v41, %v10007_v13  ;;  %v4402_v42 = vmul.f32 %v4398_v41, %v10016_v1  ;;  %v4403_v20 = vmul.f32 %v4398_v41, %v10022_v15 }
 0xb4c   :  { %v4404_v39 = vmul.f32 %v4398_v41, %v10028_v22  ;;  %v4405_v8 = vmul.f32 %v4398_v41, %v10034_v40  ;;  %v4406_v48 = vmul.f32 %v4398_v41, %v10040_v23  ;;  %v4407_v51 = vmul.f32 %v4398_v41, %v10046_v10 }
 0xb4d   :  { %v4408_v13 = vmul.f32 %v4398_v41, %v10052_v31  ;;  %v4409_v22 = vmul.f32 %v4398_v41, %v10058_v34  ;;  %v4410_v28 = vmul.f32 %v4398_v41, %v10064_v44  ;;  %v4411_v23 = vmul.f32 %v4398_v41, %v10070_v56 }
 0xb4e   :  { %v4412_v34 = vmul.f32 %v4398_v41, %v10076_v63  ;;  %v4413_v44 = vmul.f32 %v4398_v41, %v10081_v60  ;;  %v4414_v56 = vmul.f32 %v4398_v41, %v10094_v25  ;;  %v4415_v63 = vmul.f32 %v4398_v41, %v10096_v59 }
 0xb52   :  { %v4419_v38 = vpop.permute.xlu0 %4418 }
 0xb53   :  { %v4421_v49 = vadd.f32 %v4419_v38, %v4400_v35  ;;  %v4422_v11 = vadd.f32 %v4419_v38, %v4401_v4  ;;  %v4423_v46 = vadd.f32 %v4419_v38, %v4402_v42  ;;  %v4424_v54 = vadd.f32 %v4419_v38, %v4403_v20 }
 0xb54   :  { %v4425_v29 = vadd.f32 %v4419_v38, %v4404_v39  ;;  %v4426_v26 = vadd.f32 %v4419_v38, %v4405_v8  ;;  %v4427_v1 = vadd.f32 %v4419_v38, %v4406_v48  ;;  %v4428_v61 = vadd.f32 %v4419_v38, %v4407_v51 }
 0xb55   :  { %v4437_v16 = vmax.f32 %v4421_v49, 0.0  ;;  %v4438_v15 = vmax.f32 %v4422_v11, 0.0  ;;  %v4439_v12 = vmax.f32 %v4423_v46, 0.0  ;;  %v4440_v19 = vmax.f32 %v4424_v54, 0.0 }
 0xb56   :  { %v4429_v40 = vadd.f32 %v4419_v38, %v4408_v13  ;;  %v4441_v17 = vmax.f32 %v4425_v29, 0.0  ;;  %v4430_v10 = vadd.f32 %v4419_v38, %v4409_v22  ;;  %v4442_v31 = vmax.f32 %v4426_v26, 0.0 }
 0xb57   :  { %4453 = vst [vmem:[%s10175_s5] sm:$0xff] %v4437_v16  ;;  %v4431_v43 = vadd.f32 %v4419_v38, %v4410_v28  ;;  %v4443_v55 = vmax.f32 %v4427_v1, 0.0  ;;  %v4432_v37 = vadd.f32 %v4419_v38, %v4411_v23  ;;  %v4444_v57 = vmax.f32 %v4428_v61, 0.0 }
 0xb58   :  { %4454 = vst [vmem:[%s10175_s5 + $0x8] sm:$0xff] %v4438_v15  ;;  %v4433_v6 = vadd.f32 %v4419_v38, %v4412_v34  ;;  %v4445_v33 = vmax.f32 %v4429_v40, 0.0  ;;  %v4434_v7 = vadd.f32 %v4419_v38, %v4413_v44  ;;  %v4446_v9 = vmax.f32 %v4430_v10, 0.0 }
 0xb59   :  { %4455 = vst [vmem:[%s10175_s5 + $0x10] sm:$0xff] %v4439_v12  ;;  %v4435_v60 = vadd.f32 %v4419_v38, %v4414_v56  ;;  %v4447_v24 = vmax.f32 %v4431_v43, 0.0  ;;  %v4436_v25 = vadd.f32 %v4419_v38, %v4415_v63  ;;  %v4448_v14 = vmax.f32 %v4432_v37, 0.0 }
 0xb5a   :  { %4456 = vst [vmem:[%s10175_s5 + $0x18] sm:$0xff] %v4440_v19  ;;  %v4449_v32 = vmax.f32 %v4433_v6, 0.0  ;;  %v4450_v59 = vmax.f32 %v4434_v7, 0.0 }
 0xb5b   :  { %4457 = vst [vmem:[%s10175_s5 + $0x20] sm:$0xff] %v4441_v17  ;;  %v4451_v45 = vmax.f32 %v4435_v60, 0.0  ;;  %v4452_v21 = vmax.f32 %v4436_v25, 0.0 }
 0xb5c   :  { %4458 = vst [vmem:[%s10175_s5 + $0x28] sm:$0xff] %v4442_v31 }
 0xb5d   :  { %4459 = vst [vmem:[%s10175_s5 + $0x30] sm:$0xff] %v4443_v55 }
 0xb5e   :  { %4460 = vst [vmem:[%s10175_s5 + $0x38] sm:$0xff] %v4444_v57 }
 0xb5f   :  { %4461 = vst [vmem:[%s10175_s5 + $0x40] sm:$0xff] %v4445_v33 }
 0xb60   :  { %4462 = vst [vmem:[%s10175_s5 + $0x48] sm:$0xff] %v4446_v9 }
 0xb61   :  { %4463 = vst [vmem:[%s10175_s5 + $0x50] sm:$0xff] %v4447_v24 }
 0xb62   :  { %4464 = vst [vmem:[%s10175_s5 + $0x58] sm:$0xff] %v4448_v14 }
 0xb63   :  { %4465 = vst [vmem:[%s10175_s5 + $0x60] sm:$0xff] %v4449_v32 }
 0xb64   :  { %4466 = vst [vmem:[%s10175_s5 + $0x68] sm:$0xff] %v4450_v59 }
 0xb65   :  { %4467 = vst [vmem:[%s10175_s5 + $0x70] sm:$0xff] %v4451_v45 }
 0xb66   :  { %4468 = vst [vmem:[%s10175_s5 + $0x78] sm:$0xff] %v4452_v21 }

</bundles_post_ra>
